<compile_context>
chip_gen: v7x
topology: tpu7x:2x2x1
jax: 0.10.0
libtpu: 0.0.40
codegen_flags: <defaults>
</compile_context>

<pallas_src>
import math

import jax
import jax.numpy as jnp
from jax.experimental import pallas as pl
from jax.experimental.pallas import tpu as pltpu

# ---------------- config (small synthetic shapes) ----------------
B = 2            # batch
PFX = 4          # prefix (prompt) length
T = 12           # text length
S = PFX + T      # full sequence length
H = 64           # plm hidden size (== plm embedding dim)
HH = H // 2      # feature size after self.linear
NH = 2           # attention heads
HD = H // NH     # head dim
FF = 4 * H       # FFN inner dim
NLAYERS = 2      # synthetic encoder depth
VOCAB = 50       # synthetic word vocab
OUT_W = 128      # lane-dense packed head output width
NEG = float(jnp.finfo(jnp.float32).min)


def _tensorcores_per_chip() -> int:
    """Compile-time switch: dual-TC chips keep a per-batch parallel grid."""
    try:
        kind = jax.devices()[0].device_kind.lower()
    except Exception:
        return 1
    return 2 if ("v7" in kind or "7x" in kind) else 1


# Batch elements processed per grid step:
#  * single-TC (v5e/v6e): all B at once -> one grid step, (B*S, H) activations
#  * dual-TC  (v7x)     : 1 per step   -> grid=(B,), one step per TensorCore
GROUP = B if _tensorcores_per_chip() < 2 else 1
NG = B // GROUP          # number of grid steps
GS = GROUP * S           # stacked sequence rows handled per grid step


# ---------------- in-kernel helpers ----------------
def _layer_norm(x, g, b, eps=1e-12):
    mu = jnp.mean(x, axis=-1, keepdims=True)
    var = jnp.mean((x - mu) * (x - mu), axis=-1, keepdims=True)
    return (x - mu) * jax.lax.rsqrt(var + eps) * g + b


def _gelu(x):
    # tanh approximation (synthetic PLM; HF BERT default is exact erf GELU)
    c = math.sqrt(2.0 / math.pi)
    return 0.5 * x * (1.0 + jnp.tanh(c * (x + 0.044715 * x * x * x)))


# ---------------- fused kernel: encoder stack + head (one batch group per grid step) ----
def fused_kernel(x_ref, bias_ref, pmask_ref,
                 wq_ref, bq_ref, wk_ref, bk_ref, wv_ref, bv_ref,
                 wo_ref, bo_ref, g1_ref, be1_ref,
                 w1_ref, bf1_ref, w2_ref, bf2_ref, g2_ref, be2_ref,
                 wlin_ref, blin_ref, wcls_ref, bcls_ref, out_ref):
    x = x_ref[0]                 # (GS, H) stacked activations, VMEM/vreg resident
    bias = bias_ref[0]           # (GS, GS) block-diagonal additive attention bias

    # -------- transformer encoder stack (static unroll over layers) --------
    for l in range(NLAYERS):
        # K projected once per layer; transposed ONCE so per-head slices are
        # aligned sublane slices of kT (no per-head transposes).
        k = jnp.dot(x, wk_ref[l], preferred_element_type=jnp.float32) + bk_ref[l]
        kt = k.T                                               # (H, GS)

        ctxs = []
        for h in range(NH):
            # per-head Q/V projections (softmax scale folded into wq/bq at init)
            q_h = (jnp.dot(x, wq_ref[l * NH + h], preferred_element_type=jnp.float32)
                   + bq_ref[l * NH + h])                       # (GS, HD)
            v_h = (jnp.dot(x, wv_ref[l * NH + h], preferred_element_type=jnp.float32)
                   + bv_ref[l * NH + h])                       # (GS, HD)
            kt_h = kt[h * HD:(h + 1) * HD, :]                  # aligned sublane slice
            s = jnp.dot(q_h, kt_h, preferred_element_type=jnp.float32) + bias
            # keep the row-max subtraction: mask uses finfo.min
            s = s - jnp.max(s, axis=-1, keepdims=True)
            p = jnp.exp(s)
            p = p * pl.reciprocal(jnp.sum(p, axis=-1, keepdims=True), approx=True)
            ctxs.append(jnp.dot(p, v_h, preferred_element_type=jnp.float32))

        # lane-concat head contexts -> one (GS,H)@(H,H) output projection
        ctx = jnp.concatenate(ctxs, axis=-1)                   # (GS, H)
        attn = jnp.dot(ctx, wo_ref[l], preferred_element_type=jnp.float32) + bo_ref[l]

        y = _layer_norm(x + attn, g1_ref[l], be1_ref[l])
        ff = _gelu(jnp.dot(y, w1_ref[l], preferred_element_type=jnp.float32) + bf1_ref[l])
        ff = jnp.dot(ff, w2_ref[l], preferred_element_type=jnp.float32) + bf2_ref[l]
        x = _layer_norm(y + ff, g2_ref[l], be2_ref[l])

    # -------- head: tanh(linear) + masked mean pooling + pair classifier --------
    feat = jnp.tanh(jnp.dot(x, wlin_ref[...], preferred_element_type=jnp.float32)
                    + blin_ref[...])                           # (GS, HH)

    # pooling matrix rows are pre-normalized in the wrapper -> exact masked mean
    pmask = pmask_ref[0]                                       # (2*GROUP, GS)
    pooled = jnp.dot(pmask, feat, preferred_element_type=jnp.float32)   # (2*GROUP, HH)
    left = pooled[:GROUP, :]                                   # (GROUP, HH)
    right = pooled[GROUP:, :]                                  # (GROUP, HH)

    # logit_b = [left_b, right_b] . wcls + bcls  (wcls pre-reshaped to (2, HH))
    wcls = wcls_ref[...]
    z = left * wcls[0:1, :] + right * wcls[1:2, :]             # (GROUP, HH)
    logit = jnp.sum(z, axis=-1, keepdims=True) + bcls_ref[...] # (GROUP, 1)

    # single lane-dense output: lanes [0:HH] = left_feat, lane HH = logit
    left_pad = jnp.concatenate(
        [left, jnp.zeros((GROUP, OUT_W - HH), jnp.float32)], axis=-1)   # (GROUP, OUT_W)
    lane = jax.lax.broadcasted_iota(jnp.int32, (GROUP, OUT_W), 1)
    out_ref[0] = jnp.where(lane == HH, logit, left_pad)


def run_fused(embed, att_bias, pmask, *weights):
    # grid-invariant weight blocks (loaded once; ~0.5 MB total so double
    # buffering is irrelevant here — single-buffer them when scaling up).
    rep2 = lambda shape: pl.BlockSpec(shape, lambda g: (0, 0))
    rep3 = lambda shape: pl.BlockSpec(shape, lambda g: (0, 0, 0))
    in_specs = [
        pl.BlockSpec((1, GS, H), lambda g: (g, 0, 0)),            # stacked activations
        pl.BlockSpec((1, GS, GS), lambda g: (g, 0, 0)),           # block-diag attn bias
        pl.BlockSpec((1, 2 * GROUP, GS), lambda g: (g, 0, 0)),    # pre-normalized pooling
        rep3((NLAYERS * NH, H, HD)), rep3((NLAYERS * NH, 1, HD)),  # per-head Q (pre-scaled)
        rep3((NLAYERS, H, H)), rep3((NLAYERS, 1, H)),              # K
        rep3((NLAYERS * NH, H, HD)), rep3((NLAYERS * NH, 1, HD)),  # per-head V
        rep3((NLAYERS, H, H)), rep3((NLAYERS, 1, H)),              # attn out proj
        rep3((NLAYERS, 1, H)), rep3((NLAYERS, 1, H)),              # LN1
        rep3((NLAYERS, H, FF)), rep3((NLAYERS, 1, FF)),            # FFN up
        rep3((NLAYERS, FF, H)), rep3((NLAYERS, 1, H)),             # FFN down
        rep3((NLAYERS, 1, H)), rep3((NLAYERS, 1, H)),              # LN2
        rep2((H, HH)), rep2((1, HH)),                              # linear
        rep2((2, HH)), rep2((1, 1)),                               # pair_cls
    ]
    sem = ("parallel",) if NG > 1 else ("arbitrary",)
    return pl.pallas_call(
        fused_kernel,
        out_shape=jax.ShapeDtypeStruct((NG, GROUP, OUT_W), jnp.float32),
        grid=(NG,),
        in_specs=in_specs,
        out_specs=pl.BlockSpec((1, GROUP, OUT_W), lambda g: (g, 0, 0)),
        compiler_params=pltpu.CompilerParams(dimension_semantics=sem),
    )(embed, att_bias, pmask, *weights)


# ---------------- deterministic parameter init ----------------
def init_params(key):
    keys = iter(jax.random.split(key, 40))

    def w(shape, scale=0.02):
        return (scale * jax.random.normal(next(keys), shape)).astype(jnp.float32)

    z = lambda shape: jnp.zeros(shape, jnp.float32)
    o = lambda shape: jnp.ones(shape, jnp.float32)
    inv_sqrt_hd = 1.0 / math.sqrt(HD)

    return {
        # synthetic PLM embeddings
        "word_emb": w((VOCAB, H)),
        "pos_emb": w((S + 8, H)),
        "type_emb": w((2, H)),
        "emb_ln_g": o((H,)),
        "emb_ln_b": z((H,)),
        # prefix embedding  (nn.Embedding(pfx_len * 2, emb_dim))
        "pfx_emb": w((2 * PFX, H)),
        # head
        "wlin": w((H, HH)),                  # nn.Linear(H, H//2)
        "blin": z((1, HH)),
        "wcls": w((1, 2 * HH)),              # nn.Linear(2*(H//2), 1)
        "bcls": z((1, 1)),
        # attention: per-head Q/V weights (avoids in-kernel lane slicing);
        # softmax scale 1/sqrt(HD) folded into the Q projection at init.
        "wq": w((NLAYERS * NH, H, HD)) * inv_sqrt_hd,
        "bq": z((NLAYERS * NH, 1, HD)),
        "wk": w((NLAYERS, H, H)), "bk": z((NLAYERS, 1, H)),
        "wv": w((NLAYERS * NH, H, HD)), "bv": z((NLAYERS * NH, 1, HD)),
        "wo": w((NLAYERS, H, H)), "bo": z((NLAYERS, 1, H)),
        "g1": o((NLAYERS, 1, H)), "be1": z((NLAYERS, 1, H)),
        "w1": w((NLAYERS, H, FF)), "bf1": z((NLAYERS, 1, FF)),
        "w2": w((NLAYERS, FF, H)), "bf2": z((NLAYERS, 1, H)),
        "g2": o((NLAYERS, 1, H)), "be2": z((NLAYERS, 1, H)),
    }


# ---------------- forward (mirrors PairPfxTuningEncoder.forward) ----------------
def forward(params, inputs, types, prompt, mask):
    bsz, txt_len = mask.shape
    maskf = mask.astype(jnp.float32)
    typesf = types.astype(jnp.float32)

    # pmt_msk = ones(bsz, pfx_len); ext_msk = cat([pmt_msk, mask])
    pmt_msk = jnp.ones((bsz, PFX), jnp.float32)
    ext_msk = jnp.concatenate([pmt_msk, maskf], axis=-1)            # (B, S)

    # pmt_emb = pfx_embedding(prompt)  (raw embedding, no LN)
    pmt_emb = params["pfx_emb"][prompt]                             # (B, PFX, H)

    # txt_emb = plm.embeddings(inputs): word + position + token-type(0) + LayerNorm
    txt_emb = (params["word_emb"][inputs]
               + params["pos_emb"][jnp.arange(txt_len)][None, :, :]
               + params["type_emb"][0][None, None, :])
    mu = jnp.mean(txt_emb, axis=-1, keepdims=True)
    var = jnp.var(txt_emb, axis=-1, keepdims=True)
    txt_emb = ((txt_emb - mu) * jax.lax.rsqrt(var + 1e-12)
               * params["emb_ln_g"] + params["emb_ln_b"])

    embed = jnp.concatenate([pmt_emb, txt_emb], axis=1)             # (B, S, H)
    embed = embed.reshape(NG, GS, H)                                # batch-stacked groups

    # block-diagonal additive attention bias per group:
    #   same batch & valid key -> 0 ; same batch & padded key or other batch -> finfo.min
    eb = ((1.0 - ext_msk) * NEG).reshape(NG, GS)                    # (NG, GS)
    bidx = jnp.repeat(jnp.arange(GROUP), S)                         # row/col -> local batch
    same = bidx[:, None] == bidx[None, :]                           # (GS, GS)
    att_bias = jnp.where(same[None, :, :], eb[:, None, :], NEG)     # (NG, GS, GS)

    # pre-normalized masked-mean pooling matrix (exact mean in the kernel).
    # Rows 0..GROUP-1 = left (prefix + left tokens), rows GROUP..2*GROUP-1 = right.
    # NOTE: the max(., 1) clamp avoids the reference's NaN for an empty side.
    left_row = jnp.concatenate([pmt_msk, (1.0 - typesf) * maskf], axis=-1)           # (B, S)
    right_row = jnp.concatenate([jnp.zeros((bsz, PFX), jnp.float32),
                                 typesf * maskf], axis=-1)                            # (B, S)
    left_row = left_row / jnp.maximum(jnp.sum(left_row, axis=-1, keepdims=True), 1.0)
    right_row = right_row / jnp.maximum(jnp.sum(right_row, axis=-1, keepdims=True), 1.0)
    eyeG = jnp.eye(GROUP, dtype=jnp.float32)
    lr = left_row.reshape(NG, GROUP, S)
    rr = right_row.reshape(NG, GROUP, S)
    p_left = (eyeG[None, :, :, None] * lr[:, :, None, :]).reshape(NG, GROUP, GS)
    p_right = (eyeG[None, :, :, None] * rr[:, :, None, :]).reshape(NG, GROUP, GS)
    pmask = jnp.concatenate([p_left, p_right], axis=1)              # (NG, 2*GROUP, GS)

    # pair classifier weight reshaped so row 0 applies to left, row 1 to right
    wcls2 = params["wcls"].reshape(2, HH)

    out = run_fused(embed, att_bias, pmask,
                    params["wq"], params["bq"], params["wk"], params["bk"],
                    params["wv"], params["bv"], params["wo"], params["bo"],
                    params["g1"], params["be1"], params["w1"], params["bf1"],
                    params["w2"], params["bf2"], params["g2"], params["be2"],
                    params["wlin"], params["blin"], wcls2, params["bcls"])

    out = out.reshape(B, OUT_W)
    logit = out[:, HH]                                              # (B,)
    left_feat = out[:, :HH]                                         # (B, HH)
    return logit, left_feat


if __name__ == "__main__":
    key = jax.random.PRNGKey(0)
    k_in, k_pr, k_par = jax.random.split(key, 3)

    inputs = jax.random.randint(k_in, (B, T), 0, VOCAB, dtype=jnp.int32)
    prompt = jax.random.randint(k_pr, (B, PFX), 0, 2 * PFX, dtype=jnp.int32)
    # deterministic segment types: first half left (0), second half right (1)
    types = jnp.tile(
        jnp.concatenate([jnp.zeros((T // 2,), jnp.int32),
                         jnp.ones((T - T // 2,), jnp.int32)]), (B, 1))
    # valid-token mask: batch 0 full length, batch 1 has 2 padding tokens
    mask = jnp.ones((B, T), jnp.int32).at[1, T - 2:].set(0)

    params = init_params(k_par)

    fwd = jax.jit(forward)
    logit, left_feat = fwd(params, inputs, types, prompt, mask)
    logit, left_feat = jax.block_until_ready((logit, left_feat))

    assert logit.shape == (B,), logit.shape
    assert left_feat.shape == (B, HH), left_feat.shape
    assert bool(jnp.all(jnp.isfinite(logit))) and bool(jnp.all(jnp.isfinite(left_feat)))
    print("KERNEL_OK")
</pallas_src>

<mosaic_0001>
module attributes {stable_mosaic.version = 11 : i64} {
  func.func @fused_kernel(%arg0: i32, %arg1: memref<1x32x64xf32, #tpu.memory_space<vmem>>, %arg2: memref<1x32x32xf32, #tpu.memory_space<vmem>>, %arg3: memref<1x4x32xf32, #tpu.memory_space<vmem>>, %arg4: memref<4x64x32xf32, #tpu.memory_space<vmem>>, %arg5: memref<4x1x32xf32, #tpu.memory_space<vmem>>, %arg6: memref<2x64x64xf32, #tpu.memory_space<vmem>>, %arg7: memref<2x1x64xf32, #tpu.memory_space<vmem>>, %arg8: memref<4x64x32xf32, #tpu.memory_space<vmem>>, %arg9: memref<4x1x32xf32, #tpu.memory_space<vmem>>, %arg10: memref<2x64x64xf32, #tpu.memory_space<vmem>>, %arg11: memref<2x1x64xf32, #tpu.memory_space<vmem>>, %arg12: memref<2x1x64xf32, #tpu.memory_space<vmem>>, %arg13: memref<2x1x64xf32, #tpu.memory_space<vmem>>, %arg14: memref<2x64x256xf32, #tpu.memory_space<vmem>>, %arg15: memref<2x1x256xf32, #tpu.memory_space<vmem>>, %arg16: memref<2x256x64xf32, #tpu.memory_space<vmem>>, %arg17: memref<2x1x64xf32, #tpu.memory_space<vmem>>, %arg18: memref<2x1x64xf32, #tpu.memory_space<vmem>>, %arg19: memref<2x1x64xf32, #tpu.memory_space<vmem>>, %arg20: memref<64x32xf32, #tpu.memory_space<vmem>>, %arg21: memref<1x32xf32, #tpu.memory_space<vmem>>, %arg22: memref<2x32xf32, #tpu.memory_space<vmem>>, %arg23: memref<1x1xf32, #tpu.memory_space<vmem>>, %arg24: memref<1x2x128xf32, #tpu.memory_space<vmem>>) attributes {dimension_semantics = [#tpu.dimension_semantics<arbitrary>], iteration_bounds = array<i64: 1>, scalar_prefetch = 0 : i64, scratch_operands = 0 : i64, tpu.core_type = #tpu.core_type<tc>, window_params = [{transform_indices = @transform_0, window_bounds = array<i64: 1, 32, 64>}, {transform_indices = @transform_1, window_bounds = array<i64: 1, 32, 32>}, {transform_indices = @transform_2, window_bounds = array<i64: 1, 4, 32>}, {pipeline_mode = #tpu.pipeline_mode<synchronous>, transform_indices = @transform_3, window_bounds = array<i64: 4, 64, 32>}, {pipeline_mode = #tpu.pipeline_mode<synchronous>, transform_indices = @transform_4, window_bounds = array<i64: 4, 1, 32>}, {pipeline_mode = #tpu.pipeline_mode<synchronous>, transform_indices = @transform_5, window_bounds = array<i64: 2, 64, 64>}, {pipeline_mode = #tpu.pipeline_mode<synchronous>, transform_indices = @transform_6, window_bounds = array<i64: 2, 1, 64>}, {pipeline_mode = #tpu.pipeline_mode<synchronous>, transform_indices = @transform_7, window_bounds = array<i64: 4, 64, 32>}, {pipeline_mode = #tpu.pipeline_mode<synchronous>, transform_indices = @transform_8, window_bounds = array<i64: 4, 1, 32>}, {pipeline_mode = #tpu.pipeline_mode<synchronous>, transform_indices = @transform_9, window_bounds = array<i64: 2, 64, 64>}, {pipeline_mode = #tpu.pipeline_mode<synchronous>, transform_indices = @transform_10, window_bounds = array<i64: 2, 1, 64>}, {pipeline_mode = #tpu.pipeline_mode<synchronous>, transform_indices = @transform_11, window_bounds = array<i64: 2, 1, 64>}, {pipeline_mode = #tpu.pipeline_mode<synchronous>, transform_indices = @transform_12, window_bounds = array<i64: 2, 1, 64>}, {pipeline_mode = #tpu.pipeline_mode<synchronous>, transform_indices = @transform_13, window_bounds = array<i64: 2, 64, 256>}, {pipeline_mode = #tpu.pipeline_mode<synchronous>, transform_indices = @transform_14, window_bounds = array<i64: 2, 1, 256>}, {pipeline_mode = #tpu.pipeline_mode<synchronous>, transform_indices = @transform_15, window_bounds = array<i64: 2, 256, 64>}, {pipeline_mode = #tpu.pipeline_mode<synchronous>, transform_indices = @transform_16, window_bounds = array<i64: 2, 1, 64>}, {pipeline_mode = #tpu.pipeline_mode<synchronous>, transform_indices = @transform_17, window_bounds = array<i64: 2, 1, 64>}, {pipeline_mode = #tpu.pipeline_mode<synchronous>, transform_indices = @transform_18, window_bounds = array<i64: 2, 1, 64>}, {pipeline_mode = #tpu.pipeline_mode<synchronous>, transform_indices = @transform_19, window_bounds = array<i64: 64, 32>}, {pipeline_mode = #tpu.pipeline_mode<synchronous>, transform_indices = @transform_20, window_bounds = array<i64: 1, 32>}, {pipeline_mode = #tpu.pipeline_mode<synchronous>, transform_indices = @transform_21, window_bounds = array<i64: 2, 32>}, {pipeline_mode = #tpu.pipeline_mode<synchronous>, transform_indices = @transform_22, window_bounds = array<i64: 1, 1>}, {transform_indices = @transform_23, window_bounds = array<i64: 1, 2, 128>}]} {
    %c0 = arith.constant 0 : index
    %c0_0 = arith.constant 0 : index
    %c0_1 = arith.constant 0 : index
    %0 = vector.load %arg1[%c0, %c0_0, %c0_1] : memref<1x32x64xf32, #tpu.memory_space<vmem>>, vector<1x32x64xf32>
    %1 = vector.shape_cast %0 : vector<1x32x64xf32> to vector<32x64xf32>
    %c0_2 = arith.constant 0 : index
    %c0_3 = arith.constant 0 : index
    %c0_4 = arith.constant 0 : index
    %2 = vector.load %arg2[%c0_2, %c0_3, %c0_4] : memref<1x32x32xf32, #tpu.memory_space<vmem>>, vector<1x32x32xf32>
    %3 = vector.shape_cast %2 : vector<1x32x32xf32> to vector<32x32xf32>
    %c0_5 = arith.constant 0 : index
    %c0_6 = arith.constant 0 : index
    %c0_7 = arith.constant 0 : index
    %4 = vector.load %arg6[%c0_5, %c0_6, %c0_7] : memref<2x64x64xf32, #tpu.memory_space<vmem>>, vector<1x64x64xf32>
    %5 = vector.shape_cast %4 : vector<1x64x64xf32> to vector<64x64xf32>
    %cst = arith.constant dense<0.000000e+00> : vector<32x64xf32>
    %6 = tpu.matmul %1, %5, %cst {dimension_numbers = #tpu.dot_dimension_numbers<[1], [0], [0], [1], [0, 0, 1, 1], [], []>} : vector<32x64xf32>, vector<64x64xf32>, vector<32x64xf32> -> vector<32x64xf32>
    %c0_8 = arith.constant 0 : index
    %c0_9 = arith.constant 0 : index
    %c0_10 = arith.constant 0 : index
    %7 = vector.load %arg7[%c0_8, %c0_9, %c0_10] : memref<2x1x64xf32, #tpu.memory_space<vmem>>, vector<1x1x64xf32>
    %8 = vector.shape_cast %7 : vector<1x1x64xf32> to vector<1x64xf32>
    %9 = vector.broadcast %8 : vector<1x64xf32> to vector<32x64xf32>
    %10 = arith.addf %6, %9 : vector<32x64xf32>
    %11 = tpu.transpose %10, [1, 0] : vector<32x64xf32> -> vector<64x32xf32>
    %c0_11 = arith.constant 0 : index
    %c0_12 = arith.constant 0 : index
    %c0_13 = arith.constant 0 : index
    %12 = vector.load %arg4[%c0_11, %c0_12, %c0_13] : memref<4x64x32xf32, #tpu.memory_space<vmem>>, vector<1x64x32xf32>
    %13 = vector.shape_cast %12 : vector<1x64x32xf32> to vector<64x32xf32>
    %cst_14 = arith.constant dense<0.000000e+00> : vector<32x32xf32>
    %14 = tpu.matmul %1, %13, %cst_14 {dimension_numbers = #tpu.dot_dimension_numbers<[1], [0], [0], [1], [0, 0, 1, 1], [], []>} : vector<32x64xf32>, vector<64x32xf32>, vector<32x32xf32> -> vector<32x32xf32>
    %c0_15 = arith.constant 0 : index
    %c0_16 = arith.constant 0 : index
    %c0_17 = arith.constant 0 : index
    %15 = vector.load %arg5[%c0_15, %c0_16, %c0_17] : memref<4x1x32xf32, #tpu.memory_space<vmem>>, vector<1x1x32xf32>
    %16 = vector.shape_cast %15 : vector<1x1x32xf32> to vector<1x32xf32>
    %17 = vector.broadcast %16 : vector<1x32xf32> to vector<32x32xf32>
    %18 = arith.addf %14, %17 : vector<32x32xf32>
    %c0_18 = arith.constant 0 : index
    %c0_19 = arith.constant 0 : index
    %c0_20 = arith.constant 0 : index
    %19 = vector.load %arg8[%c0_18, %c0_19, %c0_20] : memref<4x64x32xf32, #tpu.memory_space<vmem>>, vector<1x64x32xf32>
    %20 = vector.shape_cast %19 : vector<1x64x32xf32> to vector<64x32xf32>
    %cst_21 = arith.constant dense<0.000000e+00> : vector<32x32xf32>
    %21 = tpu.matmul %1, %20, %cst_21 {dimension_numbers = #tpu.dot_dimension_numbers<[1], [0], [0], [1], [0, 0, 1, 1], [], []>} : vector<32x64xf32>, vector<64x32xf32>, vector<32x32xf32> -> vector<32x32xf32>
    %c0_22 = arith.constant 0 : index
    %c0_23 = arith.constant 0 : index
    %c0_24 = arith.constant 0 : index
    %22 = vector.load %arg9[%c0_22, %c0_23, %c0_24] : memref<4x1x32xf32, #tpu.memory_space<vmem>>, vector<1x1x32xf32>
    %23 = vector.shape_cast %22 : vector<1x1x32xf32> to vector<1x32xf32>
    %24 = vector.broadcast %23 : vector<1x32xf32> to vector<32x32xf32>
    %25 = arith.addf %21, %24 : vector<32x32xf32>
    %26 = vector.extract_strided_slice %11 {offsets = [0, 0], sizes = [32, 32], strides = [1, 1]} : vector<64x32xf32> to vector<32x32xf32>
    %cst_25 = arith.constant dense<0.000000e+00> : vector<32x32xf32>
    %27 = tpu.matmul %18, %26, %cst_25 {dimension_numbers = #tpu.dot_dimension_numbers<[1], [0], [0], [1], [0, 0, 1, 1], [], []>} : vector<32x32xf32>, vector<32x32xf32>, vector<32x32xf32> -> vector<32x32xf32>
    %28 = arith.addf %27, %3 : vector<32x32xf32>
    %cst_26 = arith.constant dense<0xFF800000> : vector<32xf32>
    %29 = vector.multi_reduction <maximumf>, %28, %cst_26 [1] : vector<32x32xf32> to vector<32xf32>
    %30 = vector.shape_cast %29 : vector<32xf32> to vector<32x1xf32>
    %31 = vector.broadcast %30 : vector<32x1xf32> to vector<32x32xf32>
    %32 = arith.subf %28, %31 : vector<32x32xf32>
    %33 = math.exp %32 : vector<32x32xf32>
    %cst_27 = arith.constant dense<0.000000e+00> : vector<32xf32>
    %34 = vector.multi_reduction <add>, %33, %cst_27 [1] : vector<32x32xf32> to vector<32xf32>
    %35 = vector.shape_cast %34 : vector<32xf32> to vector<32x1xf32>
    %36 = tpu.reciprocal %35 {approx = true} : vector<32x1xf32> -> vector<32x1xf32>
    %37 = vector.broadcast %36 : vector<32x1xf32> to vector<32x32xf32>
    %38 = arith.mulf %33, %37 : vector<32x32xf32>
    %cst_28 = arith.constant dense<0.000000e+00> : vector<32x32xf32>
    %39 = tpu.matmul %38, %25, %cst_28 {dimension_numbers = #tpu.dot_dimension_numbers<[1], [0], [0], [1], [0, 0, 1, 1], [], []>} : vector<32x32xf32>, vector<32x32xf32>, vector<32x32xf32> -> vector<32x32xf32>
    %c1 = arith.constant 1 : index
    %c0_29 = arith.constant 0 : index
    %c0_30 = arith.constant 0 : index
    %40 = vector.load %arg4[%c1, %c0_29, %c0_30] : memref<4x64x32xf32, #tpu.memory_space<vmem>>, vector<1x64x32xf32>
    %41 = vector.shape_cast %40 : vector<1x64x32xf32> to vector<64x32xf32>
    %cst_31 = arith.constant dense<0.000000e+00> : vector<32x32xf32>
    %42 = tpu.matmul %1, %41, %cst_31 {dimension_numbers = #tpu.dot_dimension_numbers<[1], [0], [0], [1], [0, 0, 1, 1], [], []>} : vector<32x64xf32>, vector<64x32xf32>, vector<32x32xf32> -> vector<32x32xf32>
    %c1_32 = arith.constant 1 : index
    %c0_33 = arith.constant 0 : index
    %c0_34 = arith.constant 0 : index
    %43 = vector.load %arg5[%c1_32, %c0_33, %c0_34] : memref<4x1x32xf32, #tpu.memory_space<vmem>>, vector<1x1x32xf32>
    %44 = vector.shape_cast %43 : vector<1x1x32xf32> to vector<1x32xf32>
    %45 = vector.broadcast %44 : vector<1x32xf32> to vector<32x32xf32>
    %46 = arith.addf %42, %45 : vector<32x32xf32>
    %c1_35 = arith.constant 1 : index
    %c0_36 = arith.constant 0 : index
    %c0_37 = arith.constant 0 : index
    %47 = vector.load %arg8[%c1_35, %c0_36, %c0_37] : memref<4x64x32xf32, #tpu.memory_space<vmem>>, vector<1x64x32xf32>
    %48 = vector.shape_cast %47 : vector<1x64x32xf32> to vector<64x32xf32>
    %cst_38 = arith.constant dense<0.000000e+00> : vector<32x32xf32>
    %49 = tpu.matmul %1, %48, %cst_38 {dimension_numbers = #tpu.dot_dimension_numbers<[1], [0], [0], [1], [0, 0, 1, 1], [], []>} : vector<32x64xf32>, vector<64x32xf32>, vector<32x32xf32> -> vector<32x32xf32>
    %c1_39 = arith.constant 1 : index
    %c0_40 = arith.constant 0 : index
    %c0_41 = arith.constant 0 : index
    %50 = vector.load %arg9[%c1_39, %c0_40, %c0_41] : memref<4x1x32xf32, #tpu.memory_space<vmem>>, vector<1x1x32xf32>
    %51 = vector.shape_cast %50 : vector<1x1x32xf32> to vector<1x32xf32>
    %52 = vector.broadcast %51 : vector<1x32xf32> to vector<32x32xf32>
    %53 = arith.addf %49, %52 : vector<32x32xf32>
    %54 = vector.extract_strided_slice %11 {offsets = [32, 0], sizes = [32, 32], strides = [1, 1]} : vector<64x32xf32> to vector<32x32xf32>
    %cst_42 = arith.constant dense<0.000000e+00> : vector<32x32xf32>
    %55 = tpu.matmul %46, %54, %cst_42 {dimension_numbers = #tpu.dot_dimension_numbers<[1], [0], [0], [1], [0, 0, 1, 1], [], []>} : vector<32x32xf32>, vector<32x32xf32>, vector<32x32xf32> -> vector<32x32xf32>
    %56 = arith.addf %55, %3 : vector<32x32xf32>
    %cst_43 = arith.constant dense<0xFF800000> : vector<32xf32>
    %57 = vector.multi_reduction <maximumf>, %56, %cst_43 [1] : vector<32x32xf32> to vector<32xf32>
    %58 = vector.shape_cast %57 : vector<32xf32> to vector<32x1xf32>
    %59 = vector.broadcast %58 : vector<32x1xf32> to vector<32x32xf32>
    %60 = arith.subf %56, %59 : vector<32x32xf32>
    %61 = math.exp %60 : vector<32x32xf32>
    %cst_44 = arith.constant dense<0.000000e+00> : vector<32xf32>
    %62 = vector.multi_reduction <add>, %61, %cst_44 [1] : vector<32x32xf32> to vector<32xf32>
    %63 = vector.shape_cast %62 : vector<32xf32> to vector<32x1xf32>
    %64 = tpu.reciprocal %63 {approx = true} : vector<32x1xf32> -> vector<32x1xf32>
    %65 = vector.broadcast %64 : vector<32x1xf32> to vector<32x32xf32>
    %66 = arith.mulf %61, %65 : vector<32x32xf32>
    %cst_45 = arith.constant dense<0.000000e+00> : vector<32x32xf32>
    %67 = tpu.matmul %66, %53, %cst_45 {dimension_numbers = #tpu.dot_dimension_numbers<[1], [0], [0], [1], [0, 0, 1, 1], [], []>} : vector<32x32xf32>, vector<32x32xf32>, vector<32x32xf32> -> vector<32x32xf32>
    %68 = tpu.concatenate %39, %67 in 1 : vector<32x32xf32>, vector<32x32xf32> -> vector<32x64xf32>
    %c0_46 = arith.constant 0 : index
    %c0_47 = arith.constant 0 : index
    %c0_48 = arith.constant 0 : index
    %69 = vector.load %arg10[%c0_46, %c0_47, %c0_48] : memref<2x64x64xf32, #tpu.memory_space<vmem>>, vector<1x64x64xf32>
    %70 = vector.shape_cast %69 : vector<1x64x64xf32> to vector<64x64xf32>
    %cst_49 = arith.constant dense<0.000000e+00> : vector<32x64xf32>
    %71 = tpu.matmul %68, %70, %cst_49 {dimension_numbers = #tpu.dot_dimension_numbers<[1], [0], [0], [1], [0, 0, 1, 1], [], []>} : vector<32x64xf32>, vector<64x64xf32>, vector<32x64xf32> -> vector<32x64xf32>
    %c0_50 = arith.constant 0 : index
    %c0_51 = arith.constant 0 : index
    %c0_52 = arith.constant 0 : index
    %72 = vector.load %arg11[%c0_50, %c0_51, %c0_52] : memref<2x1x64xf32, #tpu.memory_space<vmem>>, vector<1x1x64xf32>
    %73 = vector.shape_cast %72 : vector<1x1x64xf32> to vector<1x64xf32>
    %74 = vector.broadcast %73 : vector<1x64xf32> to vector<32x64xf32>
    %75 = arith.addf %71, %74 : vector<32x64xf32>
    %76 = arith.addf %1, %75 : vector<32x64xf32>
    %c0_53 = arith.constant 0 : index
    %c0_54 = arith.constant 0 : index
    %c0_55 = arith.constant 0 : index
    %77 = vector.load %arg12[%c0_53, %c0_54, %c0_55] : memref<2x1x64xf32, #tpu.memory_space<vmem>>, vector<1x1x64xf32>
    %78 = vector.shape_cast %77 : vector<1x1x64xf32> to vector<1x64xf32>
    %c0_56 = arith.constant 0 : index
    %c0_57 = arith.constant 0 : index
    %c0_58 = arith.constant 0 : index
    %79 = vector.load %arg13[%c0_56, %c0_57, %c0_58] : memref<2x1x64xf32, #tpu.memory_space<vmem>>, vector<1x1x64xf32>
    %80 = vector.shape_cast %79 : vector<1x1x64xf32> to vector<1x64xf32>
    %cst_59 = arith.constant dense<0.000000e+00> : vector<32xf32>
    %81 = vector.multi_reduction <add>, %76, %cst_59 [1] : vector<32x64xf32> to vector<32xf32>
    %82 = vector.shape_cast %81 : vector<32xf32> to vector<32x1xf32>
    %cst_60 = arith.constant 6.400000e+01 : f32
    %83 = vector.broadcast %cst_60 : f32 to vector<32x1xf32>
    %84 = arith.divf %82, %83 : vector<32x1xf32>
    %85 = vector.broadcast %84 : vector<32x1xf32> to vector<32x64xf32>
    %86 = arith.subf %76, %85 : vector<32x64xf32>
    %87 = vector.broadcast %84 : vector<32x1xf32> to vector<32x64xf32>
    %88 = arith.subf %76, %87 : vector<32x64xf32>
    %89 = arith.mulf %86, %88 : vector<32x64xf32>
    %cst_61 = arith.constant dense<0.000000e+00> : vector<32xf32>
    %90 = vector.multi_reduction <add>, %89, %cst_61 [1] : vector<32x64xf32> to vector<32xf32>
    %91 = vector.shape_cast %90 : vector<32xf32> to vector<32x1xf32>
    %cst_62 = arith.constant 6.400000e+01 : f32
    %92 = vector.broadcast %cst_62 : f32 to vector<32x1xf32>
    %93 = arith.divf %91, %92 : vector<32x1xf32>
    %94 = vector.broadcast %84 : vector<32x1xf32> to vector<32x64xf32>
    %95 = arith.subf %76, %94 : vector<32x64xf32>
    %cst_63 = arith.constant 9.99999996E-13 : f32
    %96 = vector.broadcast %cst_63 : f32 to vector<32x1xf32>
    %97 = arith.addf %93, %96 : vector<32x1xf32>
    %98 = math.rsqrt %97 : vector<32x1xf32>
    %99 = vector.broadcast %98 : vector<32x1xf32> to vector<32x64xf32>
    %100 = arith.mulf %95, %99 : vector<32x64xf32>
    %101 = vector.broadcast %78 : vector<1x64xf32> to vector<32x64xf32>
    %102 = arith.mulf %100, %101 : vector<32x64xf32>
    %103 = vector.broadcast %80 : vector<1x64xf32> to vector<32x64xf32>
    %104 = arith.addf %102, %103 : vector<32x64xf32>
    %c0_64 = arith.constant 0 : index
    %c0_65 = arith.constant 0 : index
    %c0_66 = arith.constant 0 : index
    %105 = vector.load %arg14[%c0_64, %c0_65, %c0_66] : memref<2x64x256xf32, #tpu.memory_space<vmem>>, vector<1x64x256xf32>
    %106 = vector.shape_cast %105 : vector<1x64x256xf32> to vector<64x256xf32>
    %cst_67 = arith.constant dense<0.000000e+00> : vector<32x256xf32>
    %107 = tpu.matmul %104, %106, %cst_67 {dimension_numbers = #tpu.dot_dimension_numbers<[1], [0], [0], [1], [0, 0, 1, 1], [], []>} : vector<32x64xf32>, vector<64x256xf32>, vector<32x256xf32> -> vector<32x256xf32>
    %c0_68 = arith.constant 0 : index
    %c0_69 = arith.constant 0 : index
    %c0_70 = arith.constant 0 : index
    %108 = vector.load %arg15[%c0_68, %c0_69, %c0_70] : memref<2x1x256xf32, #tpu.memory_space<vmem>>, vector<1x1x256xf32>
    %109 = vector.shape_cast %108 : vector<1x1x256xf32> to vector<1x256xf32>
    %110 = vector.broadcast %109 : vector<1x256xf32> to vector<32x256xf32>
    %111 = arith.addf %107, %110 : vector<32x256xf32>
    %cst_71 = arith.constant 5.000000e-01 : f32
    %112 = vector.broadcast %cst_71 : f32 to vector<32x256xf32>
    %113 = arith.mulf %112, %111 : vector<32x256xf32>
    %cst_72 = arith.constant 4.471500e-02 : f32
    %114 = vector.broadcast %cst_72 : f32 to vector<32x256xf32>
    %115 = arith.mulf %114, %111 : vector<32x256xf32>
    %116 = arith.mulf %115, %111 : vector<32x256xf32>
    %117 = arith.mulf %116, %111 : vector<32x256xf32>
    %118 = arith.addf %111, %117 : vector<32x256xf32>
    %cst_73 = arith.constant 0.797884583 : f32
    %119 = vector.broadcast %cst_73 : f32 to vector<32x256xf32>
    %120 = arith.mulf %119, %118 : vector<32x256xf32>
    %121 = math.tanh %120 : vector<32x256xf32>
    %cst_74 = arith.constant 1.000000e+00 : f32
    %122 = vector.broadcast %cst_74 : f32 to vector<32x256xf32>
    %123 = arith.addf %122, %121 : vector<32x256xf32>
    %124 = arith.mulf %113, %123 : vector<32x256xf32>
    %c0_75 = arith.constant 0 : index
    %c0_76 = arith.constant 0 : index
    %c0_77 = arith.constant 0 : index
    %125 = vector.load %arg16[%c0_75, %c0_76, %c0_77] : memref<2x256x64xf32, #tpu.memory_space<vmem>>, vector<1x256x64xf32>
    %126 = vector.shape_cast %125 : vector<1x256x64xf32> to vector<256x64xf32>
    %cst_78 = arith.constant dense<0.000000e+00> : vector<32x64xf32>
    %127 = tpu.matmul %124, %126, %cst_78 {dimension_numbers = #tpu.dot_dimension_numbers<[1], [0], [0], [1], [0, 0, 1, 1], [], []>} : vector<32x256xf32>, vector<256x64xf32>, vector<32x64xf32> -> vector<32x64xf32>
    %c0_79 = arith.constant 0 : index
    %c0_80 = arith.constant 0 : index
    %c0_81 = arith.constant 0 : index
    %128 = vector.load %arg17[%c0_79, %c0_80, %c0_81] : memref<2x1x64xf32, #tpu.memory_space<vmem>>, vector<1x1x64xf32>
    %129 = vector.shape_cast %128 : vector<1x1x64xf32> to vector<1x64xf32>
    %130 = vector.broadcast %129 : vector<1x64xf32> to vector<32x64xf32>
    %131 = arith.addf %127, %130 : vector<32x64xf32>
    %132 = arith.addf %104, %131 : vector<32x64xf32>
    %c0_82 = arith.constant 0 : index
    %c0_83 = arith.constant 0 : index
    %c0_84 = arith.constant 0 : index
    %133 = vector.load %arg18[%c0_82, %c0_83, %c0_84] : memref<2x1x64xf32, #tpu.memory_space<vmem>>, vector<1x1x64xf32>
    %134 = vector.shape_cast %133 : vector<1x1x64xf32> to vector<1x64xf32>
    %c0_85 = arith.constant 0 : index
    %c0_86 = arith.constant 0 : index
    %c0_87 = arith.constant 0 : index
    %135 = vector.load %arg19[%c0_85, %c0_86, %c0_87] : memref<2x1x64xf32, #tpu.memory_space<vmem>>, vector<1x1x64xf32>
    %136 = vector.shape_cast %135 : vector<1x1x64xf32> to vector<1x64xf32>
    %cst_88 = arith.constant dense<0.000000e+00> : vector<32xf32>
    %137 = vector.multi_reduction <add>, %132, %cst_88 [1] : vector<32x64xf32> to vector<32xf32>
    %138 = vector.shape_cast %137 : vector<32xf32> to vector<32x1xf32>
    %cst_89 = arith.constant 6.400000e+01 : f32
    %139 = vector.broadcast %cst_89 : f32 to vector<32x1xf32>
    %140 = arith.divf %138, %139 : vector<32x1xf32>
    %141 = vector.broadcast %140 : vector<32x1xf32> to vector<32x64xf32>
    %142 = arith.subf %132, %141 : vector<32x64xf32>
    %143 = vector.broadcast %140 : vector<32x1xf32> to vector<32x64xf32>
    %144 = arith.subf %132, %143 : vector<32x64xf32>
    %145 = arith.mulf %142, %144 : vector<32x64xf32>
    %cst_90 = arith.constant dense<0.000000e+00> : vector<32xf32>
    %146 = vector.multi_reduction <add>, %145, %cst_90 [1] : vector<32x64xf32> to vector<32xf32>
    %147 = vector.shape_cast %146 : vector<32xf32> to vector<32x1xf32>
    %cst_91 = arith.constant 6.400000e+01 : f32
    %148 = vector.broadcast %cst_91 : f32 to vector<32x1xf32>
    %149 = arith.divf %147, %148 : vector<32x1xf32>
    %150 = vector.broadcast %140 : vector<32x1xf32> to vector<32x64xf32>
    %151 = arith.subf %132, %150 : vector<32x64xf32>
    %cst_92 = arith.constant 9.99999996E-13 : f32
    %152 = vector.broadcast %cst_92 : f32 to vector<32x1xf32>
    %153 = arith.addf %149, %152 : vector<32x1xf32>
    %154 = math.rsqrt %153 : vector<32x1xf32>
    %155 = vector.broadcast %154 : vector<32x1xf32> to vector<32x64xf32>
    %156 = arith.mulf %151, %155 : vector<32x64xf32>
    %157 = vector.broadcast %134 : vector<1x64xf32> to vector<32x64xf32>
    %158 = arith.mulf %156, %157 : vector<32x64xf32>
    %159 = vector.broadcast %136 : vector<1x64xf32> to vector<32x64xf32>
    %160 = arith.addf %158, %159 : vector<32x64xf32>
    %c1_93 = arith.constant 1 : index
    %c0_94 = arith.constant 0 : index
    %c0_95 = arith.constant 0 : index
    %161 = vector.load %arg6[%c1_93, %c0_94, %c0_95] : memref<2x64x64xf32, #tpu.memory_space<vmem>>, vector<1x64x64xf32>
    %162 = vector.shape_cast %161 : vector<1x64x64xf32> to vector<64x64xf32>
    %cst_96 = arith.constant dense<0.000000e+00> : vector<32x64xf32>
    %163 = tpu.matmul %160, %162, %cst_96 {dimension_numbers = #tpu.dot_dimension_numbers<[1], [0], [0], [1], [0, 0, 1, 1], [], []>} : vector<32x64xf32>, vector<64x64xf32>, vector<32x64xf32> -> vector<32x64xf32>
    %c1_97 = arith.constant 1 : index
    %c0_98 = arith.constant 0 : index
    %c0_99 = arith.constant 0 : index
    %164 = vector.load %arg7[%c1_97, %c0_98, %c0_99] : memref<2x1x64xf32, #tpu.memory_space<vmem>>, vector<1x1x64xf32>
    %165 = vector.shape_cast %164 : vector<1x1x64xf32> to vector<1x64xf32>
    %166 = vector.broadcast %165 : vector<1x64xf32> to vector<32x64xf32>
    %167 = arith.addf %163, %166 : vector<32x64xf32>
    %168 = tpu.transpose %167, [1, 0] : vector<32x64xf32> -> vector<64x32xf32>
    %c2 = arith.constant 2 : index
    %c0_100 = arith.constant 0 : index
    %c0_101 = arith.constant 0 : index
    %169 = vector.load %arg4[%c2, %c0_100, %c0_101] : memref<4x64x32xf32, #tpu.memory_space<vmem>>, vector<1x64x32xf32>
    %170 = vector.shape_cast %169 : vector<1x64x32xf32> to vector<64x32xf32>
    %cst_102 = arith.constant dense<0.000000e+00> : vector<32x32xf32>
    %171 = tpu.matmul %160, %170, %cst_102 {dimension_numbers = #tpu.dot_dimension_numbers<[1], [0], [0], [1], [0, 0, 1, 1], [], []>} : vector<32x64xf32>, vector<64x32xf32>, vector<32x32xf32> -> vector<32x32xf32>
    %c2_103 = arith.constant 2 : index
    %c0_104 = arith.constant 0 : index
    %c0_105 = arith.constant 0 : index
    %172 = vector.load %arg5[%c2_103, %c0_104, %c0_105] : memref<4x1x32xf32, #tpu.memory_space<vmem>>, vector<1x1x32xf32>
    %173 = vector.shape_cast %172 : vector<1x1x32xf32> to vector<1x32xf32>
    %174 = vector.broadcast %173 : vector<1x32xf32> to vector<32x32xf32>
    %175 = arith.addf %171, %174 : vector<32x32xf32>
    %c2_106 = arith.constant 2 : index
    %c0_107 = arith.constant 0 : index
    %c0_108 = arith.constant 0 : index
    %176 = vector.load %arg8[%c2_106, %c0_107, %c0_108] : memref<4x64x32xf32, #tpu.memory_space<vmem>>, vector<1x64x32xf32>
    %177 = vector.shape_cast %176 : vector<1x64x32xf32> to vector<64x32xf32>
    %cst_109 = arith.constant dense<0.000000e+00> : vector<32x32xf32>
    %178 = tpu.matmul %160, %177, %cst_109 {dimension_numbers = #tpu.dot_dimension_numbers<[1], [0], [0], [1], [0, 0, 1, 1], [], []>} : vector<32x64xf32>, vector<64x32xf32>, vector<32x32xf32> -> vector<32x32xf32>
    %c2_110 = arith.constant 2 : index
    %c0_111 = arith.constant 0 : index
    %c0_112 = arith.constant 0 : index
    %179 = vector.load %arg9[%c2_110, %c0_111, %c0_112] : memref<4x1x32xf32, #tpu.memory_space<vmem>>, vector<1x1x32xf32>
    %180 = vector.shape_cast %179 : vector<1x1x32xf32> to vector<1x32xf32>
    %181 = vector.broadcast %180 : vector<1x32xf32> to vector<32x32xf32>
    %182 = arith.addf %178, %181 : vector<32x32xf32>
    %183 = vector.extract_strided_slice %168 {offsets = [0, 0], sizes = [32, 32], strides = [1, 1]} : vector<64x32xf32> to vector<32x32xf32>
    %cst_113 = arith.constant dense<0.000000e+00> : vector<32x32xf32>
    %184 = tpu.matmul %175, %183, %cst_113 {dimension_numbers = #tpu.dot_dimension_numbers<[1], [0], [0], [1], [0, 0, 1, 1], [], []>} : vector<32x32xf32>, vector<32x32xf32>, vector<32x32xf32> -> vector<32x32xf32>
    %185 = arith.addf %184, %3 : vector<32x32xf32>
    %cst_114 = arith.constant dense<0xFF800000> : vector<32xf32>
    %186 = vector.multi_reduction <maximumf>, %185, %cst_114 [1] : vector<32x32xf32> to vector<32xf32>
    %187 = vector.shape_cast %186 : vector<32xf32> to vector<32x1xf32>
    %188 = vector.broadcast %187 : vector<32x1xf32> to vector<32x32xf32>
    %189 = arith.subf %185, %188 : vector<32x32xf32>
    %190 = math.exp %189 : vector<32x32xf32>
    %cst_115 = arith.constant dense<0.000000e+00> : vector<32xf32>
    %191 = vector.multi_reduction <add>, %190, %cst_115 [1] : vector<32x32xf32> to vector<32xf32>
    %192 = vector.shape_cast %191 : vector<32xf32> to vector<32x1xf32>
    %193 = tpu.reciprocal %192 {approx = true} : vector<32x1xf32> -> vector<32x1xf32>
    %194 = vector.broadcast %193 : vector<32x1xf32> to vector<32x32xf32>
    %195 = arith.mulf %190, %194 : vector<32x32xf32>
    %cst_116 = arith.constant dense<0.000000e+00> : vector<32x32xf32>
    %196 = tpu.matmul %195, %182, %cst_116 {dimension_numbers = #tpu.dot_dimension_numbers<[1], [0], [0], [1], [0, 0, 1, 1], [], []>} : vector<32x32xf32>, vector<32x32xf32>, vector<32x32xf32> -> vector<32x32xf32>
    %c3 = arith.constant 3 : index
    %c0_117 = arith.constant 0 : index
    %c0_118 = arith.constant 0 : index
    %197 = vector.load %arg4[%c3, %c0_117, %c0_118] : memref<4x64x32xf32, #tpu.memory_space<vmem>>, vector<1x64x32xf32>
    %198 = vector.shape_cast %197 : vector<1x64x32xf32> to vector<64x32xf32>
    %cst_119 = arith.constant dense<0.000000e+00> : vector<32x32xf32>
    %199 = tpu.matmul %160, %198, %cst_119 {dimension_numbers = #tpu.dot_dimension_numbers<[1], [0], [0], [1], [0, 0, 1, 1], [], []>} : vector<32x64xf32>, vector<64x32xf32>, vector<32x32xf32> -> vector<32x32xf32>
    %c3_120 = arith.constant 3 : index
    %c0_121 = arith.constant 0 : index
    %c0_122 = arith.constant 0 : index
    %200 = vector.load %arg5[%c3_120, %c0_121, %c0_122] : memref<4x1x32xf32, #tpu.memory_space<vmem>>, vector<1x1x32xf32>
    %201 = vector.shape_cast %200 : vector<1x1x32xf32> to vector<1x32xf32>
    %202 = vector.broadcast %201 : vector<1x32xf32> to vector<32x32xf32>
    %203 = arith.addf %199, %202 : vector<32x32xf32>
    %c3_123 = arith.constant 3 : index
    %c0_124 = arith.constant 0 : index
    %c0_125 = arith.constant 0 : index
    %204 = vector.load %arg8[%c3_123, %c0_124, %c0_125] : memref<4x64x32xf32, #tpu.memory_space<vmem>>, vector<1x64x32xf32>
    %205 = vector.shape_cast %204 : vector<1x64x32xf32> to vector<64x32xf32>
    %cst_126 = arith.constant dense<0.000000e+00> : vector<32x32xf32>
    %206 = tpu.matmul %160, %205, %cst_126 {dimension_numbers = #tpu.dot_dimension_numbers<[1], [0], [0], [1], [0, 0, 1, 1], [], []>} : vector<32x64xf32>, vector<64x32xf32>, vector<32x32xf32> -> vector<32x32xf32>
    %c3_127 = arith.constant 3 : index
    %c0_128 = arith.constant 0 : index
    %c0_129 = arith.constant 0 : index
    %207 = vector.load %arg9[%c3_127, %c0_128, %c0_129] : memref<4x1x32xf32, #tpu.memory_space<vmem>>, vector<1x1x32xf32>
    %208 = vector.shape_cast %207 : vector<1x1x32xf32> to vector<1x32xf32>
    %209 = vector.broadcast %208 : vector<1x32xf32> to vector<32x32xf32>
    %210 = arith.addf %206, %209 : vector<32x32xf32>
    %211 = vector.extract_strided_slice %168 {offsets = [32, 0], sizes = [32, 32], strides = [1, 1]} : vector<64x32xf32> to vector<32x32xf32>
    %cst_130 = arith.constant dense<0.000000e+00> : vector<32x32xf32>
    %212 = tpu.matmul %203, %211, %cst_130 {dimension_numbers = #tpu.dot_dimension_numbers<[1], [0], [0], [1], [0, 0, 1, 1], [], []>} : vector<32x32xf32>, vector<32x32xf32>, vector<32x32xf32> -> vector<32x32xf32>
    %213 = arith.addf %212, %3 : vector<32x32xf32>
    %cst_131 = arith.constant dense<0xFF800000> : vector<32xf32>
    %214 = vector.multi_reduction <maximumf>, %213, %cst_131 [1] : vector<32x32xf32> to vector<32xf32>
    %215 = vector.shape_cast %214 : vector<32xf32> to vector<32x1xf32>
    %216 = vector.broadcast %215 : vector<32x1xf32> to vector<32x32xf32>
    %217 = arith.subf %213, %216 : vector<32x32xf32>
    %218 = math.exp %217 : vector<32x32xf32>
    %cst_132 = arith.constant dense<0.000000e+00> : vector<32xf32>
    %219 = vector.multi_reduction <add>, %218, %cst_132 [1] : vector<32x32xf32> to vector<32xf32>
    %220 = vector.shape_cast %219 : vector<32xf32> to vector<32x1xf32>
    %221 = tpu.reciprocal %220 {approx = true} : vector<32x1xf32> -> vector<32x1xf32>
    %222 = vector.broadcast %221 : vector<32x1xf32> to vector<32x32xf32>
    %223 = arith.mulf %218, %222 : vector<32x32xf32>
    %cst_133 = arith.constant dense<0.000000e+00> : vector<32x32xf32>
    %224 = tpu.matmul %223, %210, %cst_133 {dimension_numbers = #tpu.dot_dimension_numbers<[1], [0], [0], [1], [0, 0, 1, 1], [], []>} : vector<32x32xf32>, vector<32x32xf32>, vector<32x32xf32> -> vector<32x32xf32>
    %225 = tpu.concatenate %196, %224 in 1 : vector<32x32xf32>, vector<32x32xf32> -> vector<32x64xf32>
    %c1_134 = arith.constant 1 : index
    %c0_135 = arith.constant 0 : index
    %c0_136 = arith.constant 0 : index
    %226 = vector.load %arg10[%c1_134, %c0_135, %c0_136] : memref<2x64x64xf32, #tpu.memory_space<vmem>>, vector<1x64x64xf32>
    %227 = vector.shape_cast %226 : vector<1x64x64xf32> to vector<64x64xf32>
    %cst_137 = arith.constant dense<0.000000e+00> : vector<32x64xf32>
    %228 = tpu.matmul %225, %227, %cst_137 {dimension_numbers = #tpu.dot_dimension_numbers<[1], [0], [0], [1], [0, 0, 1, 1], [], []>} : vector<32x64xf32>, vector<64x64xf32>, vector<32x64xf32> -> vector<32x64xf32>
    %c1_138 = arith.constant 1 : index
    %c0_139 = arith.constant 0 : index
    %c0_140 = arith.constant 0 : index
    %229 = vector.load %arg11[%c1_138, %c0_139, %c0_140] : memref<2x1x64xf32, #tpu.memory_space<vmem>>, vector<1x1x64xf32>
    %230 = vector.shape_cast %229 : vector<1x1x64xf32> to vector<1x64xf32>
    %231 = vector.broadcast %230 : vector<1x64xf32> to vector<32x64xf32>
    %232 = arith.addf %228, %231 : vector<32x64xf32>
    %233 = arith.addf %160, %232 : vector<32x64xf32>
    %c1_141 = arith.constant 1 : index
    %c0_142 = arith.constant 0 : index
    %c0_143 = arith.constant 0 : index
    %234 = vector.load %arg12[%c1_141, %c0_142, %c0_143] : memref<2x1x64xf32, #tpu.memory_space<vmem>>, vector<1x1x64xf32>
    %235 = vector.shape_cast %234 : vector<1x1x64xf32> to vector<1x64xf32>
    %c1_144 = arith.constant 1 : index
    %c0_145 = arith.constant 0 : index
    %c0_146 = arith.constant 0 : index
    %236 = vector.load %arg13[%c1_144, %c0_145, %c0_146] : memref<2x1x64xf32, #tpu.memory_space<vmem>>, vector<1x1x64xf32>
    %237 = vector.shape_cast %236 : vector<1x1x64xf32> to vector<1x64xf32>
    %cst_147 = arith.constant dense<0.000000e+00> : vector<32xf32>
    %238 = vector.multi_reduction <add>, %233, %cst_147 [1] : vector<32x64xf32> to vector<32xf32>
    %239 = vector.shape_cast %238 : vector<32xf32> to vector<32x1xf32>
    %cst_148 = arith.constant 6.400000e+01 : f32
    %240 = vector.broadcast %cst_148 : f32 to vector<32x1xf32>
    %241 = arith.divf %239, %240 : vector<32x1xf32>
    %242 = vector.broadcast %241 : vector<32x1xf32> to vector<32x64xf32>
    %243 = arith.subf %233, %242 : vector<32x64xf32>
    %244 = vector.broadcast %241 : vector<32x1xf32> to vector<32x64xf32>
    %245 = arith.subf %233, %244 : vector<32x64xf32>
    %246 = arith.mulf %243, %245 : vector<32x64xf32>
    %cst_149 = arith.constant dense<0.000000e+00> : vector<32xf32>
    %247 = vector.multi_reduction <add>, %246, %cst_149 [1] : vector<32x64xf32> to vector<32xf32>
    %248 = vector.shape_cast %247 : vector<32xf32> to vector<32x1xf32>
    %cst_150 = arith.constant 6.400000e+01 : f32
    %249 = vector.broadcast %cst_150 : f32 to vector<32x1xf32>
    %250 = arith.divf %248, %249 : vector<32x1xf32>
    %251 = vector.broadcast %241 : vector<32x1xf32> to vector<32x64xf32>
    %252 = arith.subf %233, %251 : vector<32x64xf32>
    %cst_151 = arith.constant 9.99999996E-13 : f32
    %253 = vector.broadcast %cst_151 : f32 to vector<32x1xf32>
    %254 = arith.addf %250, %253 : vector<32x1xf32>
    %255 = math.rsqrt %254 : vector<32x1xf32>
    %256 = vector.broadcast %255 : vector<32x1xf32> to vector<32x64xf32>
    %257 = arith.mulf %252, %256 : vector<32x64xf32>
    %258 = vector.broadcast %235 : vector<1x64xf32> to vector<32x64xf32>
    %259 = arith.mulf %257, %258 : vector<32x64xf32>
    %260 = vector.broadcast %237 : vector<1x64xf32> to vector<32x64xf32>
    %261 = arith.addf %259, %260 : vector<32x64xf32>
    %c1_152 = arith.constant 1 : index
    %c0_153 = arith.constant 0 : index
    %c0_154 = arith.constant 0 : index
    %262 = vector.load %arg14[%c1_152, %c0_153, %c0_154] : memref<2x64x256xf32, #tpu.memory_space<vmem>>, vector<1x64x256xf32>
    %263 = vector.shape_cast %262 : vector<1x64x256xf32> to vector<64x256xf32>
    %cst_155 = arith.constant dense<0.000000e+00> : vector<32x256xf32>
    %264 = tpu.matmul %261, %263, %cst_155 {dimension_numbers = #tpu.dot_dimension_numbers<[1], [0], [0], [1], [0, 0, 1, 1], [], []>} : vector<32x64xf32>, vector<64x256xf32>, vector<32x256xf32> -> vector<32x256xf32>
    %c1_156 = arith.constant 1 : index
    %c0_157 = arith.constant 0 : index
    %c0_158 = arith.constant 0 : index
    %265 = vector.load %arg15[%c1_156, %c0_157, %c0_158] : memref<2x1x256xf32, #tpu.memory_space<vmem>>, vector<1x1x256xf32>
    %266 = vector.shape_cast %265 : vector<1x1x256xf32> to vector<1x256xf32>
    %267 = vector.broadcast %266 : vector<1x256xf32> to vector<32x256xf32>
    %268 = arith.addf %264, %267 : vector<32x256xf32>
    %cst_159 = arith.constant 5.000000e-01 : f32
    %269 = vector.broadcast %cst_159 : f32 to vector<32x256xf32>
    %270 = arith.mulf %269, %268 : vector<32x256xf32>
    %cst_160 = arith.constant 4.471500e-02 : f32
    %271 = vector.broadcast %cst_160 : f32 to vector<32x256xf32>
    %272 = arith.mulf %271, %268 : vector<32x256xf32>
    %273 = arith.mulf %272, %268 : vector<32x256xf32>
    %274 = arith.mulf %273, %268 : vector<32x256xf32>
    %275 = arith.addf %268, %274 : vector<32x256xf32>
    %cst_161 = arith.constant 0.797884583 : f32
    %276 = vector.broadcast %cst_161 : f32 to vector<32x256xf32>
    %277 = arith.mulf %276, %275 : vector<32x256xf32>
    %278 = math.tanh %277 : vector<32x256xf32>
    %cst_162 = arith.constant 1.000000e+00 : f32
    %279 = vector.broadcast %cst_162 : f32 to vector<32x256xf32>
    %280 = arith.addf %279, %278 : vector<32x256xf32>
    %281 = arith.mulf %270, %280 : vector<32x256xf32>
    %c1_163 = arith.constant 1 : index
    %c0_164 = arith.constant 0 : index
    %c0_165 = arith.constant 0 : index
    %282 = vector.load %arg16[%c1_163, %c0_164, %c0_165] : memref<2x256x64xf32, #tpu.memory_space<vmem>>, vector<1x256x64xf32>
    %283 = vector.shape_cast %282 : vector<1x256x64xf32> to vector<256x64xf32>
    %cst_166 = arith.constant dense<0.000000e+00> : vector<32x64xf32>
    %284 = tpu.matmul %281, %283, %cst_166 {dimension_numbers = #tpu.dot_dimension_numbers<[1], [0], [0], [1], [0, 0, 1, 1], [], []>} : vector<32x256xf32>, vector<256x64xf32>, vector<32x64xf32> -> vector<32x64xf32>
    %c1_167 = arith.constant 1 : index
    %c0_168 = arith.constant 0 : index
    %c0_169 = arith.constant 0 : index
    %285 = vector.load %arg17[%c1_167, %c0_168, %c0_169] : memref<2x1x64xf32, #tpu.memory_space<vmem>>, vector<1x1x64xf32>
    %286 = vector.shape_cast %285 : vector<1x1x64xf32> to vector<1x64xf32>
    %287 = vector.broadcast %286 : vector<1x64xf32> to vector<32x64xf32>
    %288 = arith.addf %284, %287 : vector<32x64xf32>
    %289 = arith.addf %261, %288 : vector<32x64xf32>
    %c1_170 = arith.constant 1 : index
    %c0_171 = arith.constant 0 : index
    %c0_172 = arith.constant 0 : index
    %290 = vector.load %arg18[%c1_170, %c0_171, %c0_172] : memref<2x1x64xf32, #tpu.memory_space<vmem>>, vector<1x1x64xf32>
    %291 = vector.shape_cast %290 : vector<1x1x64xf32> to vector<1x64xf32>
    %c1_173 = arith.constant 1 : index
    %c0_174 = arith.constant 0 : index
    %c0_175 = arith.constant 0 : index
    %292 = vector.load %arg19[%c1_173, %c0_174, %c0_175] : memref<2x1x64xf32, #tpu.memory_space<vmem>>, vector<1x1x64xf32>
    %293 = vector.shape_cast %292 : vector<1x1x64xf32> to vector<1x64xf32>
    %cst_176 = arith.constant dense<0.000000e+00> : vector<32xf32>
    %294 = vector.multi_reduction <add>, %289, %cst_176 [1] : vector<32x64xf32> to vector<32xf32>
    %295 = vector.shape_cast %294 : vector<32xf32> to vector<32x1xf32>
    %cst_177 = arith.constant 6.400000e+01 : f32
    %296 = vector.broadcast %cst_177 : f32 to vector<32x1xf32>
    %297 = arith.divf %295, %296 : vector<32x1xf32>
    %298 = vector.broadcast %297 : vector<32x1xf32> to vector<32x64xf32>
    %299 = arith.subf %289, %298 : vector<32x64xf32>
    %300 = vector.broadcast %297 : vector<32x1xf32> to vector<32x64xf32>
    %301 = arith.subf %289, %300 : vector<32x64xf32>
    %302 = arith.mulf %299, %301 : vector<32x64xf32>
    %cst_178 = arith.constant dense<0.000000e+00> : vector<32xf32>
    %303 = vector.multi_reduction <add>, %302, %cst_178 [1] : vector<32x64xf32> to vector<32xf32>
    %304 = vector.shape_cast %303 : vector<32xf32> to vector<32x1xf32>
    %cst_179 = arith.constant 6.400000e+01 : f32
    %305 = vector.broadcast %cst_179 : f32 to vector<32x1xf32>
    %306 = arith.divf %304, %305 : vector<32x1xf32>
    %307 = vector.broadcast %297 : vector<32x1xf32> to vector<32x64xf32>
    %308 = arith.subf %289, %307 : vector<32x64xf32>
    %cst_180 = arith.constant 9.99999996E-13 : f32
    %309 = vector.broadcast %cst_180 : f32 to vector<32x1xf32>
    %310 = arith.addf %306, %309 : vector<32x1xf32>
    %311 = math.rsqrt %310 : vector<32x1xf32>
    %312 = vector.broadcast %311 : vector<32x1xf32> to vector<32x64xf32>
    %313 = arith.mulf %308, %312 : vector<32x64xf32>
    %314 = vector.broadcast %291 : vector<1x64xf32> to vector<32x64xf32>
    %315 = arith.mulf %313, %314 : vector<32x64xf32>
    %316 = vector.broadcast %293 : vector<1x64xf32> to vector<32x64xf32>
    %317 = arith.addf %315, %316 : vector<32x64xf32>
    %c0_181 = arith.constant 0 : index
    %c0_182 = arith.constant 0 : index
    %318 = vector.load %arg20[%c0_181, %c0_182] : memref<64x32xf32, #tpu.memory_space<vmem>>, vector<64x32xf32>
    %cst_183 = arith.constant dense<0.000000e+00> : vector<32x32xf32>
    %319 = tpu.matmul %317, %318, %cst_183 {dimension_numbers = #tpu.dot_dimension_numbers<[1], [0], [0], [1], [0, 0, 1, 1], [], []>} : vector<32x64xf32>, vector<64x32xf32>, vector<32x32xf32> -> vector<32x32xf32>
    %c0_184 = arith.constant 0 : index
    %c0_185 = arith.constant 0 : index
    %320 = vector.load %arg21[%c0_184, %c0_185] : memref<1x32xf32, #tpu.memory_space<vmem>>, vector<1x32xf32>
    %321 = vector.broadcast %320 : vector<1x32xf32> to vector<32x32xf32>
    %322 = arith.addf %319, %321 : vector<32x32xf32>
    %323 = math.tanh %322 : vector<32x32xf32>
    %c0_186 = arith.constant 0 : index
    %c0_187 = arith.constant 0 : index
    %c0_188 = arith.constant 0 : index
    %324 = vector.load %arg3[%c0_186, %c0_187, %c0_188] : memref<1x4x32xf32, #tpu.memory_space<vmem>>, vector<1x4x32xf32>
    %325 = vector.shape_cast %324 : vector<1x4x32xf32> to vector<4x32xf32>
    %cst_189 = arith.constant dense<0.000000e+00> : vector<4x32xf32>
    %326 = tpu.matmul %325, %323, %cst_189 {dimension_numbers = #tpu.dot_dimension_numbers<[1], [0], [0], [1], [0, 0, 1, 1], [], []>} : vector<4x32xf32>, vector<32x32xf32>, vector<4x32xf32> -> vector<4x32xf32>
    %327 = vector.extract_strided_slice %326 {offsets = [0, 0], sizes = [2, 32], strides = [1, 1]} : vector<4x32xf32> to vector<2x32xf32>
    %328 = vector.extract_strided_slice %326 {offsets = [2, 0], sizes = [2, 32], strides = [1, 1]} : vector<4x32xf32> to vector<2x32xf32>
    %c0_190 = arith.constant 0 : index
    %c0_191 = arith.constant 0 : index
    %329 = vector.load %arg22[%c0_190, %c0_191] : memref<2x32xf32, #tpu.memory_space<vmem>>, vector<2x32xf32>
    %330 = vector.extract_strided_slice %329 {offsets = [0, 0], sizes = [1, 32], strides = [1, 1]} : vector<2x32xf32> to vector<1x32xf32>
    %331 = vector.broadcast %330 : vector<1x32xf32> to vector<2x32xf32>
    %332 = arith.mulf %327, %331 : vector<2x32xf32>
    %333 = vector.extract_strided_slice %329 {offsets = [1, 0], sizes = [1, 32], strides = [1, 1]} : vector<2x32xf32> to vector<1x32xf32>
    %334 = vector.broadcast %333 : vector<1x32xf32> to vector<2x32xf32>
    %335 = arith.mulf %328, %334 : vector<2x32xf32>
    %336 = arith.addf %332, %335 : vector<2x32xf32>
    %cst_192 = arith.constant dense<0.000000e+00> : vector<2xf32>
    %337 = vector.multi_reduction <add>, %336, %cst_192 [1] : vector<2x32xf32> to vector<2xf32>
    %338 = vector.shape_cast %337 : vector<2xf32> to vector<2x1xf32>
    %c0_193 = arith.constant 0 : index
    %c0_194 = arith.constant 0 : index
    %339 = vector.load %arg23[%c0_193, %c0_194] : memref<1x1xf32, #tpu.memory_space<vmem>>, vector<1x1xf32>
    %340 = vector.broadcast %339 : vector<1x1xf32> to vector<2x1xf32>
    %341 = arith.addf %338, %340 : vector<2x1xf32>
    %cst_195 = arith.constant 0.000000e+00 : f32
    %342 = vector.broadcast %cst_195 : f32 to vector<2x96xf32>
    %343 = tpu.concatenate %327, %342 in 1 : vector<2x32xf32>, vector<2x96xf32> -> vector<2x128xf32>
    %344 = tpu.iota {dimensions = array<i32: 1>} : vector<2x128xi32>
    %c32_i32 = arith.constant 32 : i32
    %345 = vector.broadcast %c32_i32 : i32 to vector<2x128xi32>
    %346 = arith.cmpi eq, %344, %345 : vector<2x128xi32>
    %347 = vector.shape_cast %341 : vector<2x1xf32> to vector<2x1xf32>
    %348 = vector.broadcast %347 : vector<2x1xf32> to vector<2x128xf32>
    %349 = arith.select %346, %348, %343 : vector<2x128xi1>, vector<2x128xf32>
    %c0_196 = arith.constant 0 : index
    %c0_197 = arith.constant 0 : index
    %c0_198 = arith.constant 0 : index
    %350 = vector.load %arg24[%c0_196, %c0_197, %c0_198] : memref<1x2x128xf32, #tpu.memory_space<vmem>>, vector<1x2x128xf32>
    %351 = vector.shape_cast %350 : vector<1x2x128xf32> to vector<2x128xf32>
    %352 = vector.shape_cast %349 : vector<2x128xf32> to vector<1x2x128xf32>
    tpu.vector_store %arg24[%c0_196, %c0_197, %c0_198], %352 {strides = array<i32>} : memref<1x2x128xf32, #tpu.memory_space<vmem>>, vector<1x2x128xf32>,
    return
  }
  func.func @transform_0(%arg0: i32) -> (i32, i32, i32) {
    %c0_i32 = arith.constant 0 : i32
    %c0_i32_0 = arith.constant 0 : i32
    %c0_i32_1 = arith.constant 0 : i32
    return %arg0, %c0_i32, %c0_i32_0 : i32, i32, i32
  }
  func.func @transform_1(%arg0: i32) -> (i32, i32, i32) {
    %c0_i32 = arith.constant 0 : i32
    %c0_i32_0 = arith.constant 0 : i32
    %c0_i32_1 = arith.constant 0 : i32
    return %arg0, %c0_i32, %c0_i32_0 : i32, i32, i32
  }
  func.func @transform_2(%arg0: i32) -> (i32, i32, i32) {
    %c0_i32 = arith.constant 0 : i32
    %c0_i32_0 = arith.constant 0 : i32
    %c0_i32_1 = arith.constant 0 : i32
    return %arg0, %c0_i32, %c0_i32_0 : i32, i32, i32
  }
  func.func @transform_3(%arg0: i32) -> (i32, i32, i32) {
    %c0_i32 = arith.constant 0 : i32
    %c0_i32_0 = arith.constant 0 : i32
    %c0_i32_1 = arith.constant 0 : i32
    %c0_i32_2 = arith.constant 0 : i32
    return %c0_i32, %c0_i32_0, %c0_i32_1 : i32, i32, i32
  }
  func.func @transform_4(%arg0: i32) -> (i32, i32, i32) {
    %c0_i32 = arith.constant 0 : i32
    %c0_i32_0 = arith.constant 0 : i32
    %c0_i32_1 = arith.constant 0 : i32
    %c0_i32_2 = arith.constant 0 : i32
    return %c0_i32, %c0_i32_0, %c0_i32_1 : i32, i32, i32
  }
  func.func @transform_5(%arg0: i32) -> (i32, i32, i32) {
    %c0_i32 = arith.constant 0 : i32
    %c0_i32_0 = arith.constant 0 : i32
    %c0_i32_1 = arith.constant 0 : i32
    %c0_i32_2 = arith.constant 0 : i32
    return %c0_i32, %c0_i32_0, %c0_i32_1 : i32, i32, i32
  }
  func.func @transform_6(%arg0: i32) -> (i32, i32, i32) {
    %c0_i32 = arith.constant 0 : i32
    %c0_i32_0 = arith.constant 0 : i32
    %c0_i32_1 = arith.constant 0 : i32
    %c0_i32_2 = arith.constant 0 : i32
    return %c0_i32, %c0_i32_0, %c0_i32_1 : i32, i32, i32
  }
  func.func @transform_7(%arg0: i32) -> (i32, i32, i32) {
    %c0_i32 = arith.constant 0 : i32
    %c0_i32_0 = arith.constant 0 : i32
    %c0_i32_1 = arith.constant 0 : i32
    %c0_i32_2 = arith.constant 0 : i32
    return %c0_i32, %c0_i32_0, %c0_i32_1 : i32, i32, i32
  }
  func.func @transform_8(%arg0: i32) -> (i32, i32, i32) {
    %c0_i32 = arith.constant 0 : i32
    %c0_i32_0 = arith.constant 0 : i32
    %c0_i32_1 = arith.constant 0 : i32
    %c0_i32_2 = arith.constant 0 : i32
    return %c0_i32, %c0_i32_0, %c0_i32_1 : i32, i32, i32
  }
  func.func @transform_9(%arg0: i32) -> (i32, i32, i32) {
    %c0_i32 = arith.constant 0 : i32
    %c0_i32_0 = arith.constant 0 : i32
    %c0_i32_1 = arith.constant 0 : i32
    %c0_i32_2 = arith.constant 0 : i32
    return %c0_i32, %c0_i32_0, %c0_i32_1 : i32, i32, i32
  }
  func.func @transform_10(%arg0: i32) -> (i32, i32, i32) {
    %c0_i32 = arith.constant 0 : i32
    %c0_i32_0 = arith.constant 0 : i32
    %c0_i32_1 = arith.constant 0 : i32
    %c0_i32_2 = arith.constant 0 : i32
    return %c0_i32, %c0_i32_0, %c0_i32_1 : i32, i32, i32
  }
  func.func @transform_11(%arg0: i32) -> (i32, i32, i32) {
    %c0_i32 = arith.constant 0 : i32
    %c0_i32_0 = arith.constant 0 : i32
    %c0_i32_1 = arith.constant 0 : i32
    %c0_i32_2 = arith.constant 0 : i32
    return %c0_i32, %c0_i32_0, %c0_i32_1 : i32, i32, i32
  }
  func.func @transform_12(%arg0: i32) -> (i32, i32, i32) {
    %c0_i32 = arith.constant 0 : i32
    %c0_i32_0 = arith.constant 0 : i32
    %c0_i32_1 = arith.constant 0 : i32
    %c0_i32_2 = arith.constant 0 : i32
    return %c0_i32, %c0_i32_0, %c0_i32_1 : i32, i32, i32
  }
  func.func @transform_13(%arg0: i32) -> (i32, i32, i32) {
    %c0_i32 = arith.constant 0 : i32
    %c0_i32_0 = arith.constant 0 : i32
    %c0_i32_1 = arith.constant 0 : i32
    %c0_i32_2 = arith.constant 0 : i32
    return %c0_i32, %c0_i32_0, %c0_i32_1 : i32, i32, i32
  }
  func.func @transform_14(%arg0: i32) -> (i32, i32, i32) {
    %c0_i32 = arith.constant 0 : i32
    %c0_i32_0 = arith.constant 0 : i32
    %c0_i32_1 = arith.constant 0 : i32
    %c0_i32_2 = arith.constant 0 : i32
    return %c0_i32, %c0_i32_0, %c0_i32_1 : i32, i32, i32
  }
  func.func @transform_15(%arg0: i32) -> (i32, i32, i32) {
    %c0_i32 = arith.constant 0 : i32
    %c0_i32_0 = arith.constant 0 : i32
    %c0_i32_1 = arith.constant 0 : i32
    %c0_i32_2 = arith.constant 0 : i32
    return %c0_i32, %c0_i32_0, %c0_i32_1 : i32, i32, i32
  }
  func.func @transform_16(%arg0: i32) -> (i32, i32, i32) {
    %c0_i32 = arith.constant 0 : i32
    %c0_i32_0 = arith.constant 0 : i32
    %c0_i32_1 = arith.constant 0 : i32
    %c0_i32_2 = arith.constant 0 : i32
    return %c0_i32, %c0_i32_0, %c0_i32_1 : i32, i32, i32
  }
  func.func @transform_17(%arg0: i32) -> (i32, i32, i32) {
    %c0_i32 = arith.constant 0 : i32
    %c0_i32_0 = arith.constant 0 : i32
    %c0_i32_1 = arith.constant 0 : i32
    %c0_i32_2 = arith.constant 0 : i32
    return %c0_i32, %c0_i32_0, %c0_i32_1 : i32, i32, i32
  }
  func.func @transform_18(%arg0: i32) -> (i32, i32, i32) {
    %c0_i32 = arith.constant 0 : i32
    %c0_i32_0 = arith.constant 0 : i32
    %c0_i32_1 = arith.constant 0 : i32
    %c0_i32_2 = arith.constant 0 : i32
    return %c0_i32, %c0_i32_0, %c0_i32_1 : i32, i32, i32
  }
  func.func @transform_19(%arg0: i32) -> (i32, i32) {
    %c0_i32 = arith.constant 0 : i32
    %c0_i32_0 = arith.constant 0 : i32
    %c0_i32_1 = arith.constant 0 : i32
    return %c0_i32, %c0_i32_0 : i32, i32
  }
  func.func @transform_20(%arg0: i32) -> (i32, i32) {
    %c0_i32 = arith.constant 0 : i32
    %c0_i32_0 = arith.constant 0 : i32
    %c0_i32_1 = arith.constant 0 : i32
    return %c0_i32, %c0_i32_0 : i32, i32
  }
  func.func @transform_21(%arg0: i32) -> (i32, i32) {
    %c0_i32 = arith.constant 0 : i32
    %c0_i32_0 = arith.constant 0 : i32
    %c0_i32_1 = arith.constant 0 : i32
    return %c0_i32, %c0_i32_0 : i32, i32
  }
  func.func @transform_22(%arg0: i32) -> (i32, i32) {
    %c0_i32 = arith.constant 0 : i32
    %c0_i32_0 = arith.constant 0 : i32
    %c0_i32_1 = arith.constant 0 : i32
    return %c0_i32, %c0_i32_0 : i32, i32
  }
  func.func @transform_23(%arg0: i32) -> (i32, i32, i32) {
    %c0_i32 = arith.constant 0 : i32
    %c0_i32_0 = arith.constant 0 : i32
    %c0_i32_1 = arith.constant 0 : i32
    return %arg0, %c0_i32, %c0_i32_0 : i32, i32, i32
  }
}

</mosaic_0001>

<bundles_post_ra>
// kernel: forward.1
= control target key start
LH: loop header
LB: loop body
LE: loop exit
PB: predicated region body
PF: predicated region fallthrough
CT: control target
= control target key end

     0   :  { %vm99_vm0 = vcmask 523264   ;;  %vm397_vm1 = vcmask 261120   ;;  %vm5144_vm3 = vmmov 0   ;;  %vm3574_vm4 = vcmask 254976   ;;  %s6544_s5 = inlined_call_operand.vmem [shape: f32[2,64,64], index: 5, kind: input, shape index: {}]   ;;  %s6545_s0 = inlined_call_operand.vmem [shape: f32[1,32,64], index: 0, kind: input, shape index: {}]   ;;  %s6546_s3 = inlined_call_operand.vmem [shape: f32[4,64,32], index: 3, kind: input, shape index: {}]   ;;  %s6547_s6 = inlined_call_operand.vmem [shape: f32[2,1,64], index: 6, kind: input, shape index: {}]   ;;  %s6548_s4 = inlined_call_operand.vmem [shape: f32[4,1,32], index: 4, kind: input, shape index: {}]   ;;  %s6549_s7 = inlined_call_operand.vmem [shape: f32[4,64,32], index: 7, kind: input, shape index: {}]   ;;  %s6550_s1 = inlined_call_operand.vmem [shape: f32[1,32,32], index: 1, kind: input, shape index: {}]   ;;  %s6551_s8 = inlined_call_operand.vmem [shape: f32[4,1,32], index: 8, kind: input, shape index: {}]   ;;  %s6552_s9 = inlined_call_operand.vmem [shape: f32[2,64,64], index: 9, kind: input, shape index: {}]   ;;  %s6553_s10 = inlined_call_operand.vmem [shape: f32[2,1,64], index: 10, kind: input, shape index: {}]   ;;  %s6554_s13 = inlined_call_operand.vmem [shape: f32[2,64,256], index: 13, kind: input, shape index: {}]   ;;  %s6555_s15 = inlined_call_operand.vmem [shape: f32[2,256,64], index: 15, kind: input, shape index: {}]   ;;  %s6556_s11 = inlined_call_operand.vmem [shape: f32[2,1,64], index: 11, kind: input, shape index: {}]   ;;  %s6557_s12 = inlined_call_operand.vmem [shape: f32[2,1,64], index: 12, kind: input, shape index: {}]   ;;  %s6558_s14 = inlined_call_operand.vmem [shape: f32[2,1,256], index: 14, kind: input, shape index: {}]   ;;  %s6559_s16 = inlined_call_operand.vmem [shape: f32[2,1,64], index: 16, kind: input, shape index: {}]   ;;  %s6560_s17 = inlined_call_operand.vmem [shape: f32[2,1,64], index: 17, kind: input, shape index: {}]   ;;  %s6561_s18 = inlined_call_operand.vmem [shape: f32[2,1,64], index: 18, kind: input, shape index: {}]   ;;  %s6562_s19 = inlined_call_operand.vmem [shape: f32[64,32], index: 19, kind: input, shape index: {}]   ;;  %s6563_s20 = inlined_call_operand.vmem [shape: f32[1,32], index: 20, kind: input, shape index: {}]   ;;  %s6564_s2 = inlined_call_operand.vmem [shape: f32[1,4,32], index: 2, kind: input, shape index: {}]   ;;  %s6565_s22 = inlined_call_operand.<no memory space> [shape: f32[1,1], index: 22, kind: input, shape index: {}]   ;;  %s6566_s21 = inlined_call_operand.vmem [shape: f32[2,32], index: 21, kind: input, shape index: {}]   ;;  %s6567_s23 = inlined_call_operand.vmem [shape: f32[1,2,128], index: 23, kind: output, shape index: {}]  }
   0x1   :  { %6580 = sst [smem:[#allocation3_spill]] %s6544_s5  ;;  %vm5364_vm2 = vmpackc.low %vm397_vm1, %vm397_vm1 }
   0x2   :  { %6581 = sst [smem:[#allocation4_spill]] %s6545_s0  ;;  %s6590_s24 = sld [smem:[#allocation3_spill]] }
   0x3   :  { %6582 = sst [smem:[#allocation5_spill]] %s6546_s3  ;;  %s6576_s3 = smov 96  }
   0x4   :  { %6583 = sst [smem:[#allocation6_spill]] %s6547_s6  ;;  %s6578_s0 = smov 32  }
   0x5   :  { %6584 = sst [smem:[#allocation7_spill]] %s6548_s4  ;;  %s6591_s4 = sld [smem:[#allocation4_spill]] }
   0x6   :  { %6585 = sst [smem:[#allocation8_spill]] %s6549_s7  ;;  %s6592_s7 = sld [smem:[#allocation5_spill]] }
   0x7   :  { %6586 = sst [smem:[#allocation9_spill]] %s6550_s1  ;;  %s6593_s26 = sld [smem:[#allocation6_spill]] }
   0x8   :  { %6587 = sst [smem:[#allocation10_spill]] %s6551_s8  ;;  %v84_v0 = vld [vmem:[%s6590_s24] sm:$0xff]  ;;  %v85_v1 = vld [vmem:[%s6590_s24 + $0x8] sm:$0xff]  ;;  %v86_v2 = vld [vmem:[%s6590_s24 + $0x10] sm:$0xff]  ;;  %s6594_s27 = sld [smem:[#allocation7_spill]] }
   0x9   :  { %6588 = sst [smem:[#allocation11_spill]] %s6566_s21  ;;  %v4582_v3 = vpack.c.bf16 %v85_v1, %v84_v0  ;;  %v87_v4 = vld [vmem:[%s6590_s24 + $0x18] sm:$0xff]  ;;  %v88_v6 = vld [vmem:[%s6590_s24 + $0x20] sm:$0xff]  ;;  %v89_v7 = vld [vmem:[%s6590_s24 + $0x28] sm:$0xff]  ;;  %s6597_s29 = sld [smem:[#allocation8_spill]] }
   0xa   :  { %6589 = sst [smem:[#allocation12_spill]] %s6567_s23  ;;  %v4586_v5 = vpack.c.bf16 %v87_v4, %v86_v2  ;;  %v4590_v14 = vpack.c.bf16 %v89_v7, %v88_v6  ;;  %v90_v18 = vld [vmem:[%s6590_s24 + $0x30] sm:$0xff]  ;;  %v91_v19 = vld [vmem:[%s6590_s24 + $0x38] sm:$0xff]  ;;  %s6599_s1 = sld [smem:[#allocation10_spill]] }
   0xb   :  { %v5287_v8 = vld [vmem:[%s6591_s4] sm:$0xff]  ;;  %4583 = vmatprep.subr.bf16.mxu0 %v4582_v3  ;;  %v4594_v21 = vpack.c.bf16 %v91_v19, %v90_v18  ;;  %v5326_v25 = vld [vmem:[%s6591_s4 + $0x8] sm:$0xff]  ;;  %v5331_v26 = vld [vmem:[%s6591_s4 + $0x10] sm:$0xff] }
   0xc   :  { %4189 = vmatprep.mubr.msk.f32.mxu0 %vm99_vm0, %v5287_v8  ;;  %v197_v9 = vld [vmem:[%s6592_s7] sm:$0xff]  ;;  %v198_v10 = vld [vmem:[%s6592_s7 + $0x8] sm:$0xff]  ;;  %4585 = vmatpush3.bf16.msra.mxu0 %v4582_v3  ;;  %v199_v12 = vld [vmem:[%s6592_s7 + $0x10] sm:$0xff] }
   0xd   :  { %v4598_v11 = vpack.c.bf16 %v198_v10, %v197_v9  ;;  %v200_v13 = vld [vmem:[%s6592_s7 + $0x18] sm:$0xff]  ;;  %4211 = vmatprep.mubr.msk.f32.mxu1 %vm99_vm0, %v5287_v8  ;;  %4587 = vmatprep.subr.bf16.mxu0 %v4586_v5  ;;  %v201_v16 = vld [vmem:[%s6592_s7 + $0x20] sm:$0xff]  ;;  %v202_v17 = vld [vmem:[%s6592_s7 + $0x28] sm:$0xff] }
   0xe   :  { %v4602_v15 = vpack.c.bf16 %v200_v13, %v199_v12  ;;  %v4606_v20 = vpack.c.bf16 %v202_v17, %v201_v16  ;;  %v203_v22 = vld [vmem:[%s6592_s7 + $0x30] sm:$0xff]  ;;  %v204_v23 = vld [vmem:[%s6592_s7 + $0x38] sm:$0xff]  ;;  %v3601_v28 = vld [vmem:[%s6593_s26] ss:$0 sm:$0xff] }
   0xf   :  { %4599 = vmatprep.subr.bf16.mxu1 %v4598_v11  ;;  %v4610_v24 = vpack.c.bf16 %v204_v23, %v203_v22  ;;  %v5340_v27 = vld [vmem:[%s6591_s4 + $0x18] sm:$0xff]  ;;  %v3606_v33 = vld [vmem:[%s6594_s27] ss:$0 sm:$0xff]  ;;  %v298_v52 = vld [vmem:[%s6597_s29 + $0x8] sm:$0xff]  ;;  %s6598_s4 = sld [smem:[#allocation9_spill]] }
  0x10   :  { %4601 = vmatpush3.bf16.msra.mxu1 %v4598_v11  ;;  %4589 = vmatpush3.bf16.msra.mxu0 %v4586_v5  ;;  %v297_v51 = vld [vmem:[%s6597_s29] sm:$0xff]  ;;  %v299_v53 = vld [vmem:[%s6597_s29 + $0x10] sm:$0xff]  ;;  %v300_v55 = vld [vmem:[%s6597_s29 + $0x18] sm:$0xff] }
  0x11   :  { %4603 = vmatprep.subr.bf16.mxu1 %v4602_v15  ;;  %4591 = vmatprep.subr.bf16.mxu0 %v4590_v14  ;;  %v4614_v54 = vpack.c.bf16 %v298_v52, %v297_v51  ;;  %v4618_v56 = vpack.c.bf16 %v300_v55, %v299_v53  ;;  %v301_v57 = vld [vmem:[%s6597_s29 + $0x20] sm:$0xff]  ;;  %v302_v58 = vld [vmem:[%s6597_s29 + $0x28] sm:$0xff]  ;;  %v303_v60 = vld [vmem:[%s6597_s29 + $0x30] sm:$0xff] }
  0x12   :  { %v4622_v59 = vpack.c.bf16 %v302_v58, %v301_v57  ;;  %v304_v61 = vld [vmem:[%s6597_s29 + $0x38] sm:$0xff]  ;;  %v3628_v57 = vld [vmem:[%s6592_s7 + $0x40] sm:$0xff]  ;;  %v3629_v58 = vld [vmem:[%s6592_s7 + $0x48] sm:$0xff] }
  0x13   :  { %v4626_v62 = vpack.c.bf16 %v304_v61, %v303_v60  ;;  %v3631_v61 = vld [vmem:[%s6592_s7 + $0x58] sm:$0xff] }
  0x14   :  { %4605 = vmatpush3.bf16.msra.mxu1 %v4602_v15  ;;  %4593 = vmatpush3.bf16.msra.mxu0 %v4590_v14 }
  0x15   :  { %4607 = vmatprep.subr.bf16.mxu1 %v4606_v20  ;;  %4595 = vmatprep.subr.bf16.mxu0 %v4594_v21  ;;  %v5427_v63 = vld [vmem:[%s6598_s4] sm:$0xff]  ;;  %v5432_v1 = vld [vmem:[%s6598_s4 + $0x8] sm:$0xff]  ;;  %v5438_v4 = vld [vmem:[%s6598_s4 + $0x18] sm:$0xff] }
  0x16   :  { %v5443_v5 = vld [vmem:[%s6598_s4 + $0x10] sm:$0xff] }
  0x18   :  { %4609 = vmatpush3.bf16.msra.mxu1 %v4606_v20  ;;  %4597 = vmatpush3.bf16.msra.mxu0 %v4594_v21 }
  0x19   :  { %4611 = vmatprep.subr.bf16.mxu1 %v4610_v24  ;;  %4615 = vmatprep.subr.bf16.mxu0 %v4614_v54 }
  0x1b   :  { %4190 = vmatmul.mubr.msk.f32.vlgmr.msra.gmra.mrb[0].mxu0 %vm99_vm0, %v5326_v25 }
  0x1c   :  { %4613 = vmatpush3.bf16.msra.mxu1 %v4610_v24  ;;  %4192 = vmatprep.mubr.msk.f32.mxu0 %vm99_vm0, %v5331_v26 }
  0x1d   :  { %4617 = vmatpush3.bf16.msra.mxu0 %v4614_v54 }
  0x1e   :  { %4619 = vmatprep.subr.bf16.mxu0 %v4618_v56 }
  0x1f   :  { %4212 = vmatmul.mubr.msk.f32.vlgmr.msra.gmra.mrb[0].mxu1 %vm99_vm0, %v5326_v25  ;;  %4193 = vmatmul.mubr.msk.f32.gmra.mrb[2].mxu0 %vm99_vm0, %v5340_v27 }
  0x20   :  { %4214 = vmatprep.mubr.msk.f32.mxu1 %vm99_vm0, %v5331_v26  ;;  %4233 = vmatprep.mubr.msk.f32.mxu0 %vm99_vm0, %v5287_v8 }
  0x21   :  { %4621 = vmatpush3.bf16.msra.mxu0 %v4618_v56 }
  0x22   :  { %4623 = vmatprep.subr.bf16.mxu0 %v4622_v59 }
  0x23   :  { %4215 = vmatmul.mubr.msk.f32.gmra.mrb[2].mxu1 %vm99_vm0, %v5340_v27 }
  0x25   :  { %4625 = vmatpush3.bf16.msra.mxu0 %v4622_v59  ;;  %v4650_v59 = vpack.c.bf16 %v3629_v58, %v3628_v57  ;;  %v3649_v57 = vld [vmem:[%s6597_s29 + $0x78] sm:$0xff] }
  0x26   :  { %4627 = vmatprep.subr.bf16.mxu0 %v4626_v62 }
  0x29   :  { %4629 = vmatpush3.bf16.msra.mxu0 %v4626_v62 }
  0x2c   :  { %4234 = vmatmul.mubr.msk.f32.vlgmr.msra.gmra.mrb[4].mxu0 %vm99_vm0, %v5326_v25 }
  0x2d   :  { %4236 = vmatprep.mubr.msk.f32.mxu0 %vm99_vm0, %v5331_v26 }
  0x30   :  { %4237 = vmatmul.mubr.msk.f32.gmra.mrb[6].mxu0 %vm99_vm0, %v5340_v27 }
  0x31   :  { %4305 = vmatprep.mubr.msk.f32.mxu0 %vm99_vm0, %v5287_v8 }
  0xee   :  { %v4191_v29 = vpop.f32.mrb[0].mxu0 }
  0xef   :  { %v5355_v30 = vadd.f32 %v4191_v29, %v3601_v28  ;;  %v178_v31 = vpop.f32.mrb[1].mxu0 }
  0xf0   :  { %v5357_v32 = vadd.f32 %v3601_v28, %v178_v31 }
  0xf2   :  { %v4213_v35 = vpop.f32.mrb[0].mxu1  ;;  %v4978_v36 = vpack.i.bf16 %v5355_v30, %v5357_v32  ;;  %v4630_v37 = vpack.c.bf16 %v5355_v30, %v5357_v32  ;;  %v4194_v38 = vpop.f32.mrb[2].mxu0 }
  0xf3   :  { %v278_v39 = vpop.f32.mrb[1].mxu1  ;;  %v5372_v40 = vadd.f32 %v4194_v38, %v3601_v28  ;;  %v188_v41 = vpop.f32.mrb[3].mxu0  ;;  %v284_v49 = vadd.f32 %v4213_v35, %v3606_v33 }
  0xf4   :  { %v279_v42 = vadd.f32 %v3606_v33, %v278_v39  ;;  %4632 = vmatprep.subr.msk.bf16.mxu1 %vm5364_vm2, %v4630_v37  ;;  %v5376_v43 = vadd.f32 %v3601_v28, %v188_v41 }
  0xf5   :  { %4635 = vmatpush3.bf16.xpose.msk.msra.mxu1 %vm5364_vm2, %v4630_v37 }
  0xf6   :  { %4247 = vmatprep.mubr.msk.f32.mxu1 %vm397_vm1, %v279_v42  ;;  %v4216_v44 = vpop.f32.mrb[2].mxu1  ;;  %v4983_v45 = vpack.i.bf16 %v5372_v40, %v5376_v43  ;;  %v4636_v46 = vpack.c.bf16 %v5372_v40, %v5376_v43 }
  0xf7   :  { %v288_v47 = vpop.f32.mrb[3].mxu1  ;;  %v294_v50 = vadd.f32 %v4216_v44, %v3606_v33 }
  0xf8   :  { %4638 = vmatprep.subr.msk.bf16.mxu1 %vm5364_vm2, %v4636_v46  ;;  %v289_v48 = vadd.f32 %v3606_v33, %v288_v47  ;;  %v3611_v47 = vld [vmem:[%s6599_s1] ss:$0 sm:$0xff] }
  0xfd   :  { %4641 = vmatpush3.bf16.xpose.msk.msra.mxu1 %vm5364_vm2, %v4636_v46 }
  0xff   :  { %v4235_v46 = vpop.f32.mrb[4].mxu0 }
 0x104   :  { %4248 = vmatmul.mubr.msk.f32.vlgmr.msra.gmra.mrb[4].mxu1 %vm397_vm1, %v284_v49  ;;  %v384_v49 = vadd.f32 %v4235_v46, %v3611_v47 }
 0x105   :  { %4250 = vmatprep.mubr.msk.f32.mxu1 %vm397_vm1, %v289_v48  ;;  %v378_v48 = vpop.f32.mrb[5].mxu0 }
 0x106   :  { %v4238_v52 = vpop.f32.mrb[6].mxu0 }
 0x107   :  { %v388_v53 = vpop.f32.mrb[7].mxu0  ;;  %v394_v54 = vadd.f32 %v4238_v52, %v3611_v47 }
 0x108   :  { %4251 = vmatmul.mubr.msk.f32.gmra.mrb[6].mxu1 %vm397_vm1, %v294_v50  ;;  %v379_v50 = vadd.f32 %v3611_v47, %v378_v48  ;;  %v389_v55 = vadd.f32 %v3611_v47, %v388_v53  ;;  %v3642_v47 = vld [vmem:[%s6597_s29 + $0x40] sm:$0xff]  ;;  %v3643_v48 = vld [vmem:[%s6597_s29 + $0x48] sm:$0xff] }
 0x109   :  { %v3646_v53 = vld [vmem:[%s6597_s29 + $0x60] sm:$0xff] }
 0x10a   :  { %v4642_v51 = vpack.c.bf16 %v384_v49, %v379_v50  ;;  %v4646_v56 = vpack.c.bf16 %v394_v54, %v389_v55  ;;  %v3644_v49 = vld [vmem:[%s6597_s29 + $0x50] sm:$0xff]  ;;  %v4666_v50 = vpack.c.bf16 %v3643_v48, %v3642_v47  ;;  %v3647_v54 = vld [vmem:[%s6597_s29 + $0x68] sm:$0xff] }
 0x10b   :  { %v4674_v55 = vpack.c.bf16 %v3647_v54, %v3646_v53 }
 0x10c   :  { %4643 = vmatprep.subr.bf16.mxu1 %v4642_v51  ;;  %4667 = vmatprep.subr.bf16.mxu0 %v4666_v50 }
 0x10d   :  { %4645 = vmatpush3.bf16.msra.mxu1 %v4642_v51  ;;  %v3645_v51 = vld [vmem:[%s6597_s29 + $0x58] sm:$0xff]  ;;  %4669 = vmatpush3.bf16.msra.mxu0 %v4666_v50 }
 0x10e   :  { %4647 = vmatprep.subr.bf16.mxu1 %v4646_v56  ;;  %v4670_v52 = vpack.c.bf16 %v3645_v51, %v3644_v49 }
 0x110   :  { %4671 = vmatprep.subr.bf16.mxu0 %v4670_v52 }
 0x111   :  { %4649 = vmatpush3.bf16.msra.mxu1 %v4646_v56  ;;  %v3648_v56 = vld [vmem:[%s6597_s29 + $0x70] sm:$0xff]  ;;  %4673 = vmatpush3.bf16.msra.mxu0 %v4670_v52 }
 0x112   :  { %4651 = vmatprep.subr.bf16.mxu1 %v4650_v59  ;;  %4675 = vmatprep.subr.bf16.mxu0 %v4674_v55  ;;  %v4678_v58 = vpack.c.bf16 %v3649_v57, %v3648_v56 }
 0x115   :  { %4677 = vmatpush3.bf16.msra.mxu0 %v4674_v55 }
 0x116   :  { %4679 = vmatprep.subr.bf16.mxu0 %v4678_v58 }
 0x119   :  { %4681 = vmatpush3.bf16.msra.mxu0 %v4678_v58 }
 0x11c   :  { %4306 = vmatmul.mubr.msk.f32.vlgmr.msra.gmra.mrb[8].mxu0 %vm99_vm0, %v5326_v25 }
 0x11d   :  { %4308 = vmatprep.mubr.msk.f32.mxu0 %vm99_vm0, %v5331_v26 }
 0x120   :  { %4309 = vmatmul.mubr.msk.f32.gmra.mrb[10].mxu0 %vm99_vm0, %v5340_v27 }
 0x1d7   :  { %v4249_v0 = vpop.f32.mrb[4].mxu1 }
 0x1d8   :  { %v488_v2 = vpop.f32.mrb[5].mxu1  ;;  %v494_v6 = vadd.f32 %v4249_v0, %v5432_v1 }
 0x1d9   :  { %v489_v3 = vadd.f32 %v488_v2, %v5427_v63 }
 0x1da   :  { %v510_v14 = vsel %vm397_vm1, %v494_v6, -inf }
 0x1db   :  { %v4252_v7 = vpop.f32.mrb[6].mxu1  ;;  %v507_v9 = vsel %vm397_vm1, %v489_v3, -inf }
 0x1dc   :  { %v498_v10 = vpop.f32.mrb[7].mxu1  ;;  %508 = vmax.xlane.f32.xlu0 %v507_v9  ;;  %v504_v11 = vadd.f32 %v4252_v7, %v5438_v4  ;;  %v3632_v7 = vld [vmem:[%s6592_s7 + $0x60] sm:$0xff]  ;;  %v3633_v9 = vld [vmem:[%s6592_s7 + $0x68] sm:$0xff] }
 0x1dd   :  { %v499_v12 = vadd.f32 %v498_v10, %v5443_v5 }
 0x1de   :  { %v516_v15 = vsel %vm397_vm1, %v504_v11, -inf }
 0x1df   :  { %v513_v13 = vsel %vm397_vm1, %v499_v12, -inf }
 0x1e0   :  { %514 = vmax.xlane.f32.xlu1 %v513_v13  ;;  %511 = vmax.xlane.f32.xlu0 %v510_v14  ;;  %v3634_v13 = vld [vmem:[%s6592_s7 + $0x70] sm:$0xff]  ;;  %v3635_v14 = vld [vmem:[%s6592_s7 + $0x78] sm:$0xff] }
 0x1e4   :  { %517 = vmax.xlane.f32.xlu1 %v516_v15 }
 0x269   :  { %v509_v16 = vpop.xlane.xlu0 %508 }
 0x26a   :  { %v519_v17 = vsub.f32 %v489_v3, %v509_v16  ;;  %v4662_v16 = vpack.c.bf16 %v3635_v14, %v3634_v13 }
 0x26c   :  { %v523_v18 = vmul.f32 1.442695, %v519_v17 }
 0x26d   :  { %v515_v19 = vpop.xlane.xlu1 %514  ;;  %v512_v20 = vpop.xlane.xlu0 %511 }
 0x26e   :  { %5000 = vpow2.f32 %v523_v18  ;;  %v521_v21 = vsub.f32 %v499_v12, %v515_v19  ;;  %v520_v22 = vsub.f32 %v494_v6, %v512_v20  ;;  %v4658_v12 = vpack.c.bf16 %v3633_v9, %v3632_v7 }
 0x270   :  { %v527_v23 = vmul.f32 1.442695, %v521_v21  ;;  %v525_v24 = vmul.f32 1.442695, %v520_v22 }
 0x271   :  { %v518_v28 = vpop.xlane.xlu1 %517 }
 0x272   :  { %5002 = vpow2.f32 %v527_v23  ;;  %v522_v29 = vsub.f32 %v504_v11, %v518_v28 }
 0x273   :  { %5004 = vpow2.f32 %v525_v24 }
 0x274   :  { %v529_v31 = vmul.f32 1.442695, %v522_v29 }
 0x276   :  { %5006 = vpow2.f32 %v529_v31 }
 0x278   :  { %v5001_v33 = vpop.eup %5000 }
 0x279   :  { %v531_v35 = vsel %vm397_vm1, %v5001_v33, 0.0 }
 0x27a   :  { %532 = vadd.xlane.f32.xlu0 %v531_v35 }
 0x27c   :  { %v5003_v37 = vpop.eup %5002 }
 0x27d   :  { %v5005_v38 = vpop.eup %5004  ;;  %v537_v39 = vsel %vm397_vm1, %v5003_v37, 0.0 }
 0x27e   :  { %538 = vadd.xlane.f32.xlu0 %v537_v39  ;;  %v534_v41 = vsel %vm397_vm1, %v5005_v38, 0.0 }
 0x27f   :  { %535 = vadd.xlane.f32.xlu1 %v534_v41 }
 0x280   :  { %v5007_v42 = vpop.eup %5006 }
 0x281   :  { %v540_v44 = vsel %vm397_vm1, %v5007_v42, 0.0 }
 0x283   :  { %541 = vadd.xlane.f32.xlu1 %v540_v44 }
 0x294   :  { %4984 = vrot.lane.b32.xlu1 %v4983_v45, %s6576_s3  ;;  %4979 = vrot.lane.b32.xlu0 %v4978_v36, %s6576_s3  ;;  %v3630_v36 = vld [vmem:[%s6592_s7 + $0x50] sm:$0xff] }
 0x295   :  { %v4654_v6 = vpack.c.bf16 %v3631_v61, %v3630_v36 }
 0x307   :  { %v533_v60 = vpop.xlane.xlu0 %532 }
 0x308   :  { %5008 = vrcp.f32 %v533_v60 }
 0x30b   :  { %v539_v40 = vpop.xlane.xlu0 %538 }
 0x30c   :  { %v536_v43 = vpop.xlane.xlu1 %535  ;;  %5010 = vrcp.f32 %v539_v40 }
 0x30d   :  { %5012 = vrcp.f32 %v536_v43 }
 0x30f   :  { %v4980_v15 = vpop.permute.xlu0 %4979 }
 0x310   :  { %v542_v45 = vpop.xlane.xlu1 %541  ;;  %v4982_v17 = vunpack.i.h.bf16 %v4980_v15  ;;  %v4981_v18 = vunpack.i.l.bf16 %v4980_v15 }
 0x311   :  { %5014 = vrcp.f32 %v542_v45 }
 0x312   :  { %v5009_v30 = vpop.eup %5008  ;;  %v4682_v19 = vpack.c.bf16 %v4982_v17, %v4981_v18 }
 0x313   :  { %v547_v32 = vmul.f32 %v5009_v30, %v5001_v33  ;;  %v3637_v33 = vld [vmem:[%s6594_s27 + $0x1] ss:$0 sm:$0xff] }
 0x314   :  { %v4985_v20 = vpop.permute.xlu1 %4984 }
 0x315   :  { %4261 = vmatprep.mubr.msk.f32.mxu1 %vm397_vm1, %v547_v32  ;;  %v4987_v21 = vunpack.i.h.bf16 %v4985_v20  ;;  %v4986_v22 = vunpack.i.l.bf16 %v4985_v20 }
 0x316   :  { %v5011_v62 = vpop.eup %5010 }
 0x317   :  { %v5013_v0 = vpop.eup %5012  ;;  %v549_v2 = vmul.f32 %v5011_v62, %v5003_v37  ;;  %v4688_v23 = vpack.c.bf16 %v4987_v21, %v4986_v22 }
 0x318   :  { %v548_v3 = vmul.f32 %v5013_v0, %v5005_v38 }
 0x31a   :  { %4262 = vmatmul.mubr.msk.f32.vlgmr.msra.gmra.mrb[8].mxu1 %vm397_vm1, %v548_v3 }
 0x31b   :  { %v5015_v10 = vpop.eup %5014  ;;  %4653 = vmatpush3.bf16.msra.mxu1 %v4650_v59  ;;  %4264 = vmatprep.mubr.msk.f32.mxu1 %vm397_vm1, %v549_v2 }
 0x31c   :  { %4655 = vmatprep.subr.bf16.mxu1 %v4654_v6  ;;  %v550_v11 = vmul.f32 %v5015_v10, %v5007_v42 }
 0x31e   :  { %4265 = vmatmul.mubr.msk.f32.gmra.mrb[10].mxu1 %vm397_vm1, %v550_v11 }
 0x31f   :  { %4657 = vmatpush3.bf16.msra.mxu1 %v4654_v6  ;;  %4283 = vmatprep.mubr.msk.f32.mxu1 %vm99_vm0, %v5287_v8 }
 0x320   :  { %4659 = vmatprep.subr.bf16.mxu1 %v4658_v12 }
 0x323   :  { %4661 = vmatpush3.bf16.msra.mxu1 %v4658_v12 }
 0x324   :  { %4663 = vmatprep.subr.bf16.mxu1 %v4662_v16 }
 0x327   :  { %4665 = vmatpush3.bf16.msra.mxu1 %v4662_v16 }
 0x328   :  { %4684 = vmatprep.subr.msk.bf16.mxu1 %vm5364_vm2, %v4682_v19 }
 0x32a   :  { %4284 = vmatmul.mubr.msk.f32.vlgmr.msra.gmra.mrb[12].mxu1 %vm99_vm0, %v5326_v25 }
 0x32b   :  { %4286 = vmatprep.mubr.msk.f32.mxu1 %vm99_vm0, %v5331_v26 }
 0x32e   :  { %4287 = vmatmul.mubr.msk.f32.gmra.mrb[14].mxu1 %vm99_vm0, %v5340_v27 }
 0x330   :  { %4687 = vmatpush3.bf16.xpose.msk.msra.mxu1 %vm5364_vm2, %v4682_v19 }
 0x331   :  { %4690 = vmatprep.subr.msk.bf16.mxu1 %vm5364_vm2, %v4688_v23 }
 0x338   :  { %4693 = vmatpush3.bf16.xpose.msk.msra.mxu1 %vm5364_vm2, %v4688_v23  ;;  %v3651_v23 = vld [vmem:[%s6599_s1 + $0x1] ss:$0 sm:$0xff] }
 0x3ed   :  { %v5511_v24 = vpop.f32.mrb[8].mxu1 }
 0x3ee   :  { %v5513_v28 = vpop.f32.mrb[9].mxu1 }
 0x3f1   :  { %v5515_v29 = vpop.f32.mrb[10].mxu1 }
 0x3f2   :  { %v5517_v31 = vpop.f32.mrb[11].mxu1 }
 0x3fd   :  { %v4285_v35 = vpop.f32.mrb[12].mxu1 }
 0x3fe   :  { %v731_v37 = vpop.f32.mrb[13].mxu1  ;;  %v737_v39 = vadd.f32 %v4285_v35, %v3637_v33 }
 0x3ff   :  { %v732_v38 = vadd.f32 %v3637_v33, %v731_v37 }
 0x401   :  { %v4288_v41 = vpop.f32.mrb[14].mxu1  ;;  %4319 = vmatprep.mubr.msk.f32.mxu1 %vm397_vm1, %v732_v38 }
 0x402   :  { %v747_v42 = vadd.f32 %v4288_v41, %v3637_v33  ;;  %v741_v44 = vpop.f32.mrb[15].mxu1  ;;  %4320 = vmatmul.mubr.msk.f32.vlgmr.msra.gmra.mrb[16].mxu1 %vm397_vm1, %v737_v39 }
 0x403   :  { %v742_v46 = vadd.f32 %v3637_v33, %v741_v44 }
 0x405   :  { %4322 = vmatprep.mubr.msk.f32.mxu1 %vm397_vm1, %v742_v46 }
 0x406   :  { %4323 = vmatmul.mubr.msk.f32.gmra.mrb[18].mxu1 %vm397_vm1, %v747_v42 }
 0x4d5   :  { %v4321_v59 = vpop.f32.mrb[16].mxu1 }
 0x4d6   :  { %v952_v60 = vadd.f32 %v4321_v59, %v5432_v1  ;;  %v946_v40 = vpop.f32.mrb[17].mxu1  ;;  %v4307_v1 = vpop.f32.mrb[8].mxu0  ;;  %v1126_v59 = vld [vmem:[%s6552_s9] sm:$0xff] }
 0x4d7   :  { %v947_v43 = vadd.f32 %v946_v40, %v5427_v63  ;;  %v839_v33 = vadd.f32 %v4307_v1, %v3651_v23  ;;  %v833_v35 = vpop.f32.mrb[9].mxu0  ;;  %v1128_v40 = vld [vmem:[%s6552_s9 + $0x10] sm:$0xff] }
 0x4d8   :  { %v968_v45 = vsel %vm397_vm1, %v952_v60, -inf  ;;  %v834_v37 = vadd.f32 %v3651_v23, %v833_v35  ;;  %v4310_v39 = vpop.f32.mrb[10].mxu0 }
 0x4d9   :  { %969 = vmax.xlane.f32.xlu0 %v968_v45  ;;  %v4324_v30 = vpop.f32.mrb[18].mxu1  ;;  %v965_v32 = vsel %vm397_vm1, %v947_v43, -inf  ;;  %v843_v41 = vpop.f32.mrb[11].mxu0  ;;  %v849_v42 = vadd.f32 %v4310_v39, %v3651_v23  ;;  %v1129_v45 = vld [vmem:[%s6552_s9 + $0x18] sm:$0xff] }
 0x4da   :  { %v962_v36 = vadd.f32 %v4324_v30, %v5438_v4  ;;  %v956_v61 = vpop.f32.mrb[19].mxu1  ;;  %966 = vmax.xlane.f32.xlu1 %v965_v32  ;;  %v4694_v38 = vpack.c.bf16 %v839_v33, %v834_v37  ;;  %v844_v44 = vadd.f32 %v3651_v23, %v843_v41  ;;  %v4706_v30 = vpack.c.bf16 %v1129_v45, %v1128_v40  ;;  %v1130_v32 = vld [vmem:[%s6552_s9 + $0x20] sm:$0xff]  ;;  %v1319_v40 = vld [vmem:[%s6554_s13 + $0x10] sm:$0xff]  ;;  %v1322_v45 = vld [vmem:[%s6554_s13 + $0x28] sm:$0xff] }
 0x4db   :  { %v957_v62 = vadd.f32 %v956_v61, %v5443_v5 }
 0x4dc   :  { %v974_v0 = vsel %vm397_vm1, %v962_v36, -inf  ;;  %4695 = vmatprep.subr.bf16.mxu0 %v4694_v38  ;;  %v4698_v46 = vpack.c.bf16 %v849_v42, %v844_v44 }
 0x4dd   :  { %v971_v2 = vsel %vm397_vm1, %v957_v62, -inf  ;;  %4697 = vmatpush3.bf16.msra.mxu0 %v4694_v38 }
 0x4de   :  { %972 = vmax.xlane.f32.xlu0 %v971_v2  ;;  %975 = vmax.xlane.f32.xlu1 %v974_v0  ;;  %v1133_v0 = vld [vmem:[%s6552_s9 + $0x38] sm:$0xff] }
 0x4df   :  { %4699 = vmatprep.subr.bf16.mxu0 %v4698_v46 }
 0x4e1   :  { %4701 = vmatpush3.bf16.msra.mxu0 %v4698_v46 }
 0x566   :  { %v970_v63 = vpop.xlane.xlu0 %969 }
 0x567   :  { %v978_v3 = vsub.f32 %v952_v60, %v970_v63  ;;  %v967_v6 = vpop.xlane.xlu1 %966  ;;  %v1127_v60 = vld [vmem:[%s6552_s9 + $0x8] sm:$0xff] }
 0x568   :  { %v977_v7 = vsub.f32 %v947_v43, %v967_v6  ;;  %v4702_v43 = vpack.c.bf16 %v1127_v60, %v1126_v59  ;;  %v1317_v60 = vld [vmem:[%s6554_s13] sm:$0xff] }
 0x569   :  { %v983_v9 = vmul.f32 1.442695, %v978_v3 }
 0x56a   :  { %v981_v10 = vmul.f32 1.442695, %v977_v7  ;;  %4703 = vmatprep.subr.bf16.mxu0 %v4702_v43 }
 0x56b   :  { %5016 = vpow2.f32 %v983_v9  ;;  %v973_v11 = vpop.xlane.xlu0 %972  ;;  %v976_v4 = vpop.xlane.xlu1 %975 }
 0x56c   :  { %5018 = vpow2.f32 %v981_v10  ;;  %v979_v12 = vsub.f32 %v957_v62, %v973_v11  ;;  %v980_v13 = vsub.f32 %v962_v36, %v976_v4  ;;  %v1131_v36 = vld [vmem:[%s6552_s9 + $0x28] sm:$0xff]  ;;  %v1132_v62 = vld [vmem:[%s6552_s9 + $0x30] sm:$0xff] }
 0x56d   :  { %v4710_v61 = vpack.c.bf16 %v1131_v36, %v1130_v32  ;;  %v4714_v2 = vpack.c.bf16 %v1133_v0, %v1132_v62  ;;  %v1321_v36 = vld [vmem:[%s6554_s13 + $0x20] sm:$0xff]  ;;  %v1326_v0 = vld [vmem:[%s6554_s13 + $0x48] sm:$0xff] }
 0x56e   :  { %v985_v5 = vmul.f32 1.442695, %v979_v12  ;;  %v987_v14 = vmul.f32 1.442695, %v980_v13 }
 0x570   :  { %5020 = vpow2.f32 %v985_v5 }
 0x571   :  { %5022 = vpow2.f32 %v987_v14 }
 0x575   :  { %v5017_v15 = vpop.eup %5016 }
 0x576   :  { %v5019_v16 = vpop.eup %5018  ;;  %v992_v17 = vsel %vm397_vm1, %v5017_v15, 0.0 }
 0x577   :  { %993 = vadd.xlane.f32.xlu1 %v992_v17  ;;  %v989_v18 = vsel %vm397_vm1, %v5019_v16, 0.0 }
 0x578   :  { %990 = vadd.xlane.f32.xlu0 %v989_v18 }
 0x57a   :  { %v5021_v19 = vpop.eup %5020 }
 0x57b   :  { %v5023_v20 = vpop.eup %5022  ;;  %v995_v21 = vsel %vm397_vm1, %v5021_v19, 0.0 }
 0x57c   :  { %996 = vadd.xlane.f32.xlu0 %v995_v21  ;;  %v998_v22 = vsel %vm397_vm1, %v5023_v20, 0.0 }
 0x57d   :  { %999 = vadd.xlane.f32.xlu1 %v998_v22 }
 0x604   :  { %v994_v47 = vpop.xlane.xlu1 %993 }
 0x605   :  { %5024 = vrcp.f32 %v994_v47  ;;  %v991_v48 = vpop.xlane.xlu0 %990 }
 0x606   :  { %5026 = vrcp.f32 %v991_v48 }
 0x609   :  { %v997_v49 = vpop.xlane.xlu0 %996 }
 0x60a   :  { %5028 = vrcp.f32 %v997_v49  ;;  %v1000_v50 = vpop.xlane.xlu1 %999 }
 0x60b   :  { %5030 = vrcp.f32 %v1000_v50 }
 0x60f   :  { %v5025_v51 = vpop.eup %5024 }
 0x610   :  { %v5027_v52 = vpop.eup %5026  ;;  %v1006_v54 = vmul.f32 %v5025_v51, %v5017_v15 }
 0x611   :  { %v1005_v53 = vmul.f32 %v5027_v52, %v5019_v16 }
 0x613   :  { %4333 = vmatprep.mubr.msk.f32.mxu0 %vm397_vm1, %v1005_v53 }
 0x614   :  { %v5029_v55 = vpop.eup %5028  ;;  %4334 = vmatmul.mubr.msk.f32.vlgmr.msra.gmra.mrb[12].mxu0 %vm397_vm1, %v1006_v54 }
 0x615   :  { %v5031_v56 = vpop.eup %5030  ;;  %v1007_v57 = vmul.f32 %v5029_v55, %v5021_v19  ;;  %4705 = vmatpush3.bf16.msra.mxu0 %v4702_v43  ;;  %v4720_v43 = vpack.c.bf16 %v1319_v40, %v1317_v60  ;;  %v1538_v40 = vld [vmem:[%s6555_s15 + $0xa0] sm:$0xff] }
 0x616   :  { %v1008_v58 = vmul.f32 %v5031_v56, %v5023_v20  ;;  %4707 = vmatprep.subr.bf16.mxu0 %v4706_v30 }
 0x617   :  { %4336 = vmatprep.mubr.msk.f32.mxu0 %vm397_vm1, %v1007_v57  ;;  %v1318_v57 = vld [vmem:[%s6554_s13 + $0x8] sm:$0xff] }
 0x618   :  { %4337 = vmatmul.mubr.msk.f32.gmra.mrb[14].mxu0 %vm397_vm1, %v1008_v58  ;;  %v1320_v58 = vld [vmem:[%s6554_s13 + $0x18] sm:$0xff] }
 0x619   :  { %4709 = vmatpush3.bf16.msra.mxu0 %v4706_v30  ;;  %v4718_v59 = vpack.c.bf16 %v1320_v58, %v1318_v57  ;;  %v1324_v30 = vld [vmem:[%s6554_s13 + $0x38] sm:$0xff]  ;;  %v1520_v58 = vld [vmem:[%s6555_s15 + $0x10] sm:$0xff] }
 0x61a   :  { %4711 = vmatprep.subr.bf16.mxu0 %v4710_v61  ;;  %v4722_v32 = vpack.c.bf16 %v1324_v30, %v1322_v45  ;;  %v1537_v57 = vld [vmem:[%s6555_s15 + $0x98] sm:$0xff]  ;;  %v1522_v30 = vld [vmem:[%s6555_s15 + $0x20] sm:$0xff] }
 0x61b   :  { %4719 = vmatprep.subr.bf16.mxu1 %v4718_v59  ;;  %v1521_v59 = vld [vmem:[%s6555_s15 + $0x18] sm:$0xff] }
 0x61c   :  { %4721 = vmatpush1.bf16.msra.mxu1 %v4720_v43  ;;  %v4740_v60 = vpack.c.bf16 %v1521_v59, %v1520_v58  ;;  %v1539_v43 = vld [vmem:[%s6555_s15 + $0xa8] sm:$0xff] }
 0x61d   :  { %4713 = vmatpush3.bf16.msra.mxu0 %v4710_v61  ;;  %v1323_v61 = vld [vmem:[%s6554_s13 + $0x30] sm:$0xff]  ;;  %4723 = vmatprep.subr.bf16.mxu1 %v4722_v32  ;;  %v4742_v45 = vpack.c.bf16 %v1539_v43, %v1538_v40  ;;  %v1523_v32 = vld [vmem:[%s6555_s15 + $0x28] sm:$0xff] }
 0x61e   :  { %4715 = vmatprep.subr.bf16.mxu0 %v4714_v2  ;;  %v4724_v62 = vpack.c.bf16 %v1323_v61, %v1321_v36  ;;  %v4744_v36 = vpack.c.bf16 %v1523_v32, %v1522_v30  ;;  %v1540_v61 = vld [vmem:[%s6555_s15 + $0xb0] sm:$0xff] }
 0x620   :  { %4725 = vmatpush1.bf16.msra.mxu1 %v4724_v62  ;;  %v1541_v62 = vld [vmem:[%s6555_s15 + $0xb8] sm:$0xff] }
 0x621   :  { %4717 = vmatpush3.bf16.msra.mxu0 %v4714_v2  ;;  %v1328_v2 = vld [vmem:[%s6554_s13 + $0x58] sm:$0xff] }
 0x6e7   :  { %v4335_v1 = vpop.f32.mrb[12].mxu0 }
 0x6e8   :  { %1112 = vrot.lane.b32.xlu1 %v4335_v1, %s6578_s0  ;;  %v1087_v63 = vpop.f32.mrb[13].mxu0  ;;  %v4726_v1 = vpack.c.bf16 %v1328_v2, %v1326_v0  ;;  %v4746_v0 = vpack.c.bf16 %v1541_v62, %v1540_v61  ;;  %v1524_v2 = vld [vmem:[%s6555_s15 + $0x30] sm:$0xff] }
 0x6e9   :  { %1110 = vrot.lane.b32.xlu0 %v1087_v63, %s6578_s0  ;;  %v1325_v63 = vld [vmem:[%s6554_s13 + $0x40] sm:$0xff] }
 0x6ea   :  { %4727 = vmatprep.subr.bf16.mxu1 %v4726_v1  ;;  %v1525_v1 = vld [vmem:[%s6555_s15 + $0x38] sm:$0xff] }
 0x6eb   :  { %v4338_v3 = vpop.f32.mrb[14].mxu0 }
 0x6ec   :  { %v1097_v6 = vpop.f32.mrb[15].mxu0 }
 0x6ed   :  { %1114 = vrot.lane.b32.xlu1 %v1097_v6, %s6578_s0 }
 0x6f1   :  { %1116 = vrot.lane.b32.xlu1 %v4338_v3, %s6578_s0  ;;  %v1327_v3 = vld [vmem:[%s6554_s13 + $0x50] sm:$0xff]  ;;  %s6600_s0 = smov 96  }
 0x6f2   :  { %v4728_v6 = vpack.c.bf16 %v1327_v3, %v1325_v63  ;;  %v4748_v63 = vpack.c.bf16 %v1525_v1, %v1524_v2  ;;  %v1542_v3 = vld [vmem:[%s6555_s15 + $0xc0] sm:$0xff] }
 0x6f4   :  { %4729 = vmatpush1.bf16.msra.mxu1 %v4728_v6  ;;  %v1543_v6 = vld [vmem:[%s6555_s15 + $0xc8] sm:$0xff] }
 0x75a   :  { %v1113_v7 = vpop.permute.xlu1 %1112 }
 0x75b   :  { %v1111_v9 = vpop.permute.xlu0 %1110  ;;  %v1123_v11 = vsel %vm397_vm1, %v5511_v24, %v1113_v7  ;;  %v3668_v24 = vld [vmem:[%s6553_s10] ss:$0 sm:$0xff]  ;;  %v1330_v7 = vld [vmem:[%s6554_s13 + $0x68] sm:$0xff] }
 0x75c   :  { %v1122_v10 = vsel %vm397_vm1, %v5513_v28, %v1111_v9  ;;  %v1332_v9 = vld [vmem:[%s6554_s13 + $0x78] sm:$0xff] }
 0x75d   :  { %4355 = vmatprep.mubr.msk.f32.mxu0 %vm99_vm0, %v1122_v10  ;;  %v4730_v10 = vpack.c.bf16 %v1332_v9, %v1330_v7  ;;  %v4750_v7 = vpack.c.bf16 %v1543_v6, %v1542_v3  ;;  %v1526_v9 = vld [vmem:[%s6555_s15 + $0x40] sm:$0xff] }
 0x75e   :  { %4356 = vmatmul.mubr.msk.f32.vlgmr.msra.gmra.mrb[16].mxu0 %vm99_vm0, %v1123_v11  ;;  %v1329_v11 = vld [vmem:[%s6554_s13 + $0x60] sm:$0xff] }
 0x75f   :  { %v1115_v4 = vpop.permute.xlu1 %1114  ;;  %4731 = vmatprep.subr.bf16.mxu1 %v4730_v10  ;;  %v1527_v10 = vld [vmem:[%s6555_s15 + $0x48] sm:$0xff] }
 0x760   :  { %v1124_v12 = vsel %vm397_vm1, %v5517_v31, %v1115_v4  ;;  %v1331_v4 = vld [vmem:[%s6554_s13 + $0x70] sm:$0xff] }
 0x761   :  { %4358 = vmatprep.mubr.msk.f32.mxu0 %vm99_vm0, %v1124_v12  ;;  %v4732_v12 = vpack.c.bf16 %v1331_v4, %v1329_v11  ;;  %v4752_v11 = vpack.c.bf16 %v1527_v10, %v1526_v9  ;;  %v1544_v4 = vld [vmem:[%s6555_s15 + $0xd0] sm:$0xff] }
 0x763   :  { %v1117_v13 = vpop.permute.xlu1 %1116  ;;  %4733 = vmatpush1.bf16.msra.mxu1 %v4732_v12  ;;  %v1545_v12 = vld [vmem:[%s6555_s15 + $0xd8] sm:$0xff] }
 0x764   :  { %v1125_v5 = vsel %vm397_vm1, %v5515_v29, %v1117_v13  ;;  %v5142_v13 = vmov 0.0  }
 0x765   :  { %4359 = vmatmul.mubr.msk.f32.gmra.mrb[18].mxu0 %vm99_vm0, %v1125_v5  ;;  %1421 = vmatprep.mubr.f32.mxu1 %v5142_v13  ;;  %v1534_v5 = vld [vmem:[%s6555_s15 + $0x80] sm:$0xff] }
 0x831   :  { %v4357_v28 = vpop.f32.mrb[16].mxu0 }
 0x832   :  { %v1225_v14 = vadd.f32 %v4357_v28, %v3668_v24  ;;  %v1219_v15 = vpop.f32.mrb[17].mxu0  ;;  %v1518_v28 = vld [vmem:[%s6555_s15] sm:$0xff] }
 0x833   :  { %v1220_v16 = vadd.f32 %v3668_v24, %v1219_v15  ;;  %v1519_v15 = vld [vmem:[%s6555_s15 + $0x8] sm:$0xff] }
 0x834   :  { %v1239_v17 = vadd.f32 %v1225_v14, %v5326_v25 }
 0x835   :  { %v1238_v31 = vadd.f32 %v1220_v16, %v5287_v8  ;;  %v4736_v16 = vpack.c.bf16 %v1519_v15, %v1518_v28  ;;  %v1529_v28 = vld [vmem:[%s6555_s15 + $0x58] sm:$0xff]  ;;  %v1546_v15 = vld [vmem:[%s6555_s15 + $0xe0] sm:$0xff] }
 0x836   :  { %v1247_v18 = vsel %vm99_vm0, %v1239_v17, 0.0 }
 0x837   :  { %1248 = vadd.xlane.f32.xlu1 %v1247_v18  ;;  %v1244_v19 = vsel %vm99_vm0, %v1238_v31, 0.0 }
 0x838   :  { %1245 = vadd.xlane.f32.xlu0 %v1244_v19  ;;  %v4360_v29 = vpop.f32.mrb[18].mxu0 }
 0x839   :  { %v1229_v20 = vpop.f32.mrb[19].mxu0  ;;  %v1235_v21 = vadd.f32 %v4360_v29, %v3668_v24 }
 0x83a   :  { %v1230_v22 = vadd.f32 %v3668_v24, %v1229_v20  ;;  %v1535_v24 = vld [vmem:[%s6555_s15 + $0x88] sm:$0xff] }
 0x83b   :  { %v1241_v35 = vadd.f32 %v1235_v21, %v5340_v27  ;;  %v4734_v14 = vpack.c.bf16 %v1535_v24, %v1534_v5  ;;  %v4754_v5 = vpack.c.bf16 %v1545_v12, %v1544_v4  ;;  %v1528_v24 = vld [vmem:[%s6555_s15 + $0x50] sm:$0xff] }
 0x83c   :  { %v1240_v23 = vadd.f32 %v1230_v22, %v5331_v26 }
 0x83d   :  { %v1253_v25 = vsel %vm99_vm0, %v1241_v35, 0.0  ;;  %4735 = vmatprep.subr.bf16.mxu0 %v4734_v14  ;;  %v4756_v14 = vpack.c.bf16 %v1529_v28, %v1528_v24 }
 0x83e   :  { %v1250_v33 = vsel %vm99_vm0, %v1240_v23, 0.0  ;;  %4737 = vmatpush3.bf16.msra.mxu0 %v4736_v16  ;;  %v1547_v16 = vld [vmem:[%s6555_s15 + $0xe8] sm:$0xff] }
 0x83f   :  { %1251 = vadd.xlane.f32.xlu0 %v1250_v33 }
 0x843   :  { %1254 = vadd.xlane.f32.xlu0 %v1253_v25 }
 0x8c4   :  { %v1249_v8 = vpop.xlane.xlu1 %1248 }
 0x8c5   :  { %v1258_v37 = vmul.f32 0.015625, %v1249_v8  ;;  %v1246_v38 = vpop.xlane.xlu0 %1245 }
 0x8c6   :  { %v1257_v39 = vmul.f32 0.015625, %v1246_v38  ;;  %v3673_v38 = vld [vmem:[%s6556_s11] ss:$0 sm:$0xff] }
 0x8c7   :  { %v5626_v41 = vsub.f32 %v1239_v17, %v1258_v37 }
 0x8c8   :  { %v5628_v42 = vsub.f32 %v1238_v31, %v1257_v39 }
 0x8c9   :  { %v1266_v44 = vmul.f32 %v5626_v41, %v5626_v41 }
 0x8ca   :  { %v1265_v26 = vmul.f32 %v5628_v42, %v5628_v42 }
 0x8cb   :  { %v1272_v27 = vsel %vm99_vm0, %v1266_v44, 0.0 }
 0x8cc   :  { %v1252_v46 = vpop.xlane.xlu0 %1251  ;;  %1273 = vadd.xlane.f32.xlu1 %v1272_v27  ;;  %v1269_v47 = vsel %vm99_vm0, %v1265_v26, 0.0  ;;  %v3674_v26 = vld [vmem:[%s6557_s12] ss:$0 sm:$0xff] }
 0x8cd   :  { %v1259_v48 = vmul.f32 0.015625, %v1252_v46  ;;  %1270 = vadd.xlane.f32.xlu0 %v1269_v47 }
 0x8cf   :  { %v5636_v49 = vsub.f32 %v1240_v23, %v1259_v48 }
 0x8d0   :  { %v1255_v50 = vpop.xlane.xlu0 %1254 }
 0x8d1   :  { %v1260_v51 = vmul.f32 0.015625, %v1255_v50  ;;  %v1267_v52 = vmul.f32 %v5636_v49, %v5636_v49 }
 0x8d3   :  { %v5640_v53 = vsub.f32 %v1241_v35, %v1260_v51  ;;  %v1275_v54 = vsel %vm99_vm0, %v1267_v52, 0.0 }
 0x8d4   :  { %1276 = vadd.xlane.f32.xlu0 %v1275_v54 }
 0x8d5   :  { %v1268_v55 = vmul.f32 %v5640_v53, %v5640_v53 }
 0x8d7   :  { %v1278_v56 = vsel %vm99_vm0, %v1268_v55, 0.0 }
 0x8d8   :  { %1279 = vadd.xlane.f32.xlu1 %v1278_v56  ;;  %v1536_v56 = vld [vmem:[%s6555_s15 + $0x90] sm:$0xff] }
 0x959   :  { %v1274_v17 = vpop.xlane.xlu1 %1273 }
 0x95a   :  { %v1282_v31 = vmul.f32 0.015625, %v1274_v17  ;;  %v1271_v18 = vpop.xlane.xlu0 %1270  ;;  %v1530_v17 = vld [vmem:[%s6555_s15 + $0x60] sm:$0xff] }
 0x95b   :  { %v1281_v19 = vmul.f32 0.015625, %v1271_v18  ;;  %v1531_v18 = vld [vmem:[%s6555_s15 + $0x68] sm:$0xff] }
 0x95c   :  { %v1286_v29 = vadd.f32 1e-12, %v1282_v31  ;;  %v4758_v31 = vpack.c.bf16 %v1547_v16, %v1546_v15 }
 0x95d   :  { %v1285_v20 = vadd.f32 1e-12, %v1281_v19  ;;  %v1548_v19 = vld [vmem:[%s6555_s15 + $0xf0] sm:$0xff] }
 0x95e   :  { %5032 = vrsqrt.f32 %v1286_v29  ;;  %v1549_v29 = vld [vmem:[%s6555_s15 + $0xf8] sm:$0xff] }
 0x95f   :  { %5034 = vrsqrt.f32 %v1285_v20  ;;  %v4760_v20 = vpack.c.bf16 %v1531_v18, %v1530_v17 }
 0x961   :  { %v1277_v21 = vpop.xlane.xlu0 %1276 }
 0x962   :  { %v1283_v22 = vmul.f32 0.015625, %v1277_v21  ;;  %v4762_v21 = vpack.c.bf16 %v1549_v29, %v1548_v19 }
 0x964   :  { %v1287_v23 = vadd.f32 1e-12, %v1283_v22  ;;  %v1532_v22 = vld [vmem:[%s6555_s15 + $0x70] sm:$0xff] }
 0x965   :  { %v1280_v33 = vpop.xlane.xlu1 %1279 }
 0x966   :  { %5036 = vrsqrt.f32 %v1287_v23  ;;  %v1284_v35 = vmul.f32 0.015625, %v1280_v33  ;;  %v1533_v23 = vld [vmem:[%s6555_s15 + $0x78] sm:$0xff] }
 0x967   :  { %v4764_v33 = vpack.c.bf16 %v1533_v23, %v1532_v22 }
 0x968   :  { %v5033_v25 = vpop.eup %5032  ;;  %v1288_v8 = vadd.f32 1e-12, %v1284_v35  ;;  %v1335_v35 = vlaneseq }
 0x969   :  { %v5035_v37 = vpop.eup %5034  ;;  %v1294_v44 = vmul.f32 %v5033_v25, %v5626_v41 }
 0x96a   :  { %v1293_v39 = vmul.f32 %v5035_v37, %v5628_v42  ;;  %5038 = vrsqrt.f32 %v1288_v8  ;;  %v1336_v25 = vshrl.u32 %v1335_v35, 7  ;;  %v1333_v37 = vld [vmem:[%s6558_s14] sm:$0x3] }
 0x96b   :  { %v1304_v47 = vmul.f32 %v3673_v38, %v1294_v44 }
 0x96c   :  { %v1303_v27 = vmul.f32 %v3673_v38, %v1293_v39  ;;  %v5821_v8 = vsub.s32 0, %v1336_v25 }
 0x96d   :  { %v5721_v42 = vadd.f32 %v3674_v26, %v1304_v47 }
 0x96e   :  { %v5715_v46 = vadd.f32 %v3674_v26, %v1303_v27  ;;  %v1338_v39 = vrot.slane %v1333_v37, %v5821_v8 }
 0x970   :  { %v5037_v48 = vpop.eup %5036  ;;  %3675 = vmatmul.mubr.msk.f32.vlgmr.msra.gmra.mrb[20].mxu1 %vm99_vm0, %v5715_v46 }
 0x971   :  { %1427 = vmatprep.mubr.f32.mxu1 %v5142_v13  ;;  %v1295_v50 = vmul.f32 %v5037_v48, %v5636_v49 }
 0x973   :  { %v1305_v51 = vmul.f32 %v3673_v38, %v1295_v50 }
 0x974   :  { %v5039_v41 = vpop.eup %5038  ;;  %3676 = vmatmul.mubr.msk.f32.gmra.mrb[22].mxu1 %vm99_vm0, %v5721_v42 }
 0x975   :  { %1433 = vmatprep.mubr.f32.mxu1 %v5142_v13  ;;  %v5726_v52 = vadd.f32 %v3674_v26, %v1305_v51  ;;  %v1296_v54 = vmul.f32 %v5039_v41, %v5640_v53  ;;  %v4738_v53 = vpack.c.bf16 %v1537_v57, %v1536_v56 }
 0x977   :  { %v1306_v55 = vmul.f32 %v3673_v38, %v1296_v54  ;;  %4739 = vmatprep.subr.bf16.mxu0 %v4738_v53  ;;  %v5826_v38 = vsub.s32 1, %v1336_v25 }
 0x978   :  { %3677 = vmatmul.mubr.msk.f32.gmra.mrb[24].mxu1 %vm99_vm0, %v5726_v52  ;;  %4741 = vmatpush3.bf16.msra.mxu0 %v4740_v60 }
 0x979   :  { %1439 = vmatprep.mubr.f32.mxu1 %v5142_v13  ;;  %v5732_v49 = vadd.f32 %v3674_v26, %v1306_v55  ;;  %4743 = vmatprep.subr.bf16.mxu0 %v4742_v45  ;;  %v1342_v44 = vrot.slane %v1333_v37, %v5826_v38 }
 0x97c   :  { %3678 = vmatmul.mubr.msk.f32.gmra.mrb[26].mxu1 %vm99_vm0, %v5732_v49  ;;  %4745 = vmatpush3.bf16.msra.mxu0 %v4744_v36 }
 0x97d   :  { %4747 = vmatprep.subr.bf16.mxu0 %v4746_v0 }
 0x980   :  { %4749 = vmatpush3.bf16.msra.mxu0 %v4748_v63 }
 0x981   :  { %4751 = vmatprep.subr.bf16.mxu0 %v4750_v7 }
 0x984   :  { %4753 = vmatpush3.bf16.msra.mxu0 %v4752_v11 }
 0x985   :  { %4755 = vmatprep.subr.bf16.mxu0 %v4754_v5 }
 0x988   :  { %4757 = vmatpush3.bf16.msra.mxu0 %v4756_v14 }
 0x989   :  { %4759 = vmatprep.subr.bf16.mxu0 %v4758_v31 }
 0x98c   :  { %4761 = vmatpush3.bf16.msra.mxu0 %v4760_v20 }
 0x98d   :  { %4763 = vmatprep.subr.bf16.mxu0 %v4762_v21 }
 0x990   :  { %4765 = vmatpush3.bf16.msra.mxu0 %v4764_v33 }
 0xa43   :  { %v1423_v26 = vpop.f32.mrb[20].mxu1 }
 0xa44   :  { %v5830_v27 = vadd.f32 %v1423_v26, %v1338_v39  ;;  %v1425_v47 = vpop.f32.mrb[21].mxu1 }
 0xa45   :  { %v1426_v48 = vadd.f32 %v1425_v47, %v1342_v44 }
 0xa46   :  { %v1454_v50 = vmul.f32 0.044715, %v5830_v27 }
 0xa47   :  { %v1455_v51 = vmul.f32 0.044715, %v1426_v48  ;;  %v1429_v41 = vpop.f32.mrb[22].mxu1 }
 0xa48   :  { %v1462_v54 = vmul.f32 %v1454_v50, %v5830_v27  ;;  %v5834_v55 = vadd.f32 %v1429_v41, %v1338_v39  ;;  %v1431_v56 = vpop.f32.mrb[23].mxu1  ;;  %v1447_v41 = vmul.f32 0.5, %v1426_v48 }
 0xa49   :  { %v1463_v57 = vmul.f32 %v1455_v51, %v1426_v48  ;;  %v5836_v53 = vadd.f32 %v1431_v56, %v1342_v44  ;;  %v1446_v56 = vmul.f32 0.5, %v5830_v27 }
 0xa4a   :  { %v1470_v58 = vmul.f32 %v1462_v54, %v5830_v27  ;;  %v1456_v59 = vmul.f32 0.044715, %v5834_v55 }
 0xa4b   :  { %v1457_v60 = vmul.f32 0.044715, %v5836_v53  ;;  %v1435_v40 = vpop.f32.mrb[24].mxu1  ;;  %v1471_v43 = vmul.f32 %v1463_v57, %v1426_v48 }
 0xa4c   :  { %v1478_v45 = vadd.f32 %v1470_v58, %v5830_v27  ;;  %v1464_v30 = vmul.f32 %v1456_v59, %v5834_v55  ;;  %v5843_v32 = vadd.f32 %v1435_v40, %v1338_v39  ;;  %v1437_v36 = vpop.f32.mrb[25].mxu1 }
 0xa4d   :  { %v1465_v61 = vmul.f32 %v1457_v60, %v5836_v53  ;;  %v5846_v62 = vadd.f32 %v1437_v36, %v1342_v44  ;;  %v1479_v0 = vadd.f32 %v1471_v43, %v1426_v48  ;;  %v1449_v43 = vmul.f32 0.5, %v5836_v53 }
 0xa4e   :  { %v1486_v2 = vmul.f32 0.7978846, %v1478_v45  ;;  %v1458_v1 = vmul.f32 0.044715, %v5843_v32  ;;  %v1472_v63 = vmul.f32 %v1464_v30, %v5834_v55  ;;  %v1448_v30 = vmul.f32 0.5, %v5834_v55 }
 0xa4f   :  { %v1459_v3 = vmul.f32 0.044715, %v5846_v62  ;;  %v1441_v6 = vpop.f32.mrb[26].mxu1  ;;  %v1487_v7 = vmul.f32 0.7978846, %v1479_v0  ;;  %v1473_v9 = vmul.f32 %v1465_v61, %v5836_v53  ;;  %v1451_v27 = vmul.f32 0.5, %v5846_v62 }
 0xa50   :  { %5040 = vtanh.f32 %v1486_v2  ;;  %v1466_v10 = vmul.f32 %v1458_v1, %v5843_v32  ;;  %v5853_v11 = vadd.f32 %v1441_v6, %v1338_v39  ;;  %v1443_v4 = vpop.f32.mrb[27].mxu1  ;;  %v1480_v12 = vadd.f32 %v1472_v63, %v5834_v55 }
 0xa51   :  { %v1467_v5 = vmul.f32 %v1459_v3, %v5846_v62  ;;  %v1444_v24 = vadd.f32 %v1443_v4, %v1342_v44  ;;  %5042 = vtanh.f32 %v1487_v7  ;;  %v1481_v28 = vadd.f32 %v1473_v9, %v5836_v53 }
 0xa52   :  { %v1460_v14 = vmul.f32 0.044715, %v5853_v11  ;;  %v1488_v15 = vmul.f32 0.7978846, %v1480_v12  ;;  %v1474_v16 = vmul.f32 %v1466_v10, %v5843_v32  ;;  %v1450_v63 = vmul.f32 0.5, %v5843_v32 }
 0xa53   :  { %v1461_v17 = vmul.f32 0.044715, %v1444_v24  ;;  %v1489_v31 = vmul.f32 0.7978846, %v1481_v28  ;;  %v1475_v18 = vmul.f32 %v1467_v5, %v5846_v62  ;;  %v1453_v10 = vmul.f32 0.5, %v1444_v24 }
 0xa54   :  { %v1468_v19 = vmul.f32 %v1460_v14, %v5853_v11  ;;  %5044 = vtanh.f32 %v1488_v15  ;;  %v1482_v29 = vadd.f32 %v1474_v16, %v5843_v32  ;;  %v1452_v4 = vmul.f32 0.5, %v5853_v11  ;;  %v3679_v32 = vld [vmem:[%s6559_s16] ss:$0 sm:$0xff] }
 0xa55   :  { %v1469_v20 = vmul.f32 %v1461_v17, %v1444_v24  ;;  %5046 = vtanh.f32 %v1489_v31  ;;  %v1483_v21 = vadd.f32 %v1475_v18, %v5846_v62 }
 0xa56   :  { %v1490_v22 = vmul.f32 0.7978846, %v1482_v29  ;;  %v1476_v23 = vmul.f32 %v1468_v19, %v5853_v11 }
 0xa57   :  { %v1491_v33 = vmul.f32 0.7978846, %v1483_v21  ;;  %v1477_v25 = vmul.f32 %v1469_v20, %v1444_v24 }
 0xa58   :  { %5048 = vtanh.f32 %v1490_v22  ;;  %v1484_v37 = vadd.f32 %v1476_v23, %v5853_v11 }
 0xa59   :  { %5050 = vtanh.f32 %v1491_v33  ;;  %v1485_v39 = vadd.f32 %v1477_v25, %v1444_v24 }
 0xa5a   :  { %v5041_v44 = vpop.eup %5040  ;;  %v1492_v26 = vmul.f32 0.7978846, %v1484_v37 }
 0xa5b   :  { %v5043_v47 = vpop.eup %5042  ;;  %v1502_v50 = vadd.f32 1.0, %v5041_v44  ;;  %v1493_v51 = vmul.f32 0.7978846, %v1485_v39 }
 0xa5c   :  { %v1503_v54 = vadd.f32 1.0, %v5043_v47  ;;  %5052 = vtanh.f32 %v1492_v26 }
 0xa5d   :  { %5054 = vtanh.f32 %v1493_v51  ;;  %v1510_v60 = vmul.f32 %v1502_v50, %v1446_v56 }
 0xa5e   :  { %v5045_v57 = vpop.eup %5044  ;;  %v1511_v58 = vmul.f32 %v1503_v54, %v1447_v41 }
 0xa5f   :  { %v5047_v59 = vpop.eup %5046  ;;  %v1504_v40 = vadd.f32 1.0, %v5045_v57 }
 0xa60   :  { %1621 = vmatprep.mubr.f32.mxu0 %v1511_v58  ;;  %v1505_v45 = vadd.f32 1.0, %v5047_v59 }
 0xa61   :  { %1622 = vmatmul.mubr.f32.vlgmr.msra.gmra.mrb[20].mxu0 %v1510_v60  ;;  %v1512_v0 = vmul.f32 %v1504_v40, %v1448_v30 }
 0xa62   :  { %v5049_v36 = vpop.eup %5048  ;;  %v1513_v61 = vmul.f32 %v1505_v45, %v1449_v43 }
 0xa63   :  { %v5051_v48 = vpop.eup %5050  ;;  %v1506_v2 = vadd.f32 1.0, %v5049_v36 }
 0xa64   :  { %1626 = vmatprep.mubr.f32.mxu0 %v1513_v61  ;;  %v1507_v1 = vadd.f32 1.0, %v5051_v48 }
 0xa65   :  { %1627 = vmatmul.mubr.f32.gmra.mrb[22].mxu0 %v1512_v0  ;;  %v1514_v53 = vmul.f32 %v1506_v2, %v1450_v63  ;;  %v3682_v2 = vld [vmem:[%s6590_s24 + $0x40] sm:$0xff] }
 0xa66   :  { %v5053_v3 = vpop.eup %5052  ;;  %v1515_v6 = vmul.f32 %v1507_v1, %v1451_v27  ;;  %v3683_v27 = vld [vmem:[%s6590_s24 + $0x48] sm:$0xff]  ;;  %v3710_v63 = vld [vmem:[%s6597_s29 + $0x80] sm:$0xff] }
 0xa67   :  { %v5055_v7 = vpop.eup %5054  ;;  %v1508_v9 = vadd.f32 1.0, %v5053_v3  ;;  %v4766_v1 = vpack.c.bf16 %v3683_v27, %v3682_v2  ;;  %v3711_v3 = vld [vmem:[%s6597_s29 + $0x88] sm:$0xff] }
 0xa68   :  { %1631 = vmatprep.mubr.f32.mxu0 %v1515_v6  ;;  %v1509_v55 = vadd.f32 1.0, %v5055_v7  ;;  %v4798_v6 = vpack.c.bf16 %v3711_v3, %v3710_v63  ;;  %v3684_v7 = vld [vmem:[%s6590_s24 + $0x50] sm:$0xff]  ;;  %v3703_v3 = vld [vmem:[%s6592_s7 + $0xb8] sm:$0xff] }
 0xa69   :  { %1632 = vmatmul.mubr.f32.gmra.mrb[24].mxu0 %v1514_v53  ;;  %v1516_v5 = vmul.f32 %v1508_v9, %v1452_v4  ;;  %4767 = vmatprep.subr.bf16.mxu1 %v4766_v1  ;;  %v3685_v53 = vld [vmem:[%s6590_s24 + $0x58] sm:$0xff]  ;;  %v3702_v63 = vld [vmem:[%s6592_s7 + $0xb0] sm:$0xff] }
 0xa6a   :  { %v1517_v12 = vmul.f32 %v1509_v55, %v1453_v10  ;;  %4769 = vmatpush3.bf16.msra.mxu1 %v4766_v1  ;;  %4799 = vmatprep.subr.bf16.mxu0 %v4798_v6  ;;  %v4770_v9 = vpack.c.bf16 %v3685_v53, %v3684_v7  ;;  %v3712_v10 = vld [vmem:[%s6597_s29 + $0x90] sm:$0xff]  ;;  %v3713_v55 = vld [vmem:[%s6597_s29 + $0x98] sm:$0xff]  ;;  %v3691_v53 = vld [vmem:[%s6593_s26 + $0x1] ss:$0 sm:$0xff] }
 0xa6b   :  { %4801 = vmatpush3.bf16.msra.mxu0 %v4798_v6  ;;  %v4802_v4 = vpack.c.bf16 %v3713_v55, %v3712_v10 }
 0xa6c   :  { %1636 = vmatprep.mubr.f32.mxu0 %v1517_v12  ;;  %4771 = vmatprep.subr.bf16.mxu1 %v4770_v9  ;;  %v3686_v12 = vld [vmem:[%s6590_s24 + $0x60] sm:$0xff] }
 0xa6d   :  { %1637 = vmatmul.mubr.f32.gmra.mrb[26].mxu0 %v1516_v5  ;;  %4803 = vmatprep.subr.bf16.mxu0 %v4802_v4  ;;  %v3687_v5 = vld [vmem:[%s6590_s24 + $0x68] sm:$0xff] }
 0xa6e   :  { %4773 = vmatpush3.bf16.msra.mxu1 %v4770_v9  ;;  %v3719_v9 = vld [vmem:[%s6599_s1 + $0x2] ss:$0 sm:$0xff] }
 0xa6f   :  { %4805 = vmatpush3.bf16.msra.mxu0 %v4802_v4 }
 0xb34   :  { %v3996_v62 = vpop.f32.mrb[20].mxu0 }
 0xb35   :  { %v3997_v28 = vpop.f32.mrb[21].mxu0 }
 0xb36   :  { %v3998_v14 = vadd.f32 %v3997_v28, %v3996_v62  ;;  %v4774_v62 = vpack.c.bf16 %v3687_v5, %v3686_v12  ;;  %v3715_v28 = vld [vmem:[%s6597_s29 + $0xa8] sm:$0xff] }
 0xb38   :  { %v1624_v15 = vadd.f32 %v3998_v14, %v3679_v32  ;;  %v3999_v16 = vpop.f32.mrb[22].mxu0  ;;  %4775 = vmatprep.subr.bf16.mxu1 %v4774_v62 }
 0xb39   :  { %v4000_v17 = vpop.f32.mrb[23].mxu0  ;;  %4777 = vmatpush3.bf16.msra.mxu1 %v4774_v62 }
 0xb3a   :  { %v4001_v31 = vadd.f32 %v4000_v17, %v3999_v16  ;;  %v1642_v24 = vadd.f32 %v1624_v15, %v5715_v46  ;;  %v3688_v15 = vld [vmem:[%s6590_s24 + $0x70] sm:$0xff]  ;;  %v3689_v16 = vld [vmem:[%s6590_s24 + $0x78] sm:$0xff] }
 0xb3b   :  { %v4778_v17 = vpack.c.bf16 %v3689_v16, %v3688_v15 }
 0xb3c   :  { %v1629_v18 = vadd.f32 %v4001_v31, %v3679_v32  ;;  %v4002_v19 = vpop.f32.mrb[24].mxu0  ;;  %v1648_v11 = vsel %vm99_vm0, %v1642_v24, 0.0  ;;  %v3716_v31 = vld [vmem:[%s6597_s29 + $0xb0] sm:$0xff] }
 0xb3d   :  { %1649 = vadd.xlane.f32.xlu0 %v1648_v11  ;;  %v4003_v29 = vpop.f32.mrb[25].mxu0  ;;  %4779 = vmatprep.subr.bf16.mxu1 %v4778_v17  ;;  %v3697_v11 = vld [vmem:[%s6592_s7 + $0x88] sm:$0xff] }
 0xb3e   :  { %v4004_v20 = vadd.f32 %v4003_v29, %v4002_v19  ;;  %v1643_v21 = vadd.f32 %v1629_v18, %v5721_v42  ;;  %4781 = vmatpush3.bf16.msra.mxu1 %v4778_v17  ;;  %v3696_v19 = vld [vmem:[%s6592_s7 + $0x80] sm:$0xff] }
 0xb3f   :  { %v4782_v29 = vpack.c.bf16 %v3697_v11, %v3696_v19 }
 0xb40   :  { %v1634_v22 = vadd.f32 %v4004_v20, %v3679_v32  ;;  %v4005_v23 = vpop.f32.mrb[26].mxu0  ;;  %v1651_v33 = vsel %vm99_vm0, %v1643_v21, 0.0 }
 0xb41   :  { %1652 = vadd.xlane.f32.xlu1 %v1651_v33  ;;  %v4006_v25 = vpop.f32.mrb[27].mxu0  ;;  %4783 = vmatprep.subr.bf16.mxu1 %v4782_v29 }
 0xb42   :  { %v4007_v37 = vadd.f32 %v4006_v25, %v4005_v23  ;;  %v1644_v39 = vadd.f32 %v1634_v22, %v5726_v52 }
 0xb44   :  { %v1639_v44 = vadd.f32 %v4007_v37, %v3679_v32  ;;  %v1654_v46 = vsel %vm99_vm0, %v1644_v39, 0.0  ;;  %v3714_v32 = vld [vmem:[%s6597_s29 + $0xa0] sm:$0xff] }
 0xb45   :  { %1655 = vadd.xlane.f32.xlu0 %v1654_v46  ;;  %v4806_v14 = vpack.c.bf16 %v3715_v28, %v3714_v32 }
 0xb46   :  { %v1645_v26 = vadd.f32 %v1639_v44, %v5732_v49 }
 0xb47   :  { %4807 = vmatprep.subr.bf16.mxu0 %v4806_v14 }
 0xb48   :  { %v1657_v47 = vsel %vm99_vm0, %v1645_v26, 0.0  ;;  %4809 = vmatpush3.bf16.msra.mxu0 %v4806_v14 }
 0xb49   :  { %1658 = vadd.xlane.f32.xlu1 %v1657_v47 }
 0xbca   :  { %v1650_v50 = vpop.xlane.xlu0 %1649 }
 0xbcb   :  { %v1660_v42 = vmul.f32 0.015625, %v1650_v50  ;;  %v3680_v50 = vld [vmem:[%s6560_s17] ss:$0 sm:$0xff] }
 0xbcd   :  { %v5883_v51 = vsub.f32 %v1642_v24, %v1660_v42  ;;  %v3717_v24 = vld [vmem:[%s6597_s29 + $0xb8] sm:$0xff] }
 0xbce   :  { %v1653_v41 = vpop.xlane.xlu1 %1652  ;;  %v4810_v18 = vpack.c.bf16 %v3717_v24, %v3716_v31 }
 0xbcf   :  { %v1661_v54 = vmul.f32 0.015625, %v1653_v41  ;;  %v1668_v56 = vmul.f32 %v5883_v51, %v5883_v51 }
 0xbd0   :  { %4811 = vmatprep.subr.bf16.mxu0 %v4810_v18 }
 0xbd1   :  { %v5887_v57 = vsub.f32 %v1643_v21, %v1661_v54  ;;  %v1672_v52 = vsel %vm99_vm0, %v1668_v56, 0.0  ;;  %4813 = vmatpush3.bf16.msra.mxu0 %v4810_v18  ;;  %v3681_v54 = vld [vmem:[%s6561_s18] ss:$0 sm:$0xff] }
 0xbd2   :  { %1673 = vadd.xlane.f32.xlu0 %v1672_v52  ;;  %v1656_v58 = vpop.xlane.xlu0 %1655 }
 0xbd3   :  { %v1662_v59 = vmul.f32 0.015625, %v1656_v58  ;;  %v1669_v49 = vmul.f32 %v5887_v57, %v5887_v57 }
 0xbd5   :  { %v5892_v60 = vsub.f32 %v1644_v39, %v1662_v59  ;;  %v1675_v40 = vsel %vm99_vm0, %v1669_v49, 0.0  ;;  %v3698_v49 = vld [vmem:[%s6592_s7 + $0x90] sm:$0xff] }
 0xbd6   :  { %1676 = vadd.xlane.f32.xlu1 %v1675_v40  ;;  %v1659_v43 = vpop.xlane.xlu1 %1658  ;;  %v3699_v40 = vld [vmem:[%s6592_s7 + $0x98] sm:$0xff] }
 0xbd7   :  { %v1663_v45 = vmul.f32 0.015625, %v1659_v43  ;;  %v1670_v30 = vmul.f32 %v5892_v60, %v5892_v60 }
 0xbd9   :  { %v5897_v36 = vsub.f32 %v1645_v26, %v1663_v45  ;;  %v1678_v61 = vsel %vm99_vm0, %v1670_v30, 0.0  ;;  %v4786_v30 = vpack.c.bf16 %v3699_v40, %v3698_v49  ;;  %v3741_v49 = vld [vmem:[%s6592_s7 + $0xe8] sm:$0xff] }
 0xbda   :  { %1679 = vadd.xlane.f32.xlu0 %v1678_v61  ;;  %v3700_v61 = vld [vmem:[%s6592_s7 + $0xa0] sm:$0xff] }
 0xbdb   :  { %v1671_v48 = vmul.f32 %v5897_v36, %v5897_v36 }
 0xbdd   :  { %v1681_v0 = vsel %vm99_vm0, %v1671_v48, 0.0  ;;  %v3701_v48 = vld [vmem:[%s6592_s7 + $0xa8] sm:$0xff] }
 0xbde   :  { %1682 = vadd.xlane.f32.xlu1 %v1681_v0  ;;  %v4790_v1 = vpack.c.bf16 %v3701_v48, %v3700_v61 }
 0xc5f   :  { %v1674_v20 = vpop.xlane.xlu0 %1673 }
 0xc60   :  { %v1684_v21 = vmul.f32 0.015625, %v1674_v20 }
 0xc62   :  { %v1688_v22 = vadd.f32 1e-12, %v1684_v21  ;;  %v3736_v21 = vld [vmem:[%s6592_s7 + $0xc0] sm:$0xff] }
 0xc63   :  { %v1677_v23 = vpop.xlane.xlu1 %1676 }
 0xc64   :  { %5056 = vrsqrt.f32 %v1688_v22  ;;  %v1685_v33 = vmul.f32 0.015625, %v1677_v23  ;;  %v3737_v22 = vld [vmem:[%s6592_s7 + $0xc8] sm:$0xff] }
 0xc66   :  { %v1689_v25 = vadd.f32 1e-12, %v1685_v33 }
 0xc67   :  { %v1680_v37 = vpop.xlane.xlu0 %1679 }
 0xc68   :  { %5058 = vrsqrt.f32 %v1689_v25  ;;  %v1686_v39 = vmul.f32 0.015625, %v1680_v37  ;;  %v4834_v37 = vpack.c.bf16 %v3737_v22, %v3736_v21 }
 0xc6a   :  { %v1690_v44 = vadd.f32 1e-12, %v1686_v39  ;;  %v3705_v39 = vld [vmem:[%s6594_s27 + $0x2] ss:$0 sm:$0xff] }
 0xc6b   :  { %v1683_v46 = vpop.xlane.xlu1 %1682 }
 0xc6c   :  { %5060 = vrsqrt.f32 %v1690_v44  ;;  %v1687_v26 = vmul.f32 0.015625, %v1683_v46 }
 0xc6e   :  { %v5057_v47 = vpop.eup %5056  ;;  %v1691_v42 = vadd.f32 1e-12, %v1687_v26 }
 0xc6f   :  { %v1696_v41 = vmul.f32 %v5057_v47, %v5883_v51  ;;  %v3738_v47 = vld [vmem:[%s6592_s7 + $0xd0] sm:$0xff] }
 0xc70   :  { %5062 = vrsqrt.f32 %v1691_v42 }
 0xc71   :  { %v1706_v56 = vmul.f32 %v3680_v50, %v1696_v41 }
 0xc72   :  { %v5059_v52 = vpop.eup %5058 }
 0xc73   :  { %v5964_v58 = vadd.f32 %v3681_v54, %v1706_v56  ;;  %v1697_v59 = vmul.f32 %v5059_v52, %v5887_v57 }
 0xc75   :  { %v1707_v51 = vmul.f32 %v3680_v50, %v1697_v59  ;;  %4377 = vmatprep.mubr.msk.f32.mxu1 %vm99_vm0, %v5964_v58  ;;  %4421 = vmatprep.mubr.msk.f32.mxu0 %vm99_vm0, %v5964_v58  ;;  %v3740_v59 = vld [vmem:[%s6592_s7 + $0xe0] sm:$0xff] }
 0xc76   :  { %v5061_v43 = vpop.eup %5060 }
 0xc77   :  { %v5977_v45 = vadd.f32 %v3681_v54, %v1707_v51  ;;  %v1698_v57 = vmul.f32 %v5061_v43, %v5892_v60  ;;  %v4842_v51 = vpack.c.bf16 %v3741_v49, %v3740_v59  ;;  %v3742_v43 = vld [vmem:[%s6592_s7 + $0xf0] sm:$0xff] }
 0xc79   :  { %v1708_v0 = vmul.f32 %v3680_v50, %v1698_v57  ;;  %4378 = vmatmul.mubr.msk.f32.vlgmr.msra.gmra.mrb[28].mxu1 %vm99_vm0, %v5977_v45  ;;  %4422 = vmatmul.mubr.msk.f32.vlgmr.msra.gmra.mrb[28].mxu0 %vm99_vm0, %v5977_v45  ;;  %v3743_v57 = vld [vmem:[%s6592_s7 + $0xf8] sm:$0xff] }
 0xc7a   :  { %v5063_v2 = vpop.eup %5062  ;;  %4785 = vmatpush3.bf16.msra.mxu1 %v4782_v29 }
 0xc7b   :  { %v5990_v27 = vadd.f32 %v3681_v54, %v1708_v0  ;;  %v1699_v60 = vmul.f32 %v5063_v2, %v5897_v36  ;;  %4787 = vmatprep.subr.bf16.mxu1 %v4786_v30  ;;  %v4794_v36 = vpack.c.bf16 %v3703_v3, %v3702_v63 }
 0xc7d   :  { %v1709_v6 = vmul.f32 %v3680_v50, %v1699_v60  ;;  %4380 = vmatprep.mubr.msk.f32.mxu1 %vm99_vm0, %v5990_v27  ;;  %4424 = vmatprep.mubr.msk.f32.mxu0 %vm99_vm0, %v5990_v27  ;;  %v3739_v50 = vld [vmem:[%s6592_s7 + $0xd8] sm:$0xff] }
 0xc7e   :  { %4789 = vmatpush3.bf16.msra.mxu1 %v4786_v30  ;;  %v4838_v56 = vpack.c.bf16 %v3739_v50, %v3738_v47  ;;  %v4846_v30 = vpack.c.bf16 %v3743_v57, %v3742_v43  ;;  %v3750_v43 = vld [vmem:[%s6597_s29 + $0xc0] sm:$0xff]  ;;  %v3751_v57 = vld [vmem:[%s6597_s29 + $0xc8] sm:$0xff] }
 0xc7f   :  { %v6003_v7 = vadd.f32 %v3681_v54, %v1709_v6  ;;  %4791 = vmatprep.subr.bf16.mxu1 %v4790_v1 }
 0xc81   :  { %4381 = vmatmul.mubr.msk.f32.gmra.mrb[30].mxu1 %vm99_vm0, %v6003_v7  ;;  %4425 = vmatmul.mubr.msk.f32.gmra.mrb[30].mxu0 %vm99_vm0, %v6003_v7 }
 0xc82   :  { %4793 = vmatpush3.bf16.msra.mxu1 %v4790_v1  ;;  %4399 = vmatprep.mubr.msk.f32.mxu1 %vm99_vm0, %v5964_v58 }
 0xc83   :  { %4795 = vmatprep.subr.bf16.mxu1 %v4794_v36 }
 0xc86   :  { %4797 = vmatpush3.bf16.msra.mxu1 %v4794_v36  ;;  %v6083_v36 = vld [vmem:[%s6598_s4 + $0x8] sm:$0xff] }
 0xc89   :  { %4400 = vmatmul.mubr.msk.f32.vlgmr.msra.gmra.mrb[32].mxu1 %vm99_vm0, %v5977_v45 }
 0xc8a   :  { %4402 = vmatprep.mubr.msk.f32.mxu1 %vm99_vm0, %v5990_v27 }
 0xc8d   :  { %4403 = vmatmul.mubr.msk.f32.gmra.mrb[34].mxu1 %vm99_vm0, %v6003_v7 }
 0xd4c   :  { %v4379_v10 = vpop.f32.mrb[28].mxu1  ;;  %v4423_v55 = vpop.f32.mrb[28].mxu0 }
 0xd4d   :  { %v1821_v4 = vadd.f32 %v4379_v10, %v3691_v53  ;;  %v2025_v12 = vadd.f32 %v4423_v55, %v3719_v9  ;;  %v1815_v5 = vpop.f32.mrb[29].mxu1  ;;  %v2019_v62 = vpop.f32.mrb[29].mxu0  ;;  %v6089_v10 = vld [vmem:[%s6598_s4] sm:$0xff] }
 0xd4e   :  { %v1816_v32 = vadd.f32 %v3691_v53, %v1815_v5  ;;  %v2020_v28 = vadd.f32 %v3719_v9, %v2019_v62  ;;  %v6097_v5 = vld [vmem:[%s6598_s4 + $0x18] sm:$0xff] }
 0xd50   :  { %v4988_v14 = vpack.i.bf16 %v1821_v4, %v1816_v32  ;;  %v4814_v15 = vpack.c.bf16 %v1821_v4, %v1816_v32  ;;  %v4826_v16 = vpack.c.bf16 %v2025_v12, %v2020_v28  ;;  %v6103_v28 = vld [vmem:[%s6598_s4 + $0x10] sm:$0xff]  ;;  %s6601_s4 = smov 32  }
 0xd52   :  { %4827 = vmatprep.subr.bf16.mxu0 %v4826_v16  ;;  %4989 = vrot.lane.b32.xlu0 %v4988_v14, %s6600_s0 }
 0xd53   :  { %4816 = vmatprep.subr.msk.bf16.mxu1 %vm5364_vm2, %v4814_v15  ;;  %4829 = vmatpush3.bf16.msra.mxu0 %v4826_v16 }
 0xd54   :  { %4819 = vmatpush3.bf16.xpose.msk.msra.mxu1 %vm5364_vm2, %v4814_v15  ;;  %v4382_v17 = vpop.f32.mrb[30].mxu1  ;;  %v4426_v31 = vpop.f32.mrb[30].mxu0 }
 0xd55   :  { %v1831_v24 = vadd.f32 %v4382_v17, %v3691_v53  ;;  %v2035_v18 = vadd.f32 %v4426_v31, %v3719_v9  ;;  %v1825_v19 = vpop.f32.mrb[31].mxu1  ;;  %v2029_v11 = vpop.f32.mrb[31].mxu0  ;;  %v3745_v17 = vld [vmem:[%s6594_s27 + $0x3] ss:$0 sm:$0xff] }
 0xd56   :  { %v1826_v29 = vadd.f32 %v3691_v53, %v1825_v19  ;;  %v2030_v20 = vadd.f32 %v3719_v9, %v2029_v11 }
 0xd58   :  { %v4993_v23 = vpack.i.bf16 %v1831_v24, %v1826_v29  ;;  %v4820_v33 = vpack.c.bf16 %v1831_v24, %v1826_v29  ;;  %v4830_v25 = vpack.c.bf16 %v2035_v18, %v2030_v20 }
 0xd5a   :  { %4831 = vmatprep.subr.bf16.mxu0 %v4830_v25  ;;  %4994 = vrot.lane.b32.xlu1 %v4993_v23, %s6600_s0 }
 0xd5b   :  { %4822 = vmatprep.subr.msk.bf16.mxu1 %vm5364_vm2, %v4820_v33  ;;  %4833 = vmatpush3.bf16.msra.mxu0 %v4830_v25 }
 0xd5c   :  { %v4401_v44 = vpop.f32.mrb[32].mxu1  ;;  %4825 = vmatpush3.bf16.xpose.msk.msra.mxu1 %vm5364_vm2, %v4820_v33 }
 0xd5d   :  { %v1917_v46 = vpop.f32.mrb[33].mxu1  ;;  %4835 = vmatprep.subr.bf16.mxu1 %v4834_v37  ;;  %v1923_v41 = vadd.f32 %v4401_v44, %v3705_v39 }
 0xd5e   :  { %v1918_v26 = vadd.f32 %v3705_v39, %v1917_v46 }
 0xd60   :  { %v4404_v42 = vpop.f32.mrb[34].mxu1  ;;  %4435 = vmatprep.mubr.msk.f32.mxu1 %vm397_vm1, %v1918_v26 }
 0xd61   :  { %v1927_v54 = vpop.f32.mrb[35].mxu1  ;;  %v1933_v40 = vadd.f32 %v4404_v42, %v3705_v39 }
 0xd62   :  { %v1928_v52 = vadd.f32 %v3705_v39, %v1927_v54 }
 0xd63   :  { %4436 = vmatmul.mubr.msk.f32.vlgmr.msra.gmra.mrb[36].mxu1 %vm397_vm1, %v1923_v41 }
 0xd64   :  { %4438 = vmatprep.mubr.msk.f32.mxu1 %vm397_vm1, %v1928_v52  ;;  %4837 = vmatpush3.bf16.msra.mxu1 %v4834_v37 }
 0xd65   :  { %4839 = vmatprep.subr.bf16.mxu1 %v4838_v56 }
 0xd67   :  { %4439 = vmatmul.mubr.msk.f32.gmra.mrb[38].mxu1 %vm397_vm1, %v1933_v40 }
 0xd68   :  { %4841 = vmatpush3.bf16.msra.mxu1 %v4838_v56  ;;  %4471 = vmatprep.mubr.msk.f32.mxu1 %vm99_vm0, %v5964_v58 }
 0xd69   :  { %4843 = vmatprep.subr.bf16.mxu1 %v4842_v51 }
 0xd6c   :  { %4845 = vmatpush3.bf16.msra.mxu1 %v4842_v51 }
 0xd6d   :  { %4847 = vmatprep.subr.bf16.mxu1 %v4846_v30 }
 0xd70   :  { %4849 = vmatpush3.bf16.msra.mxu1 %v4846_v30  ;;  %v4850_v30 = vpack.c.bf16 %v3751_v57, %v3750_v43 }
 0xd72   :  { %4851 = vmatprep.subr.bf16.mxu0 %v4850_v30 }
 0xd73   :  { %4472 = vmatmul.mubr.msk.f32.vlgmr.msra.gmra.mrb[40].mxu1 %vm99_vm0, %v5977_v45 }
 0xd74   :  { %4474 = vmatprep.mubr.msk.f32.mxu1 %vm99_vm0, %v5990_v27 }
 0xd77   :  { %4475 = vmatmul.mubr.msk.f32.gmra.mrb[42].mxu1 %vm99_vm0, %v6003_v7 }
 0xdc4   :  { %v4990_v61 = vpop.permute.xlu0 %4989 }
 0xdc5   :  { %v4992_v48 = vunpack.i.h.bf16 %v4990_v61  ;;  %v4991_v0 = vunpack.i.l.bf16 %v4990_v61 }
 0xdc7   :  { %v4866_v2 = vpack.c.bf16 %v4992_v48, %v4991_v0 }
 0xdc9   :  { %4868 = vmatprep.subr.msk.bf16.mxu1 %vm5364_vm2, %v4866_v2 }
 0xdca   :  { %4871 = vmatpush3.bf16.xpose.msk.msra.mxu1 %vm5364_vm2, %v4866_v2 }
 0xdcc   :  { %v4995_v60 = vpop.permute.xlu1 %4994 }
 0xdcd   :  { %v4997_v1 = vunpack.i.h.bf16 %v4995_v60  ;;  %v4996_v63 = vunpack.i.l.bf16 %v4995_v60 }
 0xdcf   :  { %v4872_v3 = vpack.c.bf16 %v4997_v1, %v4996_v63 }
 0xdd1   :  { %4874 = vmatprep.subr.msk.bf16.mxu1 %vm5364_vm2, %v4872_v3 }
 0xdd2   :  { %4877 = vmatpush3.bf16.xpose.msk.msra.mxu1 %vm5364_vm2, %v4872_v3 }
 0xe36   :  { %v4437_v6 = vpop.f32.mrb[36].mxu1 }
 0xe37   :  { %v2134_v53 = vadd.f32 %v6083_v36, %v4437_v6  ;;  %v2128_v9 = vpop.f32.mrb[37].mxu1 }
 0xe38   :  { %v2129_v55 = vadd.f32 %v6089_v10, %v2128_v9 }
 0xe39   :  { %v2150_v4 = vsel %vm397_vm1, %v2134_v53, -inf }
 0xe3a   :  { %2151 = vmax.xlane.f32.xlu0 %v2150_v4  ;;  %v4440_v34 = vpop.f32.mrb[38].mxu1  ;;  %v2147_v12 = vsel %vm397_vm1, %v2129_v55, -inf }
 0xe3b   :  { %v2144_v62 = vadd.f32 %v6097_v5, %v4440_v34  ;;  %v2138_v32 = vpop.f32.mrb[39].mxu1  ;;  %2148 = vmax.xlane.f32.xlu1 %v2147_v12 }
 0xe3c   :  { %v2139_v14 = vadd.f32 %v6103_v28, %v2138_v32 }
 0xe3d   :  { %v2156_v15 = vsel %vm397_vm1, %v2144_v62, -inf }
 0xe3e   :  { %v2153_v16 = vsel %vm397_vm1, %v2139_v14, -inf }
 0xe3f   :  { %2154 = vmax.xlane.f32.xlu0 %v2153_v16  ;;  %2157 = vmax.xlane.f32.xlu1 %v2156_v15  ;;  %v3754_v16 = vld [vmem:[%s6597_s29 + $0xe0] sm:$0xff] }
 0xe46   :  { %v4473_v31 = vpop.f32.mrb[40].mxu1 }
 0xe47   :  { %v2371_v24 = vpop.f32.mrb[41].mxu1  ;;  %v2377_v19 = vadd.f32 %v4473_v31, %v3745_v17 }
 0xe48   :  { %v2372_v18 = vadd.f32 %v3745_v17, %v2371_v24 }
 0xe4a   :  { %v4476_v11 = vpop.f32.mrb[42].mxu1  ;;  %4507 = vmatprep.mubr.msk.f32.mxu1 %vm397_vm1, %v2372_v18 }
 0xe4b   :  { %v2381_v29 = vpop.f32.mrb[43].mxu1  ;;  %4508 = vmatmul.mubr.msk.f32.vlgmr.msra.gmra.mrb[44].mxu1 %vm397_vm1, %v2377_v19  ;;  %v2387_v21 = vadd.f32 %v4476_v11, %v3745_v17 }
 0xe4c   :  { %v2382_v20 = vadd.f32 %v3745_v17, %v2381_v29  ;;  %v3755_v17 = vld [vmem:[%s6597_s29 + $0xe8] sm:$0xff]  ;;  %v3756_v29 = vld [vmem:[%s6597_s29 + $0xf0] sm:$0xff] }
 0xe4d   :  { %v4858_v11 = vpack.c.bf16 %v3755_v17, %v3754_v16  ;;  %v3776_v17 = vld [vmem:[%s6552_s9 + $0x40] sm:$0xff] }
 0xe4e   :  { %4510 = vmatprep.mubr.msk.f32.mxu1 %vm397_vm1, %v2382_v20  ;;  %v3757_v20 = vld [vmem:[%s6597_s29 + $0xf8] sm:$0xff] }
 0xe4f   :  { %4511 = vmatmul.mubr.msk.f32.gmra.mrb[46].mxu1 %vm397_vm1, %v2387_v21  ;;  %v4862_v21 = vpack.c.bf16 %v3757_v20, %v3756_v29  ;;  %v3780_v29 = vld [vmem:[%s6552_s9 + $0x60] sm:$0xff]  ;;  %v3781_v20 = vld [vmem:[%s6552_s9 + $0x68] sm:$0xff] }
 0xe50   :  { %3066 = vmatprep.mubr.f32.mxu1 %v5142_v13 }
 0xec7   :  { %v2152_v22 = vpop.xlane.xlu0 %2151 }
 0xec8   :  { %v2160_v23 = vsub.f32 %v2134_v53, %v2152_v22  ;;  %v2149_v33 = vpop.xlane.xlu1 %2148 }
 0xec9   :  { %v2159_v25 = vsub.f32 %v2129_v55, %v2149_v33 }
 0xeca   :  { %v2165_v37 = vmul.f32 1.442695, %v2160_v23 }
 0xecb   :  { %v2163_v39 = vmul.f32 1.442695, %v2159_v25 }
 0xecc   :  { %5064 = vpow2.f32 %v2165_v37  ;;  %v2155_v44 = vpop.xlane.xlu0 %2154  ;;  %v2158_v46 = vpop.xlane.xlu1 %2157 }
 0xecd   :  { %5066 = vpow2.f32 %v2163_v39  ;;  %v2161_v26 = vsub.f32 %v2139_v14, %v2155_v44  ;;  %v2162_v47 = vsub.f32 %v2144_v62, %v2158_v46  ;;  %v3753_v62 = vld [vmem:[%s6597_s29 + $0xd8] sm:$0xff] }
 0xecf   :  { %v2167_v50 = vmul.f32 1.442695, %v2161_v26  ;;  %v2169_v42 = vmul.f32 1.442695, %v2162_v47 }
 0xed1   :  { %5068 = vpow2.f32 %v2167_v50 }
 0xed2   :  { %5070 = vpow2.f32 %v2169_v42 }
 0xed6   :  { %v5065_v41 = vpop.eup %5064 }
 0xed7   :  { %v5067_v54 = vpop.eup %5066  ;;  %v2174_v56 = vsel %vm397_vm1, %v5065_v41, 0.0 }
 0xed8   :  { %2175 = vadd.xlane.f32.xlu1 %v2174_v56  ;;  %v2171_v52 = vsel %vm397_vm1, %v5067_v54, 0.0 }
 0xed9   :  { %2172 = vadd.xlane.f32.xlu0 %v2171_v52 }
 0xedb   :  { %v5069_v59 = vpop.eup %5068 }
 0xedc   :  { %v5071_v49 = vpop.eup %5070  ;;  %v2177_v40 = vsel %vm397_vm1, %v5069_v59, 0.0 }
 0xedd   :  { %2178 = vadd.xlane.f32.xlu0 %v2177_v40  ;;  %v2180_v51 = vsel %vm397_vm1, %v5071_v49, 0.0 }
 0xede   :  { %2181 = vadd.xlane.f32.xlu1 %v2180_v51 }
 0xf1e   :  { %v4509_v61 = vpop.f32.mrb[44].mxu1 }
 0xf1f   :  { %v2592_v48 = vadd.f32 %v6083_v36, %v4509_v61  ;;  %v2586_v0 = vpop.f32.mrb[45].mxu1 }
 0xf20   :  { %v2587_v2 = vadd.f32 %v6089_v10, %v2586_v0 }
 0xf21   :  { %v2608_v60 = vsel %vm397_vm1, %v2592_v48, -inf }
 0xf22   :  { %v4512_v1 = vpop.f32.mrb[46].mxu1  ;;  %2609 = vmax.xlane.f32.xlu1 %v2608_v60  ;;  %v2605_v63 = vsel %vm397_vm1, %v2587_v2, -inf  ;;  %v3759_v60 = vld [vmem:[%s6599_s1 + $0x3] ss:$0 sm:$0xff] }
 0xf23   :  { %v2602_v3 = vadd.f32 %v6097_v5, %v4512_v1  ;;  %v2596_v6 = vpop.f32.mrb[47].mxu1  ;;  %2606 = vmax.xlane.f32.xlu0 %v2605_v63  ;;  %v3752_v5 = vld [vmem:[%s6597_s29 + $0xd0] sm:$0xff] }
 0xf24   :  { %v2597_v53 = vadd.f32 %v6103_v28, %v2596_v6  ;;  %v4854_v15 = vpack.c.bf16 %v3753_v62, %v3752_v5 }
 0xf25   :  { %v2614_v9 = vsel %vm397_vm1, %v2602_v3, -inf }
 0xf26   :  { %2615 = vmax.xlane.f32.xlu1 %v2614_v9  ;;  %v2611_v36 = vsel %vm397_vm1, %v2597_v53, -inf }
 0xf27   :  { %2612 = vmax.xlane.f32.xlu0 %v2611_v36 }
 0xf65   :  { %v2176_v55 = vpop.xlane.xlu1 %2175 }
 0xf66   :  { %5072 = vrcp.f32 %v2176_v55  ;;  %v2173_v10 = vpop.xlane.xlu0 %2172 }
 0xf67   :  { %5074 = vrcp.f32 %v2173_v10 }
 0xf6a   :  { %v2179_v4 = vpop.xlane.xlu0 %2178 }
 0xf6b   :  { %5076 = vrcp.f32 %v2179_v4  ;;  %v2182_v34 = vpop.xlane.xlu1 %2181 }
 0xf6c   :  { %5078 = vrcp.f32 %v2182_v34 }
 0xf70   :  { %v5073_v12 = vpop.eup %5072 }
 0xf71   :  { %v5075_v32 = vpop.eup %5074  ;;  %v2188_v14 = vmul.f32 %v5073_v12, %v5065_v41 }
 0xf72   :  { %v2187_v28 = vmul.f32 %v5075_v32, %v5067_v54 }
 0xf74   :  { %4449 = vmatprep.mubr.msk.f32.mxu0 %vm397_vm1, %v2187_v28 }
 0xf75   :  { %v5077_v31 = vpop.eup %5076  ;;  %4450 = vmatmul.mubr.msk.f32.vlgmr.msra.gmra.mrb[32].mxu0 %vm397_vm1, %v2188_v14 }
 0xf76   :  { %v5079_v24 = vpop.eup %5078  ;;  %4853 = vmatpush3.bf16.msra.mxu0 %v4850_v30  ;;  %v2189_v18 = vmul.f32 %v5077_v31, %v5069_v59  ;;  %v3777_v31 = vld [vmem:[%s6552_s9 + $0x48] sm:$0xff] }
 0xf77   :  { %4855 = vmatprep.subr.bf16.mxu0 %v4854_v15  ;;  %v2190_v19 = vmul.f32 %v5079_v24, %v5071_v49  ;;  %v3778_v24 = vld [vmem:[%s6552_s9 + $0x50] sm:$0xff] }
 0xf78   :  { %4452 = vmatprep.mubr.msk.f32.mxu0 %vm397_vm1, %v2189_v18  ;;  %v4886_v18 = vpack.c.bf16 %v3777_v31, %v3776_v17  ;;  %v3795_v31 = vld [vmem:[%s6554_s13 + $0x88] sm:$0xff] }
 0xf79   :  { %4453 = vmatmul.mubr.msk.f32.gmra.mrb[34].mxu0 %vm397_vm1, %v2190_v19  ;;  %v3779_v19 = vld [vmem:[%s6552_s9 + $0x58] sm:$0xff] }
 0xf7a   :  { %4857 = vmatpush3.bf16.msra.mxu0 %v4854_v15  ;;  %4493 = vmatprep.mubr.msk.f32.mxu0 %vm99_vm0, %v5964_v58 }
 0xf7b   :  { %4859 = vmatprep.subr.bf16.mxu0 %v4858_v11 }
 0xf7e   :  { %4861 = vmatpush3.bf16.msra.mxu0 %v4858_v11  ;;  %v4890_v11 = vpack.c.bf16 %v3779_v19, %v3778_v24  ;;  %v3797_v24 = vld [vmem:[%s6554_s13 + $0x98] sm:$0xff]  ;;  %v3794_v19 = vld [vmem:[%s6554_s13 + $0x80] sm:$0xff] }
 0xf7f   :  { %4863 = vmatprep.subr.bf16.mxu0 %v4862_v21 }
 0xf82   :  { %4865 = vmatpush3.bf16.msra.mxu0 %v4862_v21  ;;  %v4894_v21 = vpack.c.bf16 %v3781_v20, %v3780_v29  ;;  %v3799_v20 = vld [vmem:[%s6554_s13 + $0xa8] sm:$0xff] }
 0xf85   :  { %4494 = vmatmul.mubr.msk.f32.vlgmr.msra.gmra.mrb[36].mxu0 %vm99_vm0, %v5977_v45 }
 0xf86   :  { %4496 = vmatprep.mubr.msk.f32.mxu0 %vm99_vm0, %v5990_v27 }
 0xf89   :  { %4497 = vmatmul.mubr.msk.f32.gmra.mrb[38].mxu0 %vm99_vm0, %v6003_v7 }
 0xfaf   :  { %v2610_v22 = vpop.xlane.xlu1 %2609 }
 0xfb0   :  { %v2618_v23 = vsub.f32 %v2592_v48, %v2610_v22  ;;  %v2607_v33 = vpop.xlane.xlu0 %2606  ;;  %v3782_v22 = vld [vmem:[%s6552_s9 + $0x70] sm:$0xff] }
 0xfb1   :  { %v2617_v25 = vsub.f32 %v2587_v2, %v2607_v33 }
 0xfb2   :  { %v2623_v37 = vmul.f32 1.442695, %v2618_v23  ;;  %v3783_v23 = vld [vmem:[%s6552_s9 + $0x78] sm:$0xff] }
 0xfb3   :  { %v2621_v39 = vmul.f32 1.442695, %v2617_v25  ;;  %v2616_v44 = vpop.xlane.xlu1 %2615  ;;  %v4898_v33 = vpack.c.bf16 %v3783_v23, %v3782_v22  ;;  %v3798_v23 = vld [vmem:[%s6554_s13 + $0xa0] sm:$0xff] }
 0xfb4   :  { %5080 = vpow2.f32 %v2623_v37  ;;  %v2620_v46 = vsub.f32 %v2602_v3, %v2616_v44  ;;  %v2613_v26 = vpop.xlane.xlu0 %2612 }
 0xfb5   :  { %5082 = vpow2.f32 %v2621_v39  ;;  %v2619_v47 = vsub.f32 %v2597_v53, %v2613_v26 }
 0xfb6   :  { %v2627_v50 = vmul.f32 1.442695, %v2620_v46 }
 0xfb7   :  { %v2625_v42 = vmul.f32 1.442695, %v2619_v47 }
 0xfb8   :  { %5084 = vpow2.f32 %v2627_v50 }
 0xfb9   :  { %5086 = vpow2.f32 %v2625_v42 }
 0xfbe   :  { %v5081_v41 = vpop.eup %5080 }
 0xfbf   :  { %v5083_v54 = vpop.eup %5082  ;;  %v2632_v56 = vsel %vm397_vm1, %v5081_v41, 0.0 }
 0xfc0   :  { %2633 = vadd.xlane.f32.xlu1 %v2632_v56  ;;  %v2629_v52 = vsel %vm397_vm1, %v5083_v54, 0.0 }
 0xfc1   :  { %2630 = vadd.xlane.f32.xlu0 %v2629_v52  ;;  %v3785_v52 = vld [vmem:[%s6553_s10 + $0x1] ss:$0 sm:$0xff] }
 0xfc2   :  { %v5085_v59 = vpop.eup %5084 }
 0xfc3   :  { %v5087_v49 = vpop.eup %5086  ;;  %v2638_v40 = vsel %vm397_vm1, %v5085_v59, 0.0 }
 0xfc4   :  { %2639 = vadd.xlane.f32.xlu1 %v2638_v40  ;;  %v2635_v51 = vsel %vm397_vm1, %v5087_v49, 0.0 }
 0xfc5   :  { %2636 = vadd.xlane.f32.xlu0 %v2635_v51 }
0x1048   :  { %v6168_v43 = vpop.f32.mrb[32].mxu0 }
0x1049   :  { %v6170_v57 = vpop.f32.mrb[33].mxu0 }
0x104c   :  { %v6172_v30 = vpop.f32.mrb[34].mxu0 }
0x104d   :  { %v6174_v61 = vpop.f32.mrb[35].mxu0  ;;  %v2634_v0 = vpop.xlane.xlu1 %2633 }
0x104e   :  { %v2631_v48 = vpop.xlane.xlu0 %2630 }
0x104f   :  { %5088 = vrcp.f32 %v2631_v48 }
0x1050   :  { %5090 = vrcp.f32 %v2634_v0 }
0x1051   :  { %v2640_v1 = vpop.xlane.xlu1 %2639 }
0x1052   :  { %v2637_v2 = vpop.xlane.xlu0 %2636 }
0x1053   :  { %5092 = vrcp.f32 %v2637_v2 }
0x1054   :  { %5094 = vrcp.f32 %v2640_v1 }
0x1058   :  { %v4495_v63 = vpop.f32.mrb[36].mxu0 }
0x1059   :  { %v5089_v3 = vpop.eup %5088  ;;  %v2479_v6 = vadd.f32 %v4495_v63, %v3759_v60  ;;  %v2473_v53 = vpop.f32.mrb[37].mxu0 }
0x105a   :  { %v2474_v9 = vadd.f32 %v3759_v60, %v2473_v53  ;;  %v2645_v36 = vmul.f32 %v5089_v3, %v5083_v54  ;;  %v5091_v62 = vpop.eup %5090 }
0x105b   :  { %v2646_v28 = vmul.f32 %v5091_v62, %v5081_v41 }
0x105c   :  { %v4878_v55 = vpack.c.bf16 %v2479_v6, %v2474_v9  ;;  %v4498_v10 = vpop.f32.mrb[38].mxu0  ;;  %4521 = vmatprep.mubr.msk.f32.mxu0 %vm397_vm1, %v2645_v36 }
0x105d   :  { %v2489_v4 = vadd.f32 %v4498_v10, %v3759_v60  ;;  %v2483_v34 = vpop.f32.mrb[39].mxu0  ;;  %v5093_v32 = vpop.eup %5092 }
0x105e   :  { %v2484_v12 = vadd.f32 %v3759_v60, %v2483_v34  ;;  %4879 = vmatprep.subr.bf16.mxu0 %v4878_v55  ;;  %v5095_v14 = vpop.eup %5094  ;;  %v2647_v15 = vmul.f32 %v5093_v32, %v5087_v49 }
0x105f   :  { %4881 = vmatpush3.bf16.msra.mxu0 %v4878_v55  ;;  %v2648_v16 = vmul.f32 %v5095_v14, %v5085_v59 }
0x1060   :  { %v4882_v5 = vpack.c.bf16 %v2489_v4, %v2484_v12 }
0x1062   :  { %4883 = vmatprep.subr.bf16.mxu0 %v4882_v5 }
0x1063   :  { %4885 = vmatpush3.bf16.msra.mxu0 %v4882_v5 }
0x1064   :  { %4887 = vmatprep.subr.bf16.mxu0 %v4886_v18 }
0x1066   :  { %4522 = vmatmul.mubr.msk.f32.vlgmr.msra.gmra.mrb[40].mxu0 %vm397_vm1, %v2646_v28 }
0x1067   :  { %4524 = vmatprep.mubr.msk.f32.mxu0 %vm397_vm1, %v2647_v15  ;;  %4889 = vmatpush3.bf16.msra.mxu0 %v4886_v18  ;;  %v4902_v18 = vpack.c.bf16 %v3797_v24, %v3795_v31  ;;  %v3833_v24 = vld [vmem:[%s6555_s15 + $0x190] sm:$0xff] }
0x1068   :  { %4891 = vmatprep.subr.bf16.mxu0 %v4890_v11 }
0x1069   :  { %4903 = vmatprep.subr.bf16.mxu1 %v4902_v18  ;;  %v3834_v18 = vld [vmem:[%s6555_s15 + $0x198] sm:$0xff] }
0x106a   :  { %4525 = vmatmul.mubr.msk.f32.gmra.mrb[42].mxu0 %vm397_vm1, %v2648_v16 }
0x106b   :  { %4893 = vmatpush3.bf16.msra.mxu0 %v4890_v11  ;;  %v3796_v11 = vld [vmem:[%s6554_s13 + $0x90] sm:$0xff] }
0x106c   :  { %4895 = vmatprep.subr.bf16.mxu0 %v4894_v21  ;;  %v4904_v29 = vpack.c.bf16 %v3796_v11, %v3794_v19  ;;  %v3817_v19 = vld [vmem:[%s6555_s15 + $0x110] sm:$0xff]  ;;  %v3818_v11 = vld [vmem:[%s6555_s15 + $0x118] sm:$0xff] }
0x106e   :  { %4905 = vmatpush1.bf16.msra.mxu1 %v4904_v29  ;;  %v4924_v29 = vpack.c.bf16 %v3818_v11, %v3817_v19 }
0x106f   :  { %4897 = vmatpush3.bf16.msra.mxu0 %v4894_v21  ;;  %v3801_v21 = vld [vmem:[%s6554_s13 + $0xb8] sm:$0xff] }
0x1070   :  { %4899 = vmatprep.subr.bf16.mxu0 %v4898_v33  ;;  %v4906_v22 = vpack.c.bf16 %v3801_v21, %v3799_v20  ;;  %v3835_v20 = vld [vmem:[%s6555_s15 + $0x1a0] sm:$0xff]  ;;  %v3836_v21 = vld [vmem:[%s6555_s15 + $0x1a8] sm:$0xff] }
0x1072   :  { %4907 = vmatprep.subr.bf16.mxu1 %v4906_v22  ;;  %v4926_v22 = vpack.c.bf16 %v3836_v21, %v3835_v20 }
0x1073   :  { %4901 = vmatpush3.bf16.msra.mxu0 %v4898_v33  ;;  %v3800_v33 = vld [vmem:[%s6554_s13 + $0xb0] sm:$0xff] }
0x1139   :  { %v4523_v25 = vpop.f32.mrb[40].mxu0 }
0x113a   :  { %2752 = vrot.lane.b32.xlu1 %v4523_v25, %s6601_s4  ;;  %v2727_v37 = vpop.f32.mrb[41].mxu0  ;;  %v4908_v25 = vpack.c.bf16 %v3800_v33, %v3798_v23  ;;  %v3819_v23 = vld [vmem:[%s6555_s15 + $0x120] sm:$0xff]  ;;  %v3820_v33 = vld [vmem:[%s6555_s15 + $0x128] sm:$0xff] }
0x113b   :  { %2750 = vrot.lane.b32.xlu0 %v2727_v37, %s6601_s4  ;;  %v3803_v37 = vld [vmem:[%s6554_s13 + $0xc8] sm:$0xff] }
0x113c   :  { %4909 = vmatpush1.bf16.msra.mxu1 %v4908_v25  ;;  %v4928_v25 = vpack.c.bf16 %v3820_v33, %v3819_v23 }
0x113d   :  { %v4526_v39 = vpop.f32.mrb[42].mxu0 }
0x113e   :  { %v2737_v44 = vpop.f32.mrb[43].mxu0 }
0x113f   :  { %2754 = vrot.lane.b32.xlu1 %v2737_v44, %s6601_s4 }
0x1143   :  { %2756 = vrot.lane.b32.xlu1 %v4526_v39, %s6601_s4  ;;  %v3805_v39 = vld [vmem:[%s6554_s13 + $0xd8] sm:$0xff] }
0x1144   :  { %v4910_v44 = vpack.c.bf16 %v3805_v39, %v3803_v37  ;;  %v3837_v37 = vld [vmem:[%s6555_s15 + $0x1b0] sm:$0xff]  ;;  %v3838_v39 = vld [vmem:[%s6555_s15 + $0x1b8] sm:$0xff] }
0x1146   :  { %4911 = vmatprep.subr.bf16.mxu1 %v4910_v44  ;;  %v4930_v44 = vpack.c.bf16 %v3838_v39, %v3837_v37 }
0x11ac   :  { %v2753_v46 = vpop.permute.xlu1 %2752 }
0x11ad   :  { %v2751_v26 = vpop.permute.xlu0 %2750  ;;  %v2763_v50 = vsel %vm397_vm1, %v6168_v43, %v2753_v46  ;;  %v3802_v46 = vld [vmem:[%s6554_s13 + $0xc0] sm:$0xff] }
0x11ae   :  { %v2762_v47 = vsel %vm397_vm1, %v6170_v57, %v2751_v26  ;;  %v3804_v26 = vld [vmem:[%s6554_s13 + $0xd0] sm:$0xff] }
0x11af   :  { %4543 = vmatprep.mubr.msk.f32.mxu0 %vm99_vm0, %v2762_v47  ;;  %v4912_v47 = vpack.c.bf16 %v3804_v26, %v3802_v46  ;;  %v3821_v46 = vld [vmem:[%s6555_s15 + $0x130] sm:$0xff]  ;;  %v3822_v26 = vld [vmem:[%s6555_s15 + $0x138] sm:$0xff] }
0x11b0   :  { %4544 = vmatmul.mubr.msk.f32.vlgmr.msra.gmra.mrb[44].mxu0 %vm99_vm0, %v2763_v50  ;;  %v3807_v50 = vld [vmem:[%s6554_s13 + $0xe8] sm:$0xff] }
0x11b1   :  { %v2755_v42 = vpop.permute.xlu1 %2754  ;;  %4913 = vmatpush1.bf16.msra.mxu1 %v4912_v47  ;;  %v4932_v47 = vpack.c.bf16 %v3822_v26, %v3821_v46 }
0x11b2   :  { %v2764_v41 = vsel %vm397_vm1, %v6174_v61, %v2755_v42  ;;  %v3809_v42 = vld [vmem:[%s6554_s13 + $0xf8] sm:$0xff] }
0x11b3   :  { %4546 = vmatprep.mubr.msk.f32.mxu0 %vm99_vm0, %v2764_v41  ;;  %v4914_v41 = vpack.c.bf16 %v3809_v42, %v3807_v50  ;;  %v3839_v50 = vld [vmem:[%s6555_s15 + $0x1c0] sm:$0xff]  ;;  %v3840_v42 = vld [vmem:[%s6555_s15 + $0x1c8] sm:$0xff] }
0x11b5   :  { %v2757_v54 = vpop.permute.xlu1 %2756  ;;  %4915 = vmatprep.subr.bf16.mxu1 %v4914_v41  ;;  %v4934_v41 = vpack.c.bf16 %v3840_v42, %v3839_v50 }
0x11b6   :  { %v2765_v56 = vsel %vm397_vm1, %v6172_v30, %v2757_v54  ;;  %v3806_v54 = vld [vmem:[%s6554_s13 + $0xe0] sm:$0xff] }
0x11b7   :  { %4547 = vmatmul.mubr.msk.f32.gmra.mrb[46].mxu0 %vm99_vm0, %v2765_v56  ;;  %v3808_v56 = vld [vmem:[%s6554_s13 + $0xf0] sm:$0xff] }
0x1283   :  { %v4545_v59 = vpop.f32.mrb[44].mxu0 }
0x1284   :  { %v2867_v49 = vadd.f32 %v4545_v59, %v3785_v52  ;;  %v2861_v40 = vpop.f32.mrb[45].mxu0  ;;  %v3831_v59 = vld [vmem:[%s6555_s15 + $0x180] sm:$0xff] }
0x1285   :  { %v2862_v51 = vadd.f32 %v3785_v52, %v2861_v40  ;;  %v3815_v40 = vld [vmem:[%s6555_s15 + $0x100] sm:$0xff] }
0x1286   :  { %v2881_v43 = vadd.f32 %v2867_v49, %v5977_v45  ;;  %v3832_v49 = vld [vmem:[%s6555_s15 + $0x188] sm:$0xff] }
0x1287   :  { %v2880_v57 = vadd.f32 %v2862_v51, %v5964_v58  ;;  %v4918_v51 = vpack.c.bf16 %v3832_v49, %v3831_v59  ;;  %v3841_v59 = vld [vmem:[%s6555_s15 + $0x1d0] sm:$0xff]  ;;  %v3842_v49 = vld [vmem:[%s6555_s15 + $0x1d8] sm:$0xff] }
0x1288   :  { %v2891_v61 = vsel %vm99_vm0, %v2881_v43, 0.0 }
0x1289   :  { %2892 = vadd.xlane.f32.xlu1 %v2891_v61  ;;  %v2888_v48 = vsel %vm99_vm0, %v2880_v57, 0.0  ;;  %4919 = vmatprep.subr.bf16.mxu0 %v4918_v51  ;;  %v3825_v51 = vld [vmem:[%s6555_s15 + $0x150] sm:$0xff] }
0x128a   :  { %2889 = vadd.xlane.f32.xlu0 %v2888_v48  ;;  %v4548_v30 = vpop.f32.mrb[46].mxu0 }
0x128b   :  { %v2871_v0 = vpop.f32.mrb[47].mxu0  ;;  %v2877_v2 = vadd.f32 %v4548_v30, %v3785_v52 }
0x128c   :  { %v2872_v60 = vadd.f32 %v3785_v52, %v2871_v0  ;;  %v4916_v52 = vpack.c.bf16 %v3808_v56, %v3806_v54  ;;  %v3823_v54 = vld [vmem:[%s6555_s15 + $0x140] sm:$0xff]  ;;  %v3824_v56 = vld [vmem:[%s6555_s15 + $0x148] sm:$0xff] }
0x128d   :  { %v2883_v3 = vadd.f32 %v2877_v2, %v6003_v7 }
0x128e   :  { %v2882_v1 = vadd.f32 %v2872_v60, %v5990_v27  ;;  %4917 = vmatpush1.bf16.msra.mxu1 %v4916_v52  ;;  %v4936_v52 = vpack.c.bf16 %v3824_v56, %v3823_v54 }
0x128f   :  { %v2897_v45 = vsel %vm99_vm0, %v2883_v3, 0.0 }
0x1290   :  { %v2894_v63 = vsel %vm99_vm0, %v2882_v1, 0.0 }
0x1291   :  { %2895 = vadd.xlane.f32.xlu0 %v2894_v63 }
0x1295   :  { %2898 = vadd.xlane.f32.xlu0 %v2897_v45 }
0x1316   :  { %v2893_v58 = vpop.xlane.xlu1 %2892 }
0x1317   :  { %v2901_v6 = vmul.f32 0.015625, %v2893_v58  ;;  %v2890_v53 = vpop.xlane.xlu0 %2889 }
0x1318   :  { %v2900_v9 = vmul.f32 0.015625, %v2890_v53 }
0x1319   :  { %v6234_v36 = vsub.f32 %v2881_v43, %v2901_v6  ;;  %v3816_v43 = vld [vmem:[%s6555_s15 + $0x108] sm:$0xff] }
0x131a   :  { %v6236_v55 = vsub.f32 %v2880_v57, %v2900_v9  ;;  %v4920_v57 = vpack.c.bf16 %v3816_v43, %v3815_v40  ;;  %v4938_v40 = vpack.c.bf16 %v3842_v49, %v3841_v59  ;;  %v3826_v43 = vld [vmem:[%s6555_s15 + $0x158] sm:$0xff] }
0x131b   :  { %v2909_v10 = vmul.f32 %v6234_v36, %v6234_v36 }
0x131c   :  { %v2908_v27 = vmul.f32 %v6236_v55, %v6236_v55  ;;  %4921 = vmatpush3.bf16.msra.mxu0 %v4920_v57  ;;  %v4940_v57 = vpack.c.bf16 %v3826_v43, %v3825_v51 }
0x131d   :  { %v2915_v7 = vsel %vm99_vm0, %v2909_v10, 0.0  ;;  %v3792_v10 = vld [vmem:[%s6556_s11 + $0x1] ss:$0 sm:$0xff] }
0x131e   :  { %v2896_v4 = vpop.xlane.xlu0 %2895  ;;  %2916 = vadd.xlane.f32.xlu1 %v2915_v7  ;;  %v2912_v34 = vsel %vm99_vm0, %v2908_v27, 0.0 }
0x131f   :  { %v2902_v12 = vmul.f32 0.015625, %v2896_v4  ;;  %2913 = vadd.xlane.f32.xlu0 %v2912_v34  ;;  %v3793_v4 = vld [vmem:[%s6557_s12 + $0x1] ss:$0 sm:$0xff] }
0x1321   :  { %v6244_v5 = vsub.f32 %v2882_v1, %v2902_v12 }
0x1322   :  { %v2899_v62 = vpop.xlane.xlu0 %2898 }
0x1323   :  { %v2903_v32 = vmul.f32 0.015625, %v2899_v62  ;;  %v2910_v28 = vmul.f32 %v6244_v5, %v6244_v5 }
0x1325   :  { %v6248_v14 = vsub.f32 %v2883_v3, %v2903_v32  ;;  %v2918_v15 = vsel %vm99_vm0, %v2910_v28, 0.0 }
0x1326   :  { %2919 = vadd.xlane.f32.xlu0 %v2918_v15 }
0x1327   :  { %v2911_v16 = vmul.f32 %v6248_v14, %v6248_v14 }
0x1329   :  { %v2921_v17 = vsel %vm99_vm0, %v2911_v16, 0.0 }
0x132a   :  { %2922 = vadd.xlane.f32.xlu1 %v2921_v17 }
0x13ab   :  { %v2917_v61 = vpop.xlane.xlu1 %2916 }
0x13ac   :  { %v2925_v48 = vmul.f32 0.015625, %v2917_v61  ;;  %v2914_v30 = vpop.xlane.xlu0 %2913  ;;  %v3843_v61 = vld [vmem:[%s6555_s15 + $0x1e0] sm:$0xff] }
0x13ad   :  { %v2924_v0 = vmul.f32 0.015625, %v2914_v30  ;;  %v3827_v30 = vld [vmem:[%s6555_s15 + $0x160] sm:$0xff] }
0x13ae   :  { %v2929_v2 = vadd.f32 1e-12, %v2925_v48  ;;  %v3844_v48 = vld [vmem:[%s6555_s15 + $0x1e8] sm:$0xff] }
0x13af   :  { %v2928_v60 = vadd.f32 1e-12, %v2924_v0  ;;  %v4942_v0 = vpack.c.bf16 %v3844_v48, %v3843_v61 }
0x13b0   :  { %5096 = vrsqrt.f32 %v2929_v2  ;;  %v3828_v2 = vld [vmem:[%s6555_s15 + $0x168] sm:$0xff] }
0x13b1   :  { %5098 = vrsqrt.f32 %v2928_v60  ;;  %v3845_v60 = vld [vmem:[%s6555_s15 + $0x1f0] sm:$0xff] }
0x13b3   :  { %v2920_v1 = vpop.xlane.xlu0 %2919 }
0x13b4   :  { %v2926_v63 = vmul.f32 0.015625, %v2920_v1  ;;  %v3846_v1 = vld [vmem:[%s6555_s15 + $0x1f8] sm:$0xff] }
0x13b6   :  { %v2930_v3 = vadd.f32 1e-12, %v2926_v63  ;;  %v4944_v63 = vpack.c.bf16 %v3828_v2, %v3827_v30 }
0x13b7   :  { %v2923_v45 = vpop.xlane.xlu1 %2922 }
0x13b8   :  { %5100 = vrsqrt.f32 %v2930_v3  ;;  %v2927_v58 = vmul.f32 0.015625, %v2923_v45  ;;  %v4946_v3 = vpack.c.bf16 %v3846_v1, %v3845_v60  ;;  %v3829_v45 = vld [vmem:[%s6555_s15 + $0x170] sm:$0xff] }
0x13ba   :  { %v5097_v6 = vpop.eup %5096  ;;  %v2931_v53 = vadd.f32 1e-12, %v2927_v58  ;;  %v3830_v58 = vld [vmem:[%s6555_s15 + $0x178] sm:$0xff]  ;;  %s6602_s15 = sld [smem:[#allocation11_spill]] }
0x13bb   :  { %v5099_v9 = vpop.eup %5098  ;;  %v2937_v7 = vmul.f32 %v5097_v6, %v6234_v36  ;;  %v4948_v6 = vpack.c.bf16 %v3830_v58, %v3829_v45 }
0x13bc   :  { %v2936_v27 = vmul.f32 %v5099_v9, %v6236_v55  ;;  %5102 = vrsqrt.f32 %v2931_v53  ;;  %v3810_v53 = vld [vmem:[%s6558_s14 + $0x2] sm:$0x3] }
0x13bd   :  { %v2947_v62 = vmul.f32 %v3792_v10, %v2937_v7  ;;  %v2983_v9 = vrot.slane %v3810_v53, %v5821_v8 }
0x13be   :  { %v2946_v34 = vmul.f32 %v3792_v10, %v2936_v27 }
0x13bf   :  { %v6328_v55 = vadd.f32 %v3793_v4, %v2947_v62 }
0x13c0   :  { %v6322_v12 = vadd.f32 %v3793_v4, %v2946_v34 }
0x13c2   :  { %v5101_v32 = vpop.eup %5100  ;;  %3811 = vmatmul.mubr.msk.f32.vlgmr.msra.gmra.mrb[48].mxu1 %vm99_vm0, %v6322_v12 }
0x13c3   :  { %3072 = vmatprep.mubr.f32.mxu1 %v5142_v13  ;;  %v2938_v28 = vmul.f32 %v5101_v32, %v6244_v5 }
0x13c5   :  { %v2948_v15 = vmul.f32 %v3792_v10, %v2938_v28 }
0x13c6   :  { %v5103_v36 = vpop.eup %5102  ;;  %3812 = vmatmul.mubr.msk.f32.gmra.mrb[50].mxu1 %vm99_vm0, %v6328_v55 }
0x13c7   :  { %3078 = vmatprep.mubr.f32.mxu1 %v5142_v13  ;;  %v6333_v16 = vadd.f32 %v3793_v4, %v2948_v15  ;;  %v2939_v17 = vmul.f32 %v5103_v36, %v6248_v14  ;;  %v4922_v14 = vpack.c.bf16 %v3834_v18, %v3833_v24 }
0x13c9   :  { %v2949_v31 = vmul.f32 %v3792_v10, %v2939_v17  ;;  %4923 = vmatprep.subr.bf16.mxu0 %v4922_v14  ;;  %v2987_v10 = vrot.slane %v3810_v53, %v5826_v38 }
0x13ca   :  { %3813 = vmatmul.mubr.msk.f32.gmra.mrb[52].mxu1 %vm99_vm0, %v6333_v16  ;;  %4925 = vmatpush3.bf16.msra.mxu0 %v4924_v29 }
0x13cb   :  { %3084 = vmatprep.mubr.f32.mxu1 %v5142_v13  ;;  %v6339_v5 = vadd.f32 %v3793_v4, %v2949_v31  ;;  %4927 = vmatprep.subr.bf16.mxu0 %v4926_v22 }
0x13ce   :  { %3814 = vmatmul.mubr.msk.f32.gmra.mrb[54].mxu1 %vm99_vm0, %v6339_v5  ;;  %4929 = vmatpush3.bf16.msra.mxu0 %v4928_v25 }
0x13cf   :  { %4931 = vmatprep.subr.bf16.mxu0 %v4930_v44 }
0x13d2   :  { %4933 = vmatpush3.bf16.msra.mxu0 %v4932_v47 }
0x13d3   :  { %4935 = vmatprep.subr.bf16.mxu0 %v4934_v41 }
0x13d6   :  { %4937 = vmatpush3.bf16.msra.mxu0 %v4936_v52 }
0x13d7   :  { %4939 = vmatprep.subr.bf16.mxu0 %v4938_v40 }
0x13da   :  { %4941 = vmatpush3.bf16.msra.mxu0 %v4940_v57 }
0x13db   :  { %4943 = vmatprep.subr.bf16.mxu0 %v4942_v0 }
0x13de   :  { %4945 = vmatpush3.bf16.msra.mxu0 %v4944_v63 }
0x13df   :  { %4947 = vmatprep.subr.bf16.mxu0 %v4946_v3 }
0x13e2   :  { %4949 = vmatpush3.bf16.msra.mxu0 %v4948_v6 }
0x1495   :  { %v3068_v27 = vpop.f32.mrb[48].mxu1 }
0x1496   :  { %v6432_v7 = vadd.f32 %v3068_v27, %v2983_v9  ;;  %v3070_v4 = vpop.f32.mrb[49].mxu1 }
0x1497   :  { %v3071_v34 = vadd.f32 %v3070_v4, %v2987_v10 }
0x1498   :  { %v3099_v62 = vmul.f32 0.044715, %v6432_v7 }
0x1499   :  { %v3100_v32 = vmul.f32 0.044715, %v3071_v34  ;;  %v3074_v28 = vpop.f32.mrb[50].mxu1 }
0x149a   :  { %v3107_v15 = vmul.f32 %v3099_v62, %v6432_v7  ;;  %v6436_v36 = vadd.f32 %v3074_v28, %v2983_v9  ;;  %v3076_v17 = vpop.f32.mrb[51].mxu1 }
0x149b   :  { %v3108_v31 = vmul.f32 %v3100_v32, %v3071_v34  ;;  %v6438_v24 = vadd.f32 %v3076_v17, %v2987_v10  ;;  %v3092_v32 = vmul.f32 0.5, %v3071_v34 }
0x149c   :  { %v3115_v18 = vmul.f32 %v3107_v15, %v6432_v7  ;;  %v3101_v14 = vmul.f32 0.044715, %v6436_v36  ;;  %v3091_v15 = vmul.f32 0.5, %v6432_v7 }
0x149d   :  { %v3102_v19 = vmul.f32 0.044715, %v6438_v24  ;;  %v3080_v11 = vpop.f32.mrb[52].mxu1  ;;  %v3116_v29 = vmul.f32 %v3108_v31, %v3071_v34 }
0x149e   :  { %v3123_v20 = vadd.f32 %v3115_v18, %v6432_v7  ;;  %v3109_v21 = vmul.f32 %v3101_v14, %v6436_v36  ;;  %v6445_v22 = vadd.f32 %v3080_v11, %v2983_v9  ;;  %v3082_v23 = vpop.f32.mrb[53].mxu1  ;;  %v3094_v11 = vmul.f32 0.5, %v6438_v24 }
0x149f   :  { %v3110_v33 = vmul.f32 %v3102_v19, %v6438_v24  ;;  %v6448_v25 = vadd.f32 %v3082_v23, %v2987_v10  ;;  %v3124_v37 = vadd.f32 %v3116_v29, %v3071_v34 }
0x14a0   :  { %v3131_v39 = vmul.f32 0.7978846, %v3123_v20  ;;  %v3103_v44 = vmul.f32 0.044715, %v6445_v22  ;;  %v3117_v46 = vmul.f32 %v3109_v21, %v6436_v36  ;;  %v3093_v20 = vmul.f32 0.5, %v6436_v36 }
0x14a1   :  { %v3104_v26 = vmul.f32 0.044715, %v6448_v25  ;;  %v3086_v47 = vpop.f32.mrb[54].mxu1  ;;  %v3132_v50 = vmul.f32 0.7978846, %v3124_v37  ;;  %v3118_v42 = vmul.f32 %v3110_v33, %v6438_v24  ;;  %v3096_v7 = vmul.f32 0.5, %v6448_v25 }
0x14a2   :  { %5104 = vtanh.f32 %v3131_v39  ;;  %v3111_v41 = vmul.f32 %v3103_v44, %v6445_v22  ;;  %v6455_v54 = vadd.f32 %v3086_v47, %v2983_v9  ;;  %v3088_v56 = vpop.f32.mrb[55].mxu1  ;;  %v3125_v52 = vadd.f32 %v3117_v46, %v6436_v36 }
0x14a3   :  { %v3112_v59 = vmul.f32 %v3104_v26, %v6448_v25  ;;  %v3089_v49 = vadd.f32 %v3088_v56, %v2987_v10  ;;  %5106 = vtanh.f32 %v3132_v50  ;;  %v3126_v40 = vadd.f32 %v3118_v42, %v6438_v24 }
0x14a4   :  { %v3105_v51 = vmul.f32 0.044715, %v6455_v54  ;;  %v3133_v43 = vmul.f32 0.7978846, %v3125_v52  ;;  %v3119_v57 = vmul.f32 %v3111_v41, %v6445_v22  ;;  %v3095_v44 = vmul.f32 0.5, %v6445_v22 }
0x14a5   :  { %v3106_v61 = vmul.f32 0.044715, %v3089_v49  ;;  %v3134_v48 = vmul.f32 0.7978846, %v3126_v40  ;;  %v3120_v30 = vmul.f32 %v3112_v59, %v6448_v25  ;;  %v3098_v42 = vmul.f32 0.5, %v3089_v49 }
0x14a6   :  { %v3113_v0 = vmul.f32 %v3105_v51, %v6455_v54  ;;  %5108 = vtanh.f32 %v3133_v43  ;;  %v3127_v2 = vadd.f32 %v3119_v57, %v6445_v22  ;;  %v3097_v41 = vmul.f32 0.5, %v6455_v54  ;;  %v3848_v22 = vld [vmem:[%s6559_s16 + $0x1] ss:$0 sm:$0xff]  ;;  %s6603_s16 = sld [smem:[#allocation12_spill]] }
0x14a7   :  { %v3114_v60 = vmul.f32 %v3106_v61, %v3089_v49  ;;  %5110 = vtanh.f32 %v3134_v48  ;;  %v3128_v1 = vadd.f32 %v3120_v30, %v6448_v25 }
0x14a8   :  { %v3135_v63 = vmul.f32 0.7978846, %v3127_v2  ;;  %v3121_v3 = vmul.f32 %v3113_v0, %v6455_v54 }
0x14a9   :  { %v3136_v45 = vmul.f32 0.7978846, %v3128_v1  ;;  %v3122_v58 = vmul.f32 %v3114_v60, %v3089_v49 }
0x14aa   :  { %5112 = vtanh.f32 %v3135_v63  ;;  %v3129_v6 = vadd.f32 %v3121_v3, %v6455_v54 }
0x14ab   :  { %5114 = vtanh.f32 %v3136_v45  ;;  %v3130_v53 = vadd.f32 %v3122_v58, %v3089_v49 }
0x14ac   :  { %v5105_v9 = vpop.eup %5104  ;;  %v3137_v10 = vmul.f32 0.7978846, %v3129_v6 }
0x14ad   :  { %v5107_v27 = vpop.eup %5106  ;;  %v3147_v4 = vadd.f32 1.0, %v5105_v9  ;;  %v3138_v62 = vmul.f32 0.7978846, %v3130_v53 }
0x14ae   :  { %v3148_v28 = vadd.f32 1.0, %v5107_v27  ;;  %5116 = vtanh.f32 %v3137_v10 }
0x14af   :  { %5118 = vtanh.f32 %v3138_v62  ;;  %v3155_v14 = vmul.f32 %v3147_v4, %v3091_v15 }
0x14b0   :  { %v5109_v17 = vpop.eup %5108  ;;  %v3156_v31 = vmul.f32 %v3148_v28, %v3092_v32 }
0x14b1   :  { %v5111_v18 = vpop.eup %5110  ;;  %v3149_v19 = vadd.f32 1.0, %v5109_v17 }
0x14b2   :  { %3268 = vmatprep.mubr.f32.mxu0 %v3156_v31  ;;  %v3150_v29 = vadd.f32 1.0, %v5111_v18 }
0x14b3   :  { %3269 = vmatmul.mubr.f32.vlgmr.msra.gmra.mrb[48].mxu0 %v3155_v14  ;;  %v3157_v33 = vmul.f32 %v3149_v19, %v3093_v20 }
0x14b4   :  { %v5113_v21 = vpop.eup %5112  ;;  %v3158_v23 = vmul.f32 %v3150_v29, %v3094_v11 }
0x14b5   :  { %v5115_v34 = vpop.eup %5114  ;;  %v3151_v37 = vadd.f32 1.0, %v5113_v21 }
0x14b6   :  { %3273 = vmatprep.mubr.f32.mxu0 %v3158_v23  ;;  %v3152_v39 = vadd.f32 1.0, %v5115_v34 }
0x14b7   :  { %3274 = vmatmul.mubr.f32.gmra.mrb[50].mxu0 %v3157_v33  ;;  %v3159_v24 = vmul.f32 %v3151_v37, %v3095_v44  ;;  %v3369_v33 = vld [vmem:[%s6562_s19] sm:$0xff]  ;;  %v3370_v37 = vld [vmem:[%s6562_s19 + $0x8] sm:$0xff]  ;;  %v3372_v44 = vld [vmem:[%s6562_s19 + $0x18] sm:$0xff] }
0x14b8   :  { %v5117_v46 = vpop.eup %5116  ;;  %v3160_v26 = vmul.f32 %v3152_v39, %v3096_v7  ;;  %v4950_v7 = vpack.c.bf16 %v3370_v37, %v3369_v33  ;;  %v3371_v39 = vld [vmem:[%s6562_s19 + $0x10] sm:$0xff] }
0x14b9   :  { %v5119_v47 = vpop.eup %5118  ;;  %v3153_v50 = vadd.f32 1.0, %v5117_v46  ;;  %v4954_v46 = vpack.c.bf16 %v3372_v44, %v3371_v39 }
0x14ba   :  { %3278 = vmatprep.mubr.f32.mxu0 %v3160_v26  ;;  %v3154_v36 = vadd.f32 1.0, %v5119_v47  ;;  %4951 = vmatprep.subr.bf16.mxu1 %v4950_v7  ;;  %v3373_v26 = vld [vmem:[%s6562_s19 + $0x20] sm:$0xff]  ;;  %v3374_v47 = vld [vmem:[%s6562_s19 + $0x28] sm:$0xff] }
0x14bb   :  { %3279 = vmatmul.mubr.f32.gmra.mrb[52].mxu0 %v3159_v24  ;;  %v3161_v52 = vmul.f32 %v3153_v50, %v3097_v41  ;;  %4953 = vmatpush3.bf16.msra.mxu1 %v4950_v7  ;;  %v4958_v24 = vpack.c.bf16 %v3374_v47, %v3373_v26  ;;  %v3375_v50 = vld [vmem:[%s6562_s19 + $0x30] sm:$0xff] }
0x14bc   :  { %v3162_v56 = vmul.f32 %v3154_v36, %v3098_v42  ;;  %4955 = vmatprep.subr.bf16.mxu1 %v4954_v46  ;;  %v3376_v42 = vld [vmem:[%s6562_s19 + $0x38] sm:$0xff] }
0x14bd   :  { %v4962_v36 = vpack.c.bf16 %v3376_v42, %v3375_v50  ;;  %v5145_v50 = vmov 0  }
0x14be   :  { %3283 = vmatprep.mubr.f32.mxu0 %v3162_v56  ;;  %4998 = vset.pattern.permute.xlu1 %v5145_v50 }
0x14bf   :  { %3284 = vmatmul.mubr.f32.gmra.mrb[54].mxu0 %v3161_v52  ;;  %4957 = vmatpush3.bf16.msra.mxu1 %v4954_v46 }
0x14c0   :  { %4959 = vmatprep.subr.bf16.mxu1 %v4958_v24  ;;  %4999 = vset.pattern.permute.xlu0 %v5145_v50 }
0x14c3   :  { %4961 = vmatpush3.bf16.msra.mxu1 %v4958_v24 }
0x14c4   :  { %4963 = vmatprep.subr.bf16.mxu1 %v4962_v36 }
0x14c7   :  { %4965 = vmatpush3.bf16.msra.mxu1 %v4962_v36 }
0x1586   :  { %v4144_v25 = vpop.f32.mrb[48].mxu0 }
0x1587   :  { %v4145_v59 = vpop.f32.mrb[49].mxu0 }
0x1588   :  { %v4146_v40 = vadd.f32 %v4145_v59, %v4144_v25 }
0x158a   :  { %v3271_v51 = vadd.f32 %v4146_v40, %v3848_v22  ;;  %v4147_v43 = vpop.f32.mrb[50].mxu0 }
0x158b   :  { %v4148_v57 = vpop.f32.mrb[51].mxu0 }
0x158c   :  { %v4149_v61 = vadd.f32 %v4148_v57, %v4147_v43  ;;  %v3289_v49 = vadd.f32 %v3271_v51, %v6322_v12 }
0x158e   :  { %v3276_v48 = vadd.f32 %v4149_v61, %v3848_v22  ;;  %v4150_v30 = vpop.f32.mrb[52].mxu0  ;;  %v3297_v54 = vsel %vm99_vm0, %v3289_v49, 0.0 }
0x158f   :  { %3298 = vadd.xlane.f32.xlu0 %v3297_v54  ;;  %v4151_v0 = vpop.f32.mrb[53].mxu0 }
0x1590   :  { %v4152_v2 = vadd.f32 %v4151_v0, %v4150_v30  ;;  %v3290_v60 = vadd.f32 %v3276_v48, %v6328_v55  ;;  %v3851_v30 = vld [vmem:[%s6560_s17 + $0x1] ss:$0 sm:$0xff] }
0x1591   :  { %v3852_v0 = vld [vmem:[%s6561_s18 + $0x1] ss:$0 sm:$0xff] }
0x1592   :  { %v3281_v1 = vadd.f32 %v4152_v2, %v3848_v22  ;;  %v4153_v63 = vpop.f32.mrb[54].mxu0  ;;  %v3300_v3 = vsel %vm99_vm0, %v3290_v60, 0.0 }
0x1593   :  { %3301 = vadd.xlane.f32.xlu1 %v3300_v3  ;;  %v4154_v45 = vpop.f32.mrb[55].mxu0 }
0x1594   :  { %v4155_v58 = vadd.f32 %v4154_v45, %v4153_v63  ;;  %v3291_v6 = vadd.f32 %v3281_v1, %v6333_v16 }
0x1596   :  { %v3286_v53 = vadd.f32 %v4155_v58, %v3848_v22  ;;  %v3303_v12 = vsel %vm99_vm0, %v3291_v6, 0.0 }
0x1597   :  { %3304 = vadd.xlane.f32.xlu0 %v3303_v12 }
0x1598   :  { %v3292_v9 = vadd.f32 %v3286_v53, %v6339_v5 }
0x159a   :  { %v3306_v10 = vsel %vm99_vm0, %v3292_v9, 0.0 }
0x159b   :  { %3307 = vadd.xlane.f32.xlu1 %v3306_v10 }
0x161c   :  { %v3299_v27 = vpop.xlane.xlu0 %3298 }
0x161d   :  { %v3309_v55 = vmul.f32 0.015625, %v3299_v27 }
0x161f   :  { %v3313_v4 = vsub.f32 %v3289_v49, %v3309_v55 }
0x1620   :  { %v3302_v62 = vpop.xlane.xlu1 %3301 }
0x1621   :  { %v3310_v32 = vmul.f32 0.015625, %v3302_v62  ;;  %v3317_v28 = vmul.f32 %v3313_v4, %v3313_v4  ;;  %v3853_v62 = vld [vmem:[%s6563_s20] ss:$0 sm:$0xff] }
0x1623   :  { %v3314_v15 = vsub.f32 %v3290_v60, %v3310_v32  ;;  %v3321_v17 = vsel %vm99_vm0, %v3317_v28, 0.0 }
0x1624   :  { %3322 = vadd.xlane.f32.xlu0 %v3321_v17  ;;  %v3305_v16 = vpop.xlane.xlu0 %3304 }
0x1625   :  { %v3311_v31 = vmul.f32 0.015625, %v3305_v16  ;;  %v3318_v18 = vmul.f32 %v3314_v15, %v3314_v15 }
0x1627   :  { %v3315_v14 = vsub.f32 %v3291_v6, %v3311_v31  ;;  %v3324_v19 = vsel %vm99_vm0, %v3318_v18, 0.0 }
0x1628   :  { %3325 = vadd.xlane.f32.xlu1 %v3324_v19  ;;  %v3308_v5 = vpop.xlane.xlu1 %3307 }
0x1629   :  { %v3312_v11 = vmul.f32 0.015625, %v3308_v5  ;;  %v3319_v29 = vmul.f32 %v3315_v14, %v3315_v14 }
0x162b   :  { %v3316_v20 = vsub.f32 %v3292_v9, %v3312_v11  ;;  %v3327_v21 = vsel %vm99_vm0, %v3319_v29, 0.0 }
0x162c   :  { %3328 = vadd.xlane.f32.xlu0 %v3327_v21  ;;  %v3485_v21 = vld [vmem:[%s6564_s2] sm:$0xf] }
0x162d   :  { %v3320_v23 = vmul.f32 %v3316_v20, %v3316_v20 }
0x162f   :  { %v3330_v34 = vsel %vm99_vm0, %v3320_v23, 0.0  ;;  %v28_v23 = vstv %s6565_s22 }
0x1630   :  { %3331 = vadd.xlane.f32.xlu1 %v3330_v34  ;;  %29 = vst [vmem:[#allocation2] sm:$0x1] %v28_v23  ;;  %v3559_v34 = vld [vmem:[%s6602_s15] sm:$0x3] }
0x1631   :  { %v3568_v33 = vrot.slane %v3559_v34, %v5826_v38  ;;  %v3563_v37 = vrot.slane %v3559_v34, %v5821_v8  ;;  %v3588_v38 = vand.u32 127, %v1335_v35 }
0x1633   :  { %vm3589_vm5 = vcmp.eq.s32.totalorder %v3588_v38, 32 }
0x1637   :  { %v3859_v42 = vld [vmem:[#allocation2] ss:$0 sm:$0xff] }
0x16b1   :  { %v3323_v41 = vpop.xlane.xlu0 %3322 }
0x16b2   :  { %v3333_v56 = vmul.f32 0.015625, %v3323_v41 }
0x16b4   :  { %v3337_v52 = vadd.f32 1e-12, %v3333_v56 }
0x16b5   :  { %v3326_v25 = vpop.xlane.xlu1 %3325 }
0x16b6   :  { %5120 = vrsqrt.f32 %v3337_v52  ;;  %v3334_v22 = vmul.f32 0.015625, %v3326_v25 }
0x16b8   :  { %v3338_v59 = vadd.f32 1e-12, %v3334_v22 }
0x16b9   :  { %v3329_v40 = vpop.xlane.xlu0 %3328 }
0x16ba   :  { %5122 = vrsqrt.f32 %v3338_v59  ;;  %v3335_v51 = vmul.f32 0.015625, %v3329_v40 }
0x16bc   :  { %v3339_v43 = vadd.f32 1e-12, %v3335_v51 }
0x16bd   :  { %v3332_v57 = vpop.xlane.xlu1 %3331 }
0x16be   :  { %5124 = vrsqrt.f32 %v3339_v43  ;;  %v3336_v61 = vmul.f32 0.015625, %v3332_v57 }
0x16c0   :  { %v5121_v49 = vpop.eup %5120  ;;  %v3340_v48 = vadd.f32 1e-12, %v3336_v61 }
0x16c1   :  { %v3345_v54 = vmul.f32 %v5121_v49, %v3313_v4  ;;  %v5143_v4 = vmov 0.0|0.0  }
0x16c2   :  { %5126 = vrsqrt.f32 %v3340_v48  ;;  %4966 = vmatprep.subr.bf16.mxu1 %v5143_v4 }
0x16c3   :  { %v3355_v2 = vmul.f32 %v3851_v30, %v3345_v54 }
0x16c4   :  { %v5123_v60 = vpop.eup %5122 }
0x16c5   :  { %v3346_v1 = vmul.f32 %v5123_v60, %v3314_v15  ;;  %v3365_v63 = vadd.f32 %v3852_v0, %v3355_v2 }
0x16c7   :  { %v3356_v3 = vmul.f32 %v3851_v30, %v3346_v1  ;;  %4565 = vmatprep.mubr.msk.f32.mxu1 %vm99_vm0, %v3365_v63 }
0x16c8   :  { %v5125_v45 = vpop.eup %5124 }
0x16c9   :  { %v3366_v58 = vadd.f32 %v3852_v0, %v3356_v3  ;;  %v3347_v6 = vmul.f32 %v5125_v45, %v3315_v14 }
0x16cb   :  { %4566 = vmatmul.mubr.msk.f32.vlgmr.msra.gmra.mrb[56].mxu1 %vm99_vm0, %v3366_v58  ;;  %v3357_v53 = vmul.f32 %v3851_v30, %v3347_v6 }
0x16cc   :  { %v5127_v12 = vpop.eup %5126 }
0x16cd   :  { %v3367_v9 = vadd.f32 %v3852_v0, %v3357_v53  ;;  %v3348_v10 = vmul.f32 %v5127_v12, %v3316_v20 }
0x16cf   :  { %4568 = vmatprep.mubr.msk.f32.mxu1 %vm99_vm0, %v3367_v9  ;;  %v3358_v27 = vmul.f32 %v3851_v30, %v3348_v10 }
0x16d1   :  { %v3368_v55 = vadd.f32 %v3852_v0, %v3358_v27 }
0x16d3   :  { %4569 = vmatmul.mubr.msk.f32.gmra.mrb[58].mxu1 %vm99_vm0, %v3368_v55 }
0x16d4   :  { %4579 = vmatprep.mubr.msk.f32.mxu1 %vm5144_vm3, %v5142_v13 }
0x179e   :  { %v4567_v32 = vpop.f32.mrb[56].mxu1 }
0x179f   :  { %v3468_v28 = vadd.f32 %v4567_v32, %v3853_v62  ;;  %v3462_v15 = vpop.f32.mrb[57].mxu1 }
0x17a0   :  { %v3463_v17 = vadd.f32 %v3853_v62, %v3462_v15 }
0x17a1   :  { %5128 = vtanh.f32 %v3468_v28 }
0x17a2   :  { %5130 = vtanh.f32 %v3463_v17 }
0x17a6   :  { %v4570_v16 = vpop.f32.mrb[58].mxu1 }
0x17a7   :  { %v3478_v31 = vadd.f32 %v4570_v16, %v3853_v62  ;;  %v3472_v18 = vpop.f32.mrb[59].mxu1 }
0x17a8   :  { %v3473_v14 = vadd.f32 %v3853_v62, %v3472_v18 }
0x17a9   :  { %5132 = vtanh.f32 %v3478_v31 }
0x17aa   :  { %5134 = vtanh.f32 %v3473_v14 }
0x17ab   :  { %v5129_v19 = vpop.eup %5128 }
0x17ac   :  { %v5131_v5 = vpop.eup %5130 }
0x17ad   :  { %v4967_v11 = vpack.c.bf16 %v5129_v19, %v5131_v5 }
0x17af   :  { %4968 = vmatpush3.bf16.msra.mxu1 %v4967_v11 }
0x17b0   :  { %4969 = vmatprep.subr.bf16.mxu1 %v5143_v4 }
0x17b3   :  { %v5133_v13 = vpop.eup %5132 }
0x17b4   :  { %v5135_v29 = vpop.eup %5134 }
0x17b5   :  { %v4970_v20 = vpack.c.bf16 %v5133_v13, %v5135_v29 }
0x17b7   :  { %4971 = vmatpush3.bf16.msra.mxu1 %v4970_v20 }
0x17ba   :  { %4580 = vmatmul.mubr.msk.f32.vlgmr.msra.gmra.mrb[60].mxu1 %vm397_vm1, %v3485_v21 }
0x188d   :  { %v3555_v7 = vpop.f32.mrb[60].mxu1 }
0x188e   :  { %v3569_v39 = vmul.f32 %v3568_v33, %v3555_v7  ;;  %v4581_v44 = vpop.f32.mrb[61].mxu1  ;;  %v3564_v46 = vmul.f32 %v3563_v37, %v3555_v7  ;;  %v3586_v8 = vsel %vm397_vm1, %v3555_v7, 0.0 }
0x1890   :  { %v3571_v26 = vrot.slane %v3569_v39, 2 }
0x1892   :  { %v3573_v47 = vadd.f32 %v3571_v26, %v3564_v46 }
0x1894   :  { %v3575_v24 = vsel %vm3574_vm4, %v3573_v47, 0.0 }
0x1895   :  { %3576 = vadd.xlane.f32.xlu0 %v3575_v24 }
0x1922   :  { %v3577_v36 = vpop.xlane.xlu0 %3576 }
0x1923   :  { %v3585_v41 = vadd.f32 %v3859_v42, %v3577_v36 }
0x1925   :  { %3592 = vperm.xlu1 %4998, %v3585_v41  }
0x19a4   :  { %v3593_v56 = vpop.permute.xlu1 %3592 }
0x19a5   :  { %v3595_v52 = vsel %vm3589_vm5, %v3593_v56, %v3586_v8 }
0x19a6   :  { %3596 = vst [vmem:[%s6603_s16] sm:$0x3] %v3595_v52 }

</bundles_post_ra>
